<compile_context>
chip_gen: v5e
topology: v5e:2x2
jax: 0.10.0
libtpu: 0.0.40
codegen_flags: <defaults>
</compile_context>

<pallas_src>
import jax
import jax.numpy as jnp
from jax.experimental import pallas as pl
from jax.experimental.pallas import tpu as pltpu

LANE = 128


def _round_up(n, m):
    return (n + m - 1) // m * m


def _pick_tile_h(h, max_th=8):
    """Largest row-strip height <= max_th that divides H."""
    for th in range(min(h, max_th), 0, -1):
        if h % th == 0:
            return th
    return h


# ----------------------------- Pallas kernel -------------------------------

def _basic_block_kernel(x_ref, w1_ref, b1_ref, w2_ref, b2_ref, o_ref,
                        xpad_ref, midpad_ref, patch_ref):
    """Fused BasicBlock for one (batch, row-strip) grid step.

    x_ref:      (1, H, W, Cp)        full channel-padded input image (NHWC)
    w1_ref:     (9*Cp, Cp)           conv1 weight, BN1 scale folded, im2col layout
    b1_ref:     (1, Cp)  f32         folded BN1 bias
    w2_ref:     (9*Cp, Cp)           conv2 weight, BN2 scale folded, im2col layout
    b2_ref:     (1, Cp)  f32         folded BN2 bias
    o_ref:      (1, TH, W, Cp)       output strip (lane-dense stores)
    xpad_ref:   (H+4, W+2, Cp) VMEM  zero-halo copy of the input (built at strip 0)
    midpad_ref: (TH+2, W+2, Cp) VMEM conv1 strip output incl. 1-row halo (never to HBM)
    patch_ref:  ((TH+2)*W, 9*Cp) VMEM  im2col patch, shared by conv1/conv2
    """
    _, TH, W, Cp = o_ref.shape
    H = x_ref.shape[1]
    cdt = xpad_ref.dtype

    s = pl.program_id(1)
    num_strips = pl.num_programs(1)
    r0 = s * TH
    if TH % 8 == 0:
        r0 = pl.multiple_of(r0, 8)

    # ---- per batch (strip axis is "arbitrary" => s == 0 runs first): build
    #      the zero-halo input copy.  Only the thin halo is zeroed; the
    #      interior is overwritten from the resident x tile. ----
    @pl.when(s == 0)
    def _():
        zrow = jnp.zeros((2, W + 2, Cp), cdt)
        xpad_ref[0:2] = zrow
        xpad_ref[H + 2:H + 4] = zrow
        zcol = jnp.zeros((H + 4, 1, Cp), cdt)
        xpad_ref[:, 0:1, :] = zcol
        xpad_ref[:, W + 1:W + 2, :] = zcol
        xpad_ref[2:H + 2, 1:W + 1, :] = x_ref[0].astype(cdt)

    # ---- conv1 + folded BN1 + ReLU over TH+2 "mid" rows (1-row halo) ----
    # im2col: write 9 shifted slices straight into the lane-aligned patch
    # scratch; the sublane (W) shift is loaded once per kx and reused for the
    # three ky taps (ky shifts along H are cheap).
    M1 = (TH + 2) * W
    xs = xpad_ref[pl.ds(r0, TH + 4)]                 # (TH+4, W+2, Cp)
    for kx in range(3):
        xs_kx = xs[:, kx:kx + W, :]                  # one W-shift per kx
        for ky in range(3):
            c0 = (ky * 3 + kx) * Cp
            patch_ref[0:M1, c0:c0 + Cp] = xs_kx[ky:ky + TH + 2].reshape(M1, Cp)

    a1 = jnp.dot(patch_ref[0:M1, :], w1_ref[...],
                 preferred_element_type=jnp.float32)
    a1 = jnp.maximum(a1 + b1_ref[...], 0.0)
    midpad_ref[:, 1:W + 1, :] = a1.reshape(TH + 2, W, Cp).astype(cdt)

    # Thin halo of the conv1 strip must read as zero for conv2's padding.
    zc = jnp.zeros((TH + 2, 1, Cp), cdt)
    midpad_ref[:, 0:1, :] = zc
    midpad_ref[:, W + 1:W + 2, :] = zc

    @pl.when(s == 0)
    def _():  # mid row -1 is conv2's zero padding at the top of the image
        midpad_ref[0:1] = jnp.zeros((1, W + 2, Cp), cdt)

    @pl.when(s == num_strips - 1)
    def _():  # mid row H is conv2's zero padding at the bottom of the image
        midpad_ref[TH + 1:TH + 2] = jnp.zeros((1, W + 2, Cp), cdt)

    # ---- conv2 + folded BN2 + residual add (resident x tile) + ReLU ----
    M2 = TH * W
    for kx in range(3):
        ms_kx = midpad_ref[:, kx:kx + W, :]          # (TH+2, W, Cp)
        for ky in range(3):
            c0 = (ky * 3 + kx) * Cp
            patch_ref[0:M2, c0:c0 + Cp] = ms_kx[ky:ky + TH].reshape(M2, Cp)

    a2 = jnp.dot(patch_ref[0:M2, :], w2_ref[...],
                 preferred_element_type=jnp.float32)
    a2 = a2 + b2_ref[...]
    ident = x_ref[0, pl.ds(r0, TH), :, :].astype(jnp.float32).reshape(M2, Cp)
    out = jnp.maximum(a2 + ident, 0.0)
    o_ref[0] = out.reshape(TH, W, Cp).astype(o_ref.dtype)


# ------------------------------ JAX wrappers -------------------------------

def _fold_bn(gamma, beta, mean, var, eps):
    scale = gamma / jnp.sqrt(var + eps)
    bias = beta - mean * scale
    return scale, bias


def _pack_weight(w_hwio, scale, cin_pad, cout_pad, dtype):
    """Fold BN scale into the conv weight, pad channels, reshape for im2col."""
    kh, kw, cin, cout = w_hwio.shape
    w = w_hwio * scale[None, None, None, :]          # per-output-channel BN fold
    w = jnp.pad(w, ((0, 0), (0, 0), (0, cin_pad - cin), (0, cout_pad - cout)))
    return w.reshape(kh * kw * cin_pad, cout_pad).astype(dtype)


def _const_block_spec(shape):
    """Grid-invariant input: single VMEM buffer (no dead double-buffer copy)."""
    idx = lambda b, s: (0,) * len(shape)
    try:
        return pl.BlockSpec(shape, idx, pipeline_mode=pl.Buffered(1))
    except TypeError:  # older BlockSpec signature without pipeline_mode
        return pl.BlockSpec(shape, idx)


def _vmem_limit_bytes(h, w, cp, th, itemsize):
    """Scoped-VMEM request sized from the actual working set (<=64 MiB: v7x)."""
    xpad = (h + 4) * (w + 2) * cp
    midpad = (th + 2) * (w + 2) * cp
    patch = (th + 2) * w * 9 * cp
    xblk = 2 * h * w * cp            # double-buffered input block
    oblk = 2 * th * w * cp           # double-buffered output block
    wgt = 2 * 9 * cp * cp + 4 * cp   # single-buffered weights + biases
    ws = (xpad + midpad + patch + xblk + oblk + wgt) * itemsize
    return int(min(max(2 * ws + (4 << 20), 16 << 20), 64 << 20))


def basic_block_forward(x_nchw, params, *, eps=1e-5,
                        compute_dtype=jnp.bfloat16, tile_h=None):
    """BasicBlock forward: x (B, C, H, W) -> (B, C, H, W)."""
    # TODO(synk): stride>1 / downsample path not implemented (default
    # Basicblock uses stride=1, downsample=None).
    B, C, H, W = x_nchw.shape
    Cin = params["w1"].shape[-2]
    Cout = params["w1"].shape[-1]
    assert Cin == C and Cout == C, "default BasicBlock requires in==out channels"
    Cp = _round_up(Cout, LANE)       # lane-dense channel padding
    TH = tile_h or _pick_tile_h(H)   # row-strip height (bounds patch VMEM)
    assert H % TH == 0
    S = H // TH

    # Layout plumbing (one HBM pass each way for this standalone demo).
    # TODO(synk): in a full ResNet keep activations NHWC + channel-padded in
    # compute_dtype across blocks so these transpose/pad/slice passes vanish.
    x = jnp.transpose(x_nchw, (0, 2, 3, 1))                       # NCHW -> NHWC
    x = jnp.pad(x, ((0, 0), (0, 0), (0, 0), (0, Cp - C))).astype(compute_dtype)

    s1, b1 = _fold_bn(params["bn1_gamma"], params["bn1_beta"],
                      params["bn1_mean"], params["bn1_var"], eps)
    s2, b2 = _fold_bn(params["bn2_gamma"], params["bn2_beta"],
                      params["bn2_mean"], params["bn2_var"], eps)

    w1p = _pack_weight(params["w1"], s1, Cp, Cp, compute_dtype)   # (9*Cp, Cp)
    w2p = _pack_weight(params["w2"], s2, Cp, Cp, compute_dtype)   # (9*Cp, Cp)
    b1p = jnp.pad(b1, (0, Cp - Cout)).reshape(1, Cp).astype(jnp.float32)
    b2p = jnp.pad(b2, (0, Cp - Cout)).reshape(1, Cp).astype(jnp.float32)

    itemsize = jnp.dtype(compute_dtype).itemsize
    out_padded = pl.pallas_call(
        _basic_block_kernel,
        out_shape=jax.ShapeDtypeStruct((B, H, W, Cp), compute_dtype),
        grid_spec=pltpu.PrefetchScalarGridSpec(
            num_scalar_prefetch=0,
            grid=(B, S),
            in_specs=[
                # Full image per batch; block index does not change with s, so
                # it is not re-fetched between strips of the same batch.
                pl.BlockSpec((1, H, W, Cp), lambda b, s: (b, 0, 0, 0)),
                _const_block_spec((9 * Cp, Cp)),
                _const_block_spec((1, Cp)),
                _const_block_spec((9 * Cp, Cp)),
                _const_block_spec((1, Cp)),
            ],
            out_specs=pl.BlockSpec((1, TH, W, Cp), lambda b, s: (b, s, 0, 0)),
            scratch_shapes=[
                pltpu.VMEM((H + 4, W + 2, Cp), compute_dtype),        # xpad
                pltpu.VMEM((TH + 2, W + 2, Cp), compute_dtype),       # midpad
                pltpu.VMEM(((TH + 2) * W, 9 * Cp), compute_dtype),    # im2col patch
            ],
        ),
        compiler_params=pltpu.CompilerParams(
            # Strip axis carries the per-batch xpad scratch across iterations
            # => must be "arbitrary" (sequential, in order).
            dimension_semantics=("parallel", "arbitrary"),
            vmem_limit_bytes=_vmem_limit_bytes(H, W, Cp, TH, itemsize),
        ),
    )(x, w1p, b1p, w2p, b2p)

    out = out_padded[:, :, :, :Cout].astype(x_nchw.dtype)  # drop lane padding
    return jnp.transpose(out, (0, 3, 1, 2))                # NHWC -> NCHW


# ------------------------------ Reference ----------------------------------

def _reference_forward(x_nchw, params, eps=1e-5):
    """Pure-JAX NCHW reference mirroring the PyTorch module (eval-mode BN)."""
    def conv(x, w_hwio):
        w = jnp.transpose(w_hwio, (3, 2, 0, 1))  # HWIO -> OIHW
        return jax.lax.conv_general_dilated(
            x, w, window_strides=(1, 1), padding=((1, 1), (1, 1)),
            dimension_numbers=("NCHW", "OIHW", "NCHW"),
            precision=jax.lax.Precision.HIGHEST)

    def bn(x, g, b, m, v):
        g, b, m, v = (a.reshape(1, -1, 1, 1) for a in (g, b, m, v))
        return g * (x - m) / jnp.sqrt(v + eps) + b

    out = conv(x_nchw, params["w1"])
    out = bn(out, params["bn1_gamma"], params["bn1_beta"],
             params["bn1_mean"], params["bn1_var"])
    out = jnp.maximum(out, 0.0)
    out = conv(out, params["w2"])
    out = bn(out, params["bn2_gamma"], params["bn2_beta"],
             params["bn2_mean"], params["bn2_var"])
    out = out + x_nchw
    return jnp.maximum(out, 0.0)


# -------------------------------- Main --------------------------------------

if __name__ == "__main__":
    B, C, H, W = 2, 4, 16, 16
    key = jax.random.PRNGKey(0)
    keys = jax.random.split(key, 8)

    x = jax.random.normal(keys[0], (B, C, H, W), jnp.float32)

    params = {
        # conv weights stored HWIO: (3, 3, Cin, Cout)
        "w1": 0.1 * jax.random.normal(keys[1], (3, 3, C, C), jnp.float32),
        "w2": 0.1 * jax.random.normal(keys[2], (3, 3, C, C), jnp.float32),
        # batchnorm (eval-mode running stats), deterministic but non-trivial
        "bn1_gamma": 1.0 + 0.1 * jax.random.normal(keys[3], (C,), jnp.float32),
        "bn1_beta": 0.1 * jax.random.normal(keys[4], (C,), jnp.float32),
        "bn1_mean": 0.05 * jnp.arange(C, dtype=jnp.float32),
        "bn1_var": 1.0 + 0.1 * jnp.arange(C, dtype=jnp.float32),
        "bn2_gamma": 1.0 + 0.1 * jax.random.normal(keys[5], (C,), jnp.float32),
        "bn2_beta": 0.1 * jax.random.normal(keys[6], (C,), jnp.float32),
        "bn2_mean": 0.02 * jnp.arange(C, dtype=jnp.float32),
        "bn2_var": 1.0 + 0.05 * jnp.arange(C, dtype=jnp.float32),
    }

    ref = jax.block_until_ready(_reference_forward(x, params))

    # Strict check: f32 compute path (exact up to accumulation order).
    out_f32 = jax.block_until_ready(
        jax.jit(lambda xx, pp: basic_block_forward(
            xx, pp, compute_dtype=jnp.float32))(x, params))
    assert out_f32.shape == (B, C, H, W), out_f32.shape
    err_f32 = float(jnp.max(jnp.abs(out_f32 - ref)))
    assert jnp.allclose(out_f32, ref, rtol=2e-3, atol=2e-3), err_f32

    # Fast path: bf16 MXU inputs, f32 accumulation (expected ~1e-2 rounding).
    out_bf16 = jax.block_until_ready(jax.jit(basic_block_forward)(x, params))
    assert out_bf16.shape == (B, C, H, W), out_bf16.shape
    err_bf16 = float(jnp.max(jnp.abs(out_bf16 - ref)))
    assert jnp.allclose(out_bf16, ref, rtol=7e-2, atol=7e-2), err_bf16

    print("KERNEL_OK")
</pallas_src>

<mosaic_0001>
module attributes {stable_mosaic.version = 11 : i64} {
  func.func @_basic_block_kernel(%arg0: i32, %arg1: i32, %arg2: memref<1x16x16x128xf32, #tpu.memory_space<vmem>>, %arg3: memref<1152x128xf32, #tpu.memory_space<vmem>>, %arg4: memref<1x128xf32, #tpu.memory_space<vmem>>, %arg5: memref<1152x128xf32, #tpu.memory_space<vmem>>, %arg6: memref<1x128xf32, #tpu.memory_space<vmem>>, %arg7: memref<1x8x16x128xf32, #tpu.memory_space<vmem>>, %arg8: memref<20x18x128xf32, #tpu.memory_space<vmem>>, %arg9: memref<10x18x128xf32, #tpu.memory_space<vmem>>, %arg10: memref<160x1152xf32, #tpu.memory_space<vmem>>) attributes {dimension_semantics = [#tpu.dimension_semantics<parallel>, #tpu.dimension_semantics<arbitrary>], iteration_bounds = array<i64: 2, 2>, scalar_prefetch = 0 : i64, scratch_operands = 3 : i64, tpu.core_type = #tpu.core_type<tc>, window_params = [{transform_indices = @transform_0, window_bounds = array<i64: 1, 16, 16, 128>}, {pipeline_mode = #tpu.pipeline_mode<synchronous>, transform_indices = @transform_1, window_bounds = array<i64: 1152, 128>}, {pipeline_mode = #tpu.pipeline_mode<synchronous>, transform_indices = @transform_2, window_bounds = array<i64: 1, 128>}, {pipeline_mode = #tpu.pipeline_mode<synchronous>, transform_indices = @transform_3, window_bounds = array<i64: 1152, 128>}, {pipeline_mode = #tpu.pipeline_mode<synchronous>, transform_indices = @transform_4, window_bounds = array<i64: 1, 128>}, {transform_indices = @transform_5, window_bounds = array<i64: 1, 8, 16, 128>}]} {
    %c8_i32 = arith.constant 8 : i32
    %0 = arith.muli %arg1, %c8_i32 : i32
    %1 = tpu.assume_multiple %0, 8 : i32
    %c0_i32 = arith.constant 0 : i32
    %2 = arith.cmpi eq, %arg1, %c0_i32 : i32
    %3 = arith.extui %2 : i1 to i32
    %c0_i32_0 = arith.constant 0 : i32
    %4 = arith.cmpi ne, %3, %c0_i32_0 : i32
    scf.if %4 {
      %cst_71 = arith.constant 0.000000e+00 : f32
      %103 = vector.broadcast %cst_71 : f32 to vector<2x18x128xf32>
      %c0_72 = arith.constant 0 : index
      %c0_73 = arith.constant 0 : index
      %c0_74 = arith.constant 0 : index
      %104 = vector.load %arg8[%c0_72, %c0_73, %c0_74] : memref<20x18x128xf32, #tpu.memory_space<vmem>>, vector<2x18x128xf32>
      tpu.vector_store %arg8[%c0_72, %c0_73, %c0_74], %103 {strides = array<i32>} : memref<20x18x128xf32, #tpu.memory_space<vmem>>, vector<2x18x128xf32>,
      %c18 = arith.constant 18 : index
      %c0_75 = arith.constant 0 : index
      %c0_76 = arith.constant 0 : index
      %105 = vector.load %arg8[%c18, %c0_75, %c0_76] : memref<20x18x128xf32, #tpu.memory_space<vmem>>, vector<2x18x128xf32>
      tpu.vector_store %arg8[%c18, %c0_75, %c0_76], %103 {strides = array<i32>} : memref<20x18x128xf32, #tpu.memory_space<vmem>>, vector<2x18x128xf32>,
      %cst_77 = arith.constant 0.000000e+00 : f32
      %106 = vector.broadcast %cst_77 : f32 to vector<20x1x128xf32>
      %c0_78 = arith.constant 0 : index
      %c0_79 = arith.constant 0 : index
      %c0_80 = arith.constant 0 : index
      %107 = vector.load %arg8[%c0_78, %c0_79, %c0_80] : memref<20x18x128xf32, #tpu.memory_space<vmem>>, vector<20x1x128xf32>
      tpu.vector_store %arg8[%c0_78, %c0_79, %c0_80], %106 {strides = array<i32>} : memref<20x18x128xf32, #tpu.memory_space<vmem>>, vector<20x1x128xf32>,
      %c0_81 = arith.constant 0 : index
      %c17_82 = arith.constant 17 : index
      %c0_83 = arith.constant 0 : index
      %108 = vector.load %arg8[%c0_81, %c17_82, %c0_83] : memref<20x18x128xf32, #tpu.memory_space<vmem>>, vector<20x1x128xf32>
      tpu.vector_store %arg8[%c0_81, %c17_82, %c0_83], %106 {strides = array<i32>} : memref<20x18x128xf32, #tpu.memory_space<vmem>>, vector<20x1x128xf32>,
      %c0_84 = arith.constant 0 : index
      %c0_85 = arith.constant 0 : index
      %c0_86 = arith.constant 0 : index
      %c0_87 = arith.constant 0 : index
      %109 = vector.load %arg2[%c0_84, %c0_85, %c0_86, %c0_87] : memref<1x16x16x128xf32, #tpu.memory_space<vmem>>, vector<1x16x16x128xf32>
      %110 = vector.shape_cast %109 : vector<1x16x16x128xf32> to vector<16x16x128xf32>
      %c2_88 = arith.constant 2 : index
      %c1_89 = arith.constant 1 : index
      %c0_90 = arith.constant 0 : index
      %111 = vector.load %arg8[%c2_88, %c1_89, %c0_90] : memref<20x18x128xf32, #tpu.memory_space<vmem>>, vector<16x16x128xf32>
      tpu.vector_store %arg8[%c2_88, %c1_89, %c0_90], %110 {strides = array<i32>} : memref<20x18x128xf32, #tpu.memory_space<vmem>>, vector<16x16x128xf32>,
    } else {
    }
    %5 = arith.index_cast %1 : i32 to index
    %c0 = arith.constant 0 : index
    %c0_1 = arith.constant 0 : index
    %6 = vector.load %arg8[%5, %c0, %c0_1] : memref<20x18x128xf32, #tpu.memory_space<vmem>>, vector<12x18x128xf32>
    %7 = vector.extract_strided_slice %6 {offsets = [0, 0, 0], sizes = [12, 16, 128], strides = [1, 1, 1]} : vector<12x18x128xf32> to vector<12x16x128xf32>
    %8 = vector.extract_strided_slice %7 {offsets = [0, 0, 0], sizes = [10, 16, 128], strides = [1, 1, 1]} : vector<12x16x128xf32> to vector<10x16x128xf32>
    %9 = vector.shape_cast %8 : vector<10x16x128xf32> to vector<160x128xf32>
    %c0_2 = arith.constant 0 : index
    %c0_3 = arith.constant 0 : index
    %10 = vector.load %arg10[%c0_2, %c0_3] : memref<160x1152xf32, #tpu.memory_space<vmem>>, vector<160x128xf32>
    tpu.vector_store %arg10[%c0_2, %c0_3], %9 {strides = array<i32>} : memref<160x1152xf32, #tpu.memory_space<vmem>>, vector<160x128xf32>,
    %11 = vector.extract_strided_slice %7 {offsets = [1, 0, 0], sizes = [10, 16, 128], strides = [1, 1, 1]} : vector<12x16x128xf32> to vector<10x16x128xf32>
    %12 = vector.shape_cast %11 : vector<10x16x128xf32> to vector<160x128xf32>
    %c0_4 = arith.constant 0 : index
    %c384 = arith.constant 384 : index
    %13 = vector.load %arg10[%c0_4, %c384] : memref<160x1152xf32, #tpu.memory_space<vmem>>, vector<160x128xf32>
    tpu.vector_store %arg10[%c0_4, %c384], %12 {strides = array<i32>} : memref<160x1152xf32, #tpu.memory_space<vmem>>, vector<160x128xf32>,
    %14 = vector.extract_strided_slice %7 {offsets = [2, 0, 0], sizes = [10, 16, 128], strides = [1, 1, 1]} : vector<12x16x128xf32> to vector<10x16x128xf32>
    %15 = vector.shape_cast %14 : vector<10x16x128xf32> to vector<160x128xf32>
    %c0_5 = arith.constant 0 : index
    %c768 = arith.constant 768 : index
    %16 = vector.load %arg10[%c0_5, %c768] : memref<160x1152xf32, #tpu.memory_space<vmem>>, vector<160x128xf32>
    tpu.vector_store %arg10[%c0_5, %c768], %15 {strides = array<i32>} : memref<160x1152xf32, #tpu.memory_space<vmem>>, vector<160x128xf32>,
    %17 = vector.extract_strided_slice %6 {offsets = [0, 1, 0], sizes = [12, 16, 128], strides = [1, 1, 1]} : vector<12x18x128xf32> to vector<12x16x128xf32>
    %18 = vector.extract_strided_slice %17 {offsets = [0, 0, 0], sizes = [10, 16, 128], strides = [1, 1, 1]} : vector<12x16x128xf32> to vector<10x16x128xf32>
    %19 = vector.shape_cast %18 : vector<10x16x128xf32> to vector<160x128xf32>
    %c0_6 = arith.constant 0 : index
    %c128 = arith.constant 128 : index
    %20 = vector.load %arg10[%c0_6, %c128] : memref<160x1152xf32, #tpu.memory_space<vmem>>, vector<160x128xf32>
    tpu.vector_store %arg10[%c0_6, %c128], %19 {strides = array<i32>} : memref<160x1152xf32, #tpu.memory_space<vmem>>, vector<160x128xf32>,
    %21 = vector.extract_strided_slice %17 {offsets = [1, 0, 0], sizes = [10, 16, 128], strides = [1, 1, 1]} : vector<12x16x128xf32> to vector<10x16x128xf32>
    %22 = vector.shape_cast %21 : vector<10x16x128xf32> to vector<160x128xf32>
    %c0_7 = arith.constant 0 : index
    %c512 = arith.constant 512 : index
    %23 = vector.load %arg10[%c0_7, %c512] : memref<160x1152xf32, #tpu.memory_space<vmem>>, vector<160x128xf32>
    tpu.vector_store %arg10[%c0_7, %c512], %22 {strides = array<i32>} : memref<160x1152xf32, #tpu.memory_space<vmem>>, vector<160x128xf32>,
    %24 = vector.extract_strided_slice %17 {offsets = [2, 0, 0], sizes = [10, 16, 128], strides = [1, 1, 1]} : vector<12x16x128xf32> to vector<10x16x128xf32>
    %25 = vector.shape_cast %24 : vector<10x16x128xf32> to vector<160x128xf32>
    %c0_8 = arith.constant 0 : index
    %c896 = arith.constant 896 : index
    %26 = vector.load %arg10[%c0_8, %c896] : memref<160x1152xf32, #tpu.memory_space<vmem>>, vector<160x128xf32>
    tpu.vector_store %arg10[%c0_8, %c896], %25 {strides = array<i32>} : memref<160x1152xf32, #tpu.memory_space<vmem>>, vector<160x128xf32>,
    %27 = vector.extract_strided_slice %6 {offsets = [0, 2, 0], sizes = [12, 16, 128], strides = [1, 1, 1]} : vector<12x18x128xf32> to vector<12x16x128xf32>
    %28 = vector.extract_strided_slice %27 {offsets = [0, 0, 0], sizes = [10, 16, 128], strides = [1, 1, 1]} : vector<12x16x128xf32> to vector<10x16x128xf32>
    %29 = vector.shape_cast %28 : vector<10x16x128xf32> to vector<160x128xf32>
    %c0_9 = arith.constant 0 : index
    %c256 = arith.constant 256 : index
    %30 = vector.load %arg10[%c0_9, %c256] : memref<160x1152xf32, #tpu.memory_space<vmem>>, vector<160x128xf32>
    tpu.vector_store %arg10[%c0_9, %c256], %29 {strides = array<i32>} : memref<160x1152xf32, #tpu.memory_space<vmem>>, vector<160x128xf32>,
    %31 = vector.extract_strided_slice %27 {offsets = [1, 0, 0], sizes = [10, 16, 128], strides = [1, 1, 1]} : vector<12x16x128xf32> to vector<10x16x128xf32>
    %32 = vector.shape_cast %31 : vector<10x16x128xf32> to vector<160x128xf32>
    %c0_10 = arith.constant 0 : index
    %c640 = arith.constant 640 : index
    %33 = vector.load %arg10[%c0_10, %c640] : memref<160x1152xf32, #tpu.memory_space<vmem>>, vector<160x128xf32>
    tpu.vector_store %arg10[%c0_10, %c640], %32 {strides = array<i32>} : memref<160x1152xf32, #tpu.memory_space<vmem>>, vector<160x128xf32>,
    %34 = vector.extract_strided_slice %27 {offsets = [2, 0, 0], sizes = [10, 16, 128], strides = [1, 1, 1]} : vector<12x16x128xf32> to vector<10x16x128xf32>
    %35 = vector.shape_cast %34 : vector<10x16x128xf32> to vector<160x128xf32>
    %c0_11 = arith.constant 0 : index
    %c1024 = arith.constant 1024 : index
    %36 = vector.load %arg10[%c0_11, %c1024] : memref<160x1152xf32, #tpu.memory_space<vmem>>, vector<160x128xf32>
    tpu.vector_store %arg10[%c0_11, %c1024], %35 {strides = array<i32>} : memref<160x1152xf32, #tpu.memory_space<vmem>>, vector<160x128xf32>,
    %c0_12 = arith.constant 0 : index
    %c0_13 = arith.constant 0 : index
    %37 = vector.load %arg10[%c0_12, %c0_13] : memref<160x1152xf32, #tpu.memory_space<vmem>>, vector<160x1152xf32>
    %c0_14 = arith.constant 0 : index
    %c0_15 = arith.constant 0 : index
    %38 = vector.load %arg3[%c0_14, %c0_15] : memref<1152x128xf32, #tpu.memory_space<vmem>>, vector<1152x128xf32>
    %cst = arith.constant dense<0.000000e+00> : vector<160x128xf32>
    %39 = tpu.matmul %37, %38, %cst {dimension_numbers = #tpu.dot_dimension_numbers<[1], [0], [0], [1], [0, 0, 1, 1], [], []>} : vector<160x1152xf32>, vector<1152x128xf32>, vector<160x128xf32> -> vector<160x128xf32>
    %c0_16 = arith.constant 0 : index
    %c0_17 = arith.constant 0 : index
    %40 = vector.load %arg4[%c0_16, %c0_17] : memref<1x128xf32, #tpu.memory_space<vmem>>, vector<1x128xf32>
    %41 = vector.broadcast %40 : vector<1x128xf32> to vector<160x128xf32>
    %42 = arith.addf %39, %41 : vector<160x128xf32>
    %cst_18 = arith.constant 0.000000e+00 : f32
    %43 = vector.broadcast %cst_18 : f32 to vector<160x128xf32>
    %44 = arith.maximumf %42, %43 : vector<160x128xf32>
    %45 = vector.shape_cast %44 : vector<160x128xf32> to vector<10x16x128xf32>
    %c0_19 = arith.constant 0 : index
    %c1 = arith.constant 1 : index
    %c0_20 = arith.constant 0 : index
    %46 = vector.load %arg9[%c0_19, %c1, %c0_20] : memref<10x18x128xf32, #tpu.memory_space<vmem>>, vector<10x16x128xf32>
    tpu.vector_store %arg9[%c0_19, %c1, %c0_20], %45 {strides = array<i32>} : memref<10x18x128xf32, #tpu.memory_space<vmem>>, vector<10x16x128xf32>,
    %cst_21 = arith.constant 0.000000e+00 : f32
    %47 = vector.broadcast %cst_21 : f32 to vector<10x1x128xf32>
    %c0_22 = arith.constant 0 : index
    %c0_23 = arith.constant 0 : index
    %c0_24 = arith.constant 0 : index
    %48 = vector.load %arg9[%c0_22, %c0_23, %c0_24] : memref<10x18x128xf32, #tpu.memory_space<vmem>>, vector<10x1x128xf32>
    tpu.vector_store %arg9[%c0_22, %c0_23, %c0_24], %47 {strides = array<i32>} : memref<10x18x128xf32, #tpu.memory_space<vmem>>, vector<10x1x128xf32>,
    %c0_25 = arith.constant 0 : index
    %c17 = arith.constant 17 : index
    %c0_26 = arith.constant 0 : index
    %49 = vector.load %arg9[%c0_25, %c17, %c0_26] : memref<10x18x128xf32, #tpu.memory_space<vmem>>, vector<10x1x128xf32>
    tpu.vector_store %arg9[%c0_25, %c17, %c0_26], %47 {strides = array<i32>} : memref<10x18x128xf32, #tpu.memory_space<vmem>>, vector<10x1x128xf32>,
    %c0_i32_27 = arith.constant 0 : i32
    %50 = arith.cmpi eq, %arg1, %c0_i32_27 : i32
    %51 = arith.extui %50 : i1 to i32
    %c0_i32_28 = arith.constant 0 : i32
    %52 = arith.cmpi ne, %51, %c0_i32_28 : i32
    scf.if %52 {
      %cst_71 = arith.constant 0.000000e+00 : f32
      %103 = vector.broadcast %cst_71 : f32 to vector<1x18x128xf32>
      %c0_72 = arith.constant 0 : index
      %c0_73 = arith.constant 0 : index
      %c0_74 = arith.constant 0 : index
      %104 = vector.load %arg9[%c0_72, %c0_73, %c0_74] : memref<10x18x128xf32, #tpu.memory_space<vmem>>, vector<1x18x128xf32>
      tpu.vector_store %arg9[%c0_72, %c0_73, %c0_74], %103 {strides = array<i32>} : memref<10x18x128xf32, #tpu.memory_space<vmem>>, vector<1x18x128xf32>,
    } else {
    }
    %c1_i32 = arith.constant 1 : i32
    %53 = arith.cmpi eq, %arg1, %c1_i32 : i32
    %54 = arith.extui %53 : i1 to i32
    %c0_i32_29 = arith.constant 0 : i32
    %55 = arith.cmpi ne, %54, %c0_i32_29 : i32
    scf.if %55 {
      %cst_71 = arith.constant 0.000000e+00 : f32
      %103 = vector.broadcast %cst_71 : f32 to vector<1x18x128xf32>
      %c9 = arith.constant 9 : index
      %c0_72 = arith.constant 0 : index
      %c0_73 = arith.constant 0 : index
      %104 = vector.load %arg9[%c9, %c0_72, %c0_73] : memref<10x18x128xf32, #tpu.memory_space<vmem>>, vector<1x18x128xf32>
      tpu.vector_store %arg9[%c9, %c0_72, %c0_73], %103 {strides = array<i32>} : memref<10x18x128xf32, #tpu.memory_space<vmem>>, vector<1x18x128xf32>,
    } else {
    }
    %c0_30 = arith.constant 0 : index
    %c0_31 = arith.constant 0 : index
    %c0_32 = arith.constant 0 : index
    %56 = vector.load %arg9[%c0_30, %c0_31, %c0_32] : memref<10x18x128xf32, #tpu.memory_space<vmem>>, vector<10x16x128xf32>
    %57 = vector.extract_strided_slice %56 {offsets = [0, 0, 0], sizes = [8, 16, 128], strides = [1, 1, 1]} : vector<10x16x128xf32> to vector<8x16x128xf32>
    %58 = vector.shape_cast %57 : vector<8x16x128xf32> to vector<128x128xf32>
    %c0_33 = arith.constant 0 : index
    %c0_34 = arith.constant 0 : index
    %59 = vector.load %arg10[%c0_33, %c0_34] : memref<160x1152xf32, #tpu.memory_space<vmem>>, vector<128x128xf32>
    tpu.vector_store %arg10[%c0_33, %c0_34], %58 {strides = array<i32>} : memref<160x1152xf32, #tpu.memory_space<vmem>>, vector<128x128xf32>,
    %60 = vector.extract_strided_slice %56 {offsets = [1, 0, 0], sizes = [8, 16, 128], strides = [1, 1, 1]} : vector<10x16x128xf32> to vector<8x16x128xf32>
    %61 = vector.shape_cast %60 : vector<8x16x128xf32> to vector<128x128xf32>
    %c0_35 = arith.constant 0 : index
    %c384_36 = arith.constant 384 : index
    %62 = vector.load %arg10[%c0_35, %c384_36] : memref<160x1152xf32, #tpu.memory_space<vmem>>, vector<128x128xf32>
    tpu.vector_store %arg10[%c0_35, %c384_36], %61 {strides = array<i32>} : memref<160x1152xf32, #tpu.memory_space<vmem>>, vector<128x128xf32>,
    %63 = vector.extract_strided_slice %56 {offsets = [2, 0, 0], sizes = [8, 16, 128], strides = [1, 1, 1]} : vector<10x16x128xf32> to vector<8x16x128xf32>
    %64 = vector.shape_cast %63 : vector<8x16x128xf32> to vector<128x128xf32>
    %c0_37 = arith.constant 0 : index
    %c768_38 = arith.constant 768 : index
    %65 = vector.load %arg10[%c0_37, %c768_38] : memref<160x1152xf32, #tpu.memory_space<vmem>>, vector<128x128xf32>
    tpu.vector_store %arg10[%c0_37, %c768_38], %64 {strides = array<i32>} : memref<160x1152xf32, #tpu.memory_space<vmem>>, vector<128x128xf32>,
    %c0_39 = arith.constant 0 : index
    %c1_40 = arith.constant 1 : index
    %c0_41 = arith.constant 0 : index
    %66 = vector.load %arg9[%c0_39, %c1_40, %c0_41] : memref<10x18x128xf32, #tpu.memory_space<vmem>>, vector<10x16x128xf32>
    %67 = vector.extract_strided_slice %66 {offsets = [0, 0, 0], sizes = [8, 16, 128], strides = [1, 1, 1]} : vector<10x16x128xf32> to vector<8x16x128xf32>
    %68 = vector.shape_cast %67 : vector<8x16x128xf32> to vector<128x128xf32>
    %c0_42 = arith.constant 0 : index
    %c128_43 = arith.constant 128 : index
    %69 = vector.load %arg10[%c0_42, %c128_43] : memref<160x1152xf32, #tpu.memory_space<vmem>>, vector<128x128xf32>
    tpu.vector_store %arg10[%c0_42, %c128_43], %68 {strides = array<i32>} : memref<160x1152xf32, #tpu.memory_space<vmem>>, vector<128x128xf32>,
    %70 = vector.extract_strided_slice %66 {offsets = [1, 0, 0], sizes = [8, 16, 128], strides = [1, 1, 1]} : vector<10x16x128xf32> to vector<8x16x128xf32>
    %71 = vector.shape_cast %70 : vector<8x16x128xf32> to vector<128x128xf32>
    %c0_44 = arith.constant 0 : index
    %c512_45 = arith.constant 512 : index
    %72 = vector.load %arg10[%c0_44, %c512_45] : memref<160x1152xf32, #tpu.memory_space<vmem>>, vector<128x128xf32>
    tpu.vector_store %arg10[%c0_44, %c512_45], %71 {strides = array<i32>} : memref<160x1152xf32, #tpu.memory_space<vmem>>, vector<128x128xf32>,
    %73 = vector.extract_strided_slice %66 {offsets = [2, 0, 0], sizes = [8, 16, 128], strides = [1, 1, 1]} : vector<10x16x128xf32> to vector<8x16x128xf32>
    %74 = vector.shape_cast %73 : vector<8x16x128xf32> to vector<128x128xf32>
    %c0_46 = arith.constant 0 : index
    %c896_47 = arith.constant 896 : index
    %75 = vector.load %arg10[%c0_46, %c896_47] : memref<160x1152xf32, #tpu.memory_space<vmem>>, vector<128x128xf32>
    tpu.vector_store %arg10[%c0_46, %c896_47], %74 {strides = array<i32>} : memref<160x1152xf32, #tpu.memory_space<vmem>>, vector<128x128xf32>,
    %c0_48 = arith.constant 0 : index
    %c2 = arith.constant 2 : index
    %c0_49 = arith.constant 0 : index
    %76 = vector.load %arg9[%c0_48, %c2, %c0_49] : memref<10x18x128xf32, #tpu.memory_space<vmem>>, vector<10x16x128xf32>
    %77 = vector.extract_strided_slice %76 {offsets = [0, 0, 0], sizes = [8, 16, 128], strides = [1, 1, 1]} : vector<10x16x128xf32> to vector<8x16x128xf32>
    %78 = vector.shape_cast %77 : vector<8x16x128xf32> to vector<128x128xf32>
    %c0_50 = arith.constant 0 : index
    %c256_51 = arith.constant 256 : index
    %79 = vector.load %arg10[%c0_50, %c256_51] : memref<160x1152xf32, #tpu.memory_space<vmem>>, vector<128x128xf32>
    tpu.vector_store %arg10[%c0_50, %c256_51], %78 {strides = array<i32>} : memref<160x1152xf32, #tpu.memory_space<vmem>>, vector<128x128xf32>,
    %80 = vector.extract_strided_slice %76 {offsets = [1, 0, 0], sizes = [8, 16, 128], strides = [1, 1, 1]} : vector<10x16x128xf32> to vector<8x16x128xf32>
    %81 = vector.shape_cast %80 : vector<8x16x128xf32> to vector<128x128xf32>
    %c0_52 = arith.constant 0 : index
    %c640_53 = arith.constant 640 : index
    %82 = vector.load %arg10[%c0_52, %c640_53] : memref<160x1152xf32, #tpu.memory_space<vmem>>, vector<128x128xf32>
    tpu.vector_store %arg10[%c0_52, %c640_53], %81 {strides = array<i32>} : memref<160x1152xf32, #tpu.memory_space<vmem>>, vector<128x128xf32>,
    %83 = vector.extract_strided_slice %76 {offsets = [2, 0, 0], sizes = [8, 16, 128], strides = [1, 1, 1]} : vector<10x16x128xf32> to vector<8x16x128xf32>
    %84 = vector.shape_cast %83 : vector<8x16x128xf32> to vector<128x128xf32>
    %c0_54 = arith.constant 0 : index
    %c1024_55 = arith.constant 1024 : index
    %85 = vector.load %arg10[%c0_54, %c1024_55] : memref<160x1152xf32, #tpu.memory_space<vmem>>, vector<128x128xf32>
    tpu.vector_store %arg10[%c0_54, %c1024_55], %84 {strides = array<i32>} : memref<160x1152xf32, #tpu.memory_space<vmem>>, vector<128x128xf32>,
    %c0_56 = arith.constant 0 : index
    %c0_57 = arith.constant 0 : index
    %86 = vector.load %arg10[%c0_56, %c0_57] : memref<160x1152xf32, #tpu.memory_space<vmem>>, vector<128x1152xf32>
    %c0_58 = arith.constant 0 : index
    %c0_59 = arith.constant 0 : index
    %87 = vector.load %arg5[%c0_58, %c0_59] : memref<1152x128xf32, #tpu.memory_space<vmem>>, vector<1152x128xf32>
    %cst_60 = arith.constant dense<0.000000e+00> : vector<128x128xf32>
    %88 = tpu.matmul %86, %87, %cst_60 {dimension_numbers = #tpu.dot_dimension_numbers<[1], [0], [0], [1], [0, 0, 1, 1], [], []>} : vector<128x1152xf32>, vector<1152x128xf32>, vector<128x128xf32> -> vector<128x128xf32>
    %c0_61 = arith.constant 0 : index
    %c0_62 = arith.constant 0 : index
    %89 = vector.load %arg6[%c0_61, %c0_62] : memref<1x128xf32, #tpu.memory_space<vmem>>, vector<1x128xf32>
    %90 = vector.broadcast %89 : vector<1x128xf32> to vector<128x128xf32>
    %91 = arith.addf %88, %90 : vector<128x128xf32>
    %c0_63 = arith.constant 0 : index
    %92 = arith.index_cast %1 : i32 to index
    %c0_64 = arith.constant 0 : index
    %c0_65 = arith.constant 0 : index
    %93 = vector.load %arg2[%c0_63, %92, %c0_64, %c0_65] : memref<1x16x16x128xf32, #tpu.memory_space<vmem>>, vector<1x8x16x128xf32>
    %94 = vector.shape_cast %93 : vector<1x8x16x128xf32> to vector<8x16x128xf32>
    %95 = vector.shape_cast %94 : vector<8x16x128xf32> to vector<128x128xf32>
    %96 = arith.addf %91, %95 : vector<128x128xf32>
    %cst_66 = arith.constant 0.000000e+00 : f32
    %97 = vector.broadcast %cst_66 : f32 to vector<128x128xf32>
    %98 = arith.maximumf %96, %97 : vector<128x128xf32>
    %99 = vector.shape_cast %98 : vector<128x128xf32> to vector<8x16x128xf32>
    %c0_67 = arith.constant 0 : index
    %c0_68 = arith.constant 0 : index
    %c0_69 = arith.constant 0 : index
    %c0_70 = arith.constant 0 : index
    %100 = vector.load %arg7[%c0_67, %c0_68, %c0_69, %c0_70] : memref<1x8x16x128xf32, #tpu.memory_space<vmem>>, vector<1x8x16x128xf32>
    %101 = vector.shape_cast %100 : vector<1x8x16x128xf32> to vector<8x16x128xf32>
    %102 = vector.shape_cast %99 : vector<8x16x128xf32> to vector<1x8x16x128xf32>
    tpu.vector_store %arg7[%c0_67, %c0_68, %c0_69, %c0_70], %102 {strides = array<i32>} : memref<1x8x16x128xf32, #tpu.memory_space<vmem>>, vector<1x8x16x128xf32>,
    return
  }
  func.func @transform_0(%arg0: i32, %arg1: i32) -> (i32, i32, i32, i32) {
    %c0_i32 = arith.constant 0 : i32
    %c0_i32_0 = arith.constant 0 : i32
    %c0_i32_1 = arith.constant 0 : i32
    %c0_i32_2 = arith.constant 0 : i32
    return %arg0, %c0_i32, %c0_i32_0, %c0_i32_1 : i32, i32, i32, i32
  }
  func.func @transform_1(%arg0: i32, %arg1: i32) -> (i32, i32) {
    %c0_i32 = arith.constant 0 : i32
    %c0_i32_0 = arith.constant 0 : i32
    %c0_i32_1 = arith.constant 0 : i32
    return %c0_i32, %c0_i32_0 : i32, i32
  }
  func.func @transform_2(%arg0: i32, %arg1: i32) -> (i32, i32) {
    %c0_i32 = arith.constant 0 : i32
    %c0_i32_0 = arith.constant 0 : i32
    %c0_i32_1 = arith.constant 0 : i32
    return %c0_i32, %c0_i32_0 : i32, i32
  }
  func.func @transform_3(%arg0: i32, %arg1: i32) -> (i32, i32) {
    %c0_i32 = arith.constant 0 : i32
    %c0_i32_0 = arith.constant 0 : i32
    %c0_i32_1 = arith.constant 0 : i32
    return %c0_i32, %c0_i32_0 : i32, i32
  }
  func.func @transform_4(%arg0: i32, %arg1: i32) -> (i32, i32) {
    %c0_i32 = arith.constant 0 : i32
    %c0_i32_0 = arith.constant 0 : i32
    %c0_i32_1 = arith.constant 0 : i32
    return %c0_i32, %c0_i32_0 : i32, i32
  }
  func.func @transform_5(%arg0: i32, %arg1: i32) -> (i32, i32, i32, i32) {
    %c0_i32 = arith.constant 0 : i32
    %c0_i32_0 = arith.constant 0 : i32
    %c0_i32_1 = arith.constant 0 : i32
    return %arg0, %arg1, %c0_i32, %c0_i32_0 : i32, i32, i32, i32
  }
}

</mosaic_0001>

<bundles_post_ra>
// kernel: _lambda_.1
= control target key start
LH: loop header
LB: loop body
LE: loop exit
PB: predicated region body
PF: predicated region fallthrough
CT: control target
= control target key end

     0   :  { %s3322_s18 = smov 0   ;;  %s3324_s19 = smov 0   ;;  %s5562_s0 = inlined_call_operand.vmem [shape: f32[2,16,16,128], index: 0, kind: input, shape index: {}]   ;;  %s5563_s1 = inlined_call_operand.vmem [shape: f32[1152,128], index: 1, kind: input, shape index: {}]   ;;  %s5564_s2 = inlined_call_operand.vmem [shape: f32[1,128], index: 2, kind: input, shape index: {}]   ;;  %s5565_s3 = inlined_call_operand.vmem [shape: f32[1152,128], index: 3, kind: input, shape index: {}]   ;;  %s5566_s4 = inlined_call_operand.vmem [shape: f32[1,128], index: 4, kind: input, shape index: {}]   ;;  %s5567_s5 = inlined_call_operand.vmem [shape: f32[2,16,16,128], index: 5, kind: output, shape index: {}]  }
   0x1   :  { %s3326_s20 = smov 0   ;;  %s3328_s21 = smov 0  }
   0x2   :  { %s3330_s22 = smov 0  }
   0x3 LB: > { %s24_s23 = sadd.s32 1, %s3278_s20  ;;  %s27_s24 = sadd.s32 1, %s3282_s21  ;;  %s3286_s22 = sphi %s3330_s22, %s15_s22   ;;  %s3282_s21 = sphi %s3328_s21, %s5645_s21   ;;  %s3278_s20 = sphi %s3326_s20, %s5644_s20   ;;  %s3274_s19 = sphi %s3324_s19, %s5643_s19   ;;  %s3270_s18 = sphi %s3322_s18, %s5642_s18  }
   0x4   : > { %p25_p0 = scmp.ge.s32.totalorder %s24_s23, 2  ;;  %p3137_p1 = scmp.ge.s32.totalorder %s3286_s22, 1 }
   0x5   : > { %p201_p2 = scmp.lt.s32.totalorder %s3286_s22, 5 }
   0x6   : > { %s5647_s23 = smov (%p25_p0, %s24_s23), 0  ;;  %s5649_s24 = smov (!%p25_p0, %s27_s24), %s3282_s21 }
   0x7   : > { %p202_p3 = pnand %p3137_p1, %p201_p2  ;;  %p29_p4 = scmp.ge.s32.totalorder %s5649_s24, 2 }
   0x9   : > { %s5651_s24 = smov (%p29_p4, %s5649_s24), 0  ;;  %205 = sbr.rel (%p202_p3) target bundleno = 1363 (0x553), region = 40 }
   0xe   : > { %p234_p5 = scmp.lt.s32.totalorder %s3274_s19, 1  ;;  %s3140_s25 = sshll.u32 %s3270_s18, 3 }
   0xf   : > { %p242_p6 = scmp.lt.s32.totalorder %s3140_s25, 15  ;;  %p3145_p7 = scmp.ne.s32.totalorder %s3270_s18, 0 }
  0x10   : > { %s5653_s19 = smov (!%p234_p5, %s3274_s19), 1 }
  0x11   : > { %s5655_s25 = smov (!%p242_p6, %s3140_s25), 15  ;;  %s3152_s26 = sshll.u32 %s5653_s19, 8 }
  0x12   : > { %s3142_s27 = sshll.u32 %s5653_s19, 5  ;;  %s3358_s30 = scalar_lea.vmem %s5562_s0, %s3152_s26 }
  0x13   : > { %s3141_s6 = sshll.u32 %s5655_s25, 1  ;;  %254 = sbr.rel (%p3145_p7) target bundleno = 109 (0x6d), region = 44 }
  0x14   : > { %s246_s7 = sadd.s32 %s3142_s27, %s3141_s6 }
  0x15   : > { %s3143_s8 = sshll.u32 %s246_s7, 3 }
  0x16   : > { %s3363_s11 = scalar_lea.vmem %s5567_s5, %s3143_s8 }
  0x18   : > { %v3288_v0 = vmov 0.0   ;;  %v308_v1 = vld [vmem:[%s3358_s30] sm:$0xff]  ;;  %v309_v2 = vld [vmem:[%s3358_s30 + $0x8] sm:$0xff]  ;;  %v310_v3 = vld [vmem:[%s3358_s30 + $0x10] sm:$0xff] }
  0x19   : > { %255 = vst [vmem:[#allocation2] sm:$0xff] %v3288_v0  ;;  %v311_v4 = vld [vmem:[%s3358_s30 + $0x18] sm:$0xff]  ;;  %v312_v5 = vld [vmem:[%s3358_s30 + $0x20] sm:$0xff]  ;;  %v313_v6 = vld [vmem:[%s3358_s30 + $0x28] sm:$0xff] }
  0x1a   : > { %256 = vst [vmem:[#allocation2 + $0x8] sm:$0xff] %v3288_v0  ;;  %v314_v7 = vld [vmem:[%s3358_s30 + $0x30] sm:$0xff]  ;;  %v315_v8 = vld [vmem:[%s3358_s30 + $0x38] sm:$0xff]  ;;  %v316_v9 = vld [vmem:[%s3358_s30 + $0x40] sm:$0xff] }
  0x1b   : > { %257 = vst [vmem:[#allocation2 + $0x10] sm:$0x3] %v3288_v0  ;;  %v317_v10 = vld [vmem:[%s3358_s30 + $0x48] sm:$0xff]  ;;  %v318_v11 = vld [vmem:[%s3358_s30 + $0x50] sm:$0xff]  ;;  %v319_v12 = vld [vmem:[%s3358_s30 + $0x58] sm:$0xff] }
  0x1c   : > { %258 = vst [vmem:[#allocation2 + $0x18] sm:$0xff] %v3288_v0  ;;  %v320_v13 = vld [vmem:[%s3358_s30 + $0x60] sm:$0xff]  ;;  %v321_v14 = vld [vmem:[%s3358_s30 + $0x68] sm:$0xff]  ;;  %v322_v15 = vld [vmem:[%s3358_s30 + $0x70] sm:$0xff] }
  0x1d   : > { %259 = vst [vmem:[#allocation2 + $0x20] sm:$0xff] %v3288_v0  ;;  %v323_v16 = vld [vmem:[%s3358_s30 + $0x78] sm:$0xff]  ;;  %v324_v17 = vld [vmem:[%s3358_s30 + $0x80] sm:$0xff]  ;;  %v325_v18 = vld [vmem:[%s3358_s30 + $0x88] sm:$0xff] }
  0x1e   : > { %260 = vst [vmem:[#allocation2 + $0x28] sm:$0x3] %v3288_v0  ;;  %v326_v19 = vld [vmem:[%s3358_s30 + $0x90] sm:$0xff]  ;;  %v327_v20 = vld [vmem:[%s3358_s30 + $0x98] sm:$0xff]  ;;  %v328_v21 = vld [vmem:[%s3358_s30 + $0xa0] sm:$0xff] }
  0x1f   : > { %262 = vst [vmem:[#allocation2 + $0x1b0] sm:$0xff] %v3288_v0  ;;  %v329_v22 = vld [vmem:[%s3358_s30 + $0xa8] sm:$0xff]  ;;  %v330_v23 = vld [vmem:[%s3358_s30 + $0xb0] sm:$0xff]  ;;  %v331_v24 = vld [vmem:[%s3358_s30 + $0xb8] sm:$0xff] }
  0x20   : > { %263 = vst [vmem:[#allocation2 + $0x1b8] sm:$0xff] %v3288_v0  ;;  %v332_v25 = vld [vmem:[%s3358_s30 + $0xc0] sm:$0xff]  ;;  %v333_v26 = vld [vmem:[%s3358_s30 + $0xc8] sm:$0xff]  ;;  %v334_v27 = vld [vmem:[%s3358_s30 + $0xd0] sm:$0xff] }
  0x21   : > { %264 = vst [vmem:[#allocation2 + $0x1c0] sm:$0x3] %v3288_v0  ;;  %v335_v28 = vld [vmem:[%s3358_s30 + $0xd8] sm:$0xff]  ;;  %v336_v29 = vld [vmem:[%s3358_s30 + $0xe0] sm:$0xff]  ;;  %v337_v30 = vld [vmem:[%s3358_s30 + $0xe8] sm:$0xff] }
  0x22   : > { %265 = vst [vmem:[#allocation2 + $0x1c8] sm:$0xff] %v3288_v0  ;;  %v338_v31 = vld [vmem:[%s3358_s30 + $0xf0] sm:$0xff]  ;;  %v339_v32 = vld [vmem:[%s3358_s30 + $0xf8] sm:$0xff] }
  0x23   : > { %266 = vst [vmem:[#allocation2 + $0x1d0] sm:$0xff] %v3288_v0 }
  0x24   : > { %267 = vst [vmem:[#allocation2 + $0x1d8] sm:$0x3] %v3288_v0 }
  0x25   : > { %268 = vst [vmem:[#allocation2] sm:$0x1] %v3288_v0 }
  0x26   : > { %270 = vst [vmem:[#allocation2 + $0x30] sm:$0x1] %v3288_v0 }
  0x27   : > { %271 = vst [vmem:[#allocation2 + $0x48] sm:$0x1] %v3288_v0 }
  0x28   : > { %272 = vst [vmem:[#allocation2 + $0x60] sm:$0x1] %v3288_v0 }
  0x29   : > { %273 = vst [vmem:[#allocation2 + $0x78] sm:$0x1] %v3288_v0 }
  0x2a   : > { %274 = vst [vmem:[#allocation2 + $0x90] sm:$0x1] %v3288_v0 }
  0x2b   : > { %275 = vst [vmem:[#allocation2 + $0xa8] sm:$0x1] %v3288_v0 }
  0x2c   : > { %276 = vst [vmem:[#allocation2 + $0xc0] sm:$0x1] %v3288_v0 }
  0x2d   : > { %277 = vst [vmem:[#allocation2 + $0xd8] sm:$0x1] %v3288_v0 }
  0x2e   : > { %278 = vst [vmem:[#allocation2 + $0xf0] sm:$0x1] %v3288_v0 }
  0x2f   : > { %279 = vst [vmem:[#allocation2 + $0x108] sm:$0x1] %v3288_v0 }
  0x30   : > { %280 = vst [vmem:[#allocation2 + $0x120] sm:$0x1] %v3288_v0 }
  0x31   : > { %281 = vst [vmem:[#allocation2 + $0x138] sm:$0x1] %v3288_v0 }
  0x32   : > { %282 = vst [vmem:[#allocation2 + $0x150] sm:$0x1] %v3288_v0 }
  0x33   : > { %283 = vst [vmem:[#allocation2 + $0x168] sm:$0x1] %v3288_v0 }
  0x34   : > { %284 = vst [vmem:[#allocation2 + $0x180] sm:$0x1] %v3288_v0 }
  0x35   : > { %285 = vst [vmem:[#allocation2 + $0x198] sm:$0x1] %v3288_v0 }
  0x36   : > { %290 = vst [vmem:[#allocation2 + $0x41] sm:$0x1] %v3288_v0 }
  0x37   : > { %291 = vst [vmem:[#allocation2 + $0x59] sm:$0x1] %v3288_v0 }
  0x38   : > { %292 = vst [vmem:[#allocation2 + $0x71] sm:$0x1] %v3288_v0 }
  0x39   : > { %293 = vst [vmem:[#allocation2 + $0x89] sm:$0x1] %v3288_v0 }
  0x3a   : > { %294 = vst [vmem:[#allocation2 + $0xa1] sm:$0x1] %v3288_v0 }
  0x3b   : > { %295 = vst [vmem:[#allocation2 + $0xb9] sm:$0x1] %v3288_v0 }
  0x3c   : > { %296 = vst [vmem:[#allocation2 + $0xd1] sm:$0x1] %v3288_v0 }
  0x3d   : > { %297 = vst [vmem:[#allocation2 + $0xe9] sm:$0x1] %v3288_v0 }
  0x3e   : > { %298 = vst [vmem:[#allocation2 + $0x101] sm:$0x1] %v3288_v0 }
  0x3f   : > { %299 = vst [vmem:[#allocation2 + $0x119] sm:$0x1] %v3288_v0 }
  0x40   : > { %300 = vst [vmem:[#allocation2 + $0x131] sm:$0x1] %v3288_v0 }
  0x41   : > { %301 = vst [vmem:[#allocation2 + $0x149] sm:$0x1] %v3288_v0 }
  0x42   : > { %302 = vst [vmem:[#allocation2 + $0x161] sm:$0x1] %v3288_v0 }
  0x43   : > { %303 = vst [vmem:[#allocation2 + $0x179] sm:$0x1] %v3288_v0 }
  0x44   : > { %304 = vst [vmem:[#allocation2 + $0x191] sm:$0x1] %v3288_v0 }
  0x45   : > { %305 = vst [vmem:[#allocation2 + $0x1a9] sm:$0x1] %v3288_v0 }
  0x46   : > { %269 = vst [vmem:[#allocation2 + $0x18] sm:$0x1] %v3288_v0 }
  0x47   : > { %286 = vst [vmem:[#allocation2 + $0x1b0] sm:$0x1] %v3288_v0 }
  0x48   : > { %287 = vst [vmem:[#allocation2 + $0x1c8] sm:$0x1] %v3288_v0 }
  0x49   : > { %288 = vst [vmem:[#allocation2 + $0x11] sm:$0x1] %v3288_v0 }
  0x4a   : > { %289 = vst [vmem:[#allocation2 + $0x29] sm:$0x1] %v3288_v0 }
  0x4b   : > { %306 = vst [vmem:[#allocation2 + $0x1c1] sm:$0x1] %v3288_v0 }
  0x4c   : > { %307 = vst [vmem:[#allocation2 + $0x1d9] sm:$0x1] %v3288_v0 }
  0x4d   : > { %341 = vst [vmem:[#allocation2 + $0x31] sm:$0xff] %v308_v1 }
  0x4e   : > { %342 = vst [vmem:[#allocation2 + $0x39] sm:$0xff] %v309_v2 }
  0x4f   : > { %343 = vst [vmem:[#allocation2 + $0x49] sm:$0xff] %v310_v3 }
  0x50   : > { %344 = vst [vmem:[#allocation2 + $0x51] sm:$0xff] %v311_v4 }
  0x51   : > { %345 = vst [vmem:[#allocation2 + $0x61] sm:$0xff] %v312_v5 }
  0x52   : > { %346 = vst [vmem:[#allocation2 + $0x69] sm:$0xff] %v313_v6 }
  0x53   : > { %347 = vst [vmem:[#allocation2 + $0x79] sm:$0xff] %v314_v7 }
  0x54   : > { %348 = vst [vmem:[#allocation2 + $0x81] sm:$0xff] %v315_v8 }
  0x55   : > { %349 = vst [vmem:[#allocation2 + $0x91] sm:$0xff] %v316_v9 }
  0x56   : > { %350 = vst [vmem:[#allocation2 + $0x99] sm:$0xff] %v317_v10 }
  0x57   : > { %351 = vst [vmem:[#allocation2 + $0xa9] sm:$0xff] %v318_v11 }
  0x58   : > { %352 = vst [vmem:[#allocation2 + $0xb1] sm:$0xff] %v319_v12 }
  0x59   : > { %353 = vst [vmem:[#allocation2 + $0xc1] sm:$0xff] %v320_v13 }
  0x5a   : > { %354 = vst [vmem:[#allocation2 + $0xc9] sm:$0xff] %v321_v14 }
  0x5b   : > { %355 = vst [vmem:[#allocation2 + $0xd9] sm:$0xff] %v322_v15 }
  0x5c   : > { %356 = vst [vmem:[#allocation2 + $0xe1] sm:$0xff] %v323_v16 }
  0x5d   : > { %357 = vst [vmem:[#allocation2 + $0xf1] sm:$0xff] %v324_v17 }
  0x5e   : > { %358 = vst [vmem:[#allocation2 + $0xf9] sm:$0xff] %v325_v18 }
  0x5f   : > { %359 = vst [vmem:[#allocation2 + $0x109] sm:$0xff] %v326_v19 }
  0x60   : > { %360 = vst [vmem:[#allocation2 + $0x111] sm:$0xff] %v327_v20 }
  0x61   : > { %361 = vst [vmem:[#allocation2 + $0x121] sm:$0xff] %v328_v21 }
  0x62   : > { %362 = vst [vmem:[#allocation2 + $0x129] sm:$0xff] %v329_v22 }
  0x63   : > { %363 = vst [vmem:[#allocation2 + $0x139] sm:$0xff] %v330_v23 }
  0x64   : > { %364 = vst [vmem:[#allocation2 + $0x141] sm:$0xff] %v331_v24 }
  0x65   : > { %365 = vst [vmem:[#allocation2 + $0x151] sm:$0xff] %v332_v25 }
  0x66   : > { %366 = vst [vmem:[#allocation2 + $0x159] sm:$0xff] %v333_v26 }
  0x67   : > { %367 = vst [vmem:[#allocation2 + $0x169] sm:$0xff] %v334_v27 }
  0x68   : > { %368 = vst [vmem:[#allocation2 + $0x171] sm:$0xff] %v335_v28 }
  0x69   : > { %369 = vst [vmem:[#allocation2 + $0x181] sm:$0xff] %v336_v29 }
  0x6a   : > { %370 = vst [vmem:[#allocation2 + $0x189] sm:$0xff] %v337_v30 }
  0x6b   : > { %371 = vst [vmem:[#allocation2 + $0x199] sm:$0xff] %v338_v31 }
  0x6c   : > { %372 = vst [vmem:[#allocation2 + $0x1a1] sm:$0xff] %v339_v32 }
  0x6d PF: > { %v992_v33 = vld [vmem:[%s5563_s1 + $0x78] sm:$0xff]  ;;  %v991_v35 = vld [vmem:[%s5563_s1 + $0x70] sm:$0xff]  ;;  %v990_v37 = vld [vmem:[%s5563_s1 + $0x68] sm:$0xff]  ;;  %s3146_s10 = smul.u32 192, %s3270_s18  ;;  %vm501_vm0 = vcmask 1046528   ;;  %vm652_vm1 = vcmask 1045504  }
  0x6e   : > { %v1008_v34 = vld [vmem:[%s5563_s1 + $0xf8] sm:$0xff]  ;;  %1125 = vmatpush.msra.mxu0 %v992_v33  ;;  %v1007_v36 = vld [vmem:[%s5563_s1 + $0xf0] sm:$0xff]  ;;  %v1006_v38 = vld [vmem:[%s5563_s1 + $0xe8] sm:$0xff] }
  0x6f   : > { %3154 = vmatpush.msra.mxu3 %v1008_v34  ;;  %1202 = vmatpush.msra.mxu1 %v1008_v34  ;;  %v989_v39 = vld [vmem:[%s5563_s1 + $0x60] sm:$0xff]  ;;  %v988_v41 = vld [vmem:[%s5563_s1 + $0x58] sm:$0xff]  ;;  %v987_v43 = vld [vmem:[%s5563_s1 + $0x50] sm:$0xff]  ;;  %s3446_s8 = scalar_lea.vmem [#allocation2], %s3146_s10 }
  0x70   : > { %1126 = vmatpush.msra.mxu0 %v991_v35  ;;  %v1005_v40 = vld [vmem:[%s5563_s1 + $0xe0] sm:$0xff]  ;;  %v1004_v42 = vld [vmem:[%s5563_s1 + $0xd8] sm:$0xff]  ;;  %v1003_v44 = vld [vmem:[%s5563_s1 + $0xd0] sm:$0xff] }
  0x71   : > { %3155 = vmatpush.msra.mxu3 %v1007_v36  ;;  %1203 = vmatpush.msra.mxu1 %v1007_v36  ;;  %v986_v45 = vld [vmem:[%s5563_s1 + $0x48] sm:$0xff]  ;;  %v985_v47 = vld [vmem:[%s5563_s1 + $0x40] sm:$0xff]  ;;  %v3465_v54 = vld [vmem:[%s5563_s1 + $0x178] sm:$0xff] }
  0x72   : > { %1127 = vmatpush.msra.mxu0 %v990_v37  ;;  %v1002_v46 = vld [vmem:[%s5563_s1 + $0xc8] sm:$0xff]  ;;  %v1001_v49 = vld [vmem:[%s5563_s1 + $0xc0] sm:$0xff]  ;;  %v984_v60 = vld [vmem:[%s5563_s1 + $0x38] sm:$0xff]  ;;  %3170 = vmatpush.msra.mxu2 %v3465_v54 }
  0x73   : > { %3156 = vmatpush.msra.mxu3 %v1006_v38  ;;  %1204 = vmatpush.msra.mxu1 %v1006_v38  ;;  %v3449_v48 = vld [vmem:[%s3446_s8] sm:$0xff]  ;;  %v3455_v50 = vld [vmem:[%s3446_s8 + $0x98] sm:$0xff]  ;;  %v3468_v55 = vld [vmem:[%s3446_s8 + $0x8] sm:$0xff] }
  0x74   : > { %1128 = vmatpush.msra.mxu0 %v989_v39  ;;  %v3458_v51 = vld [vmem:[%s3446_s8 + $0xa0] sm:$0x3]  ;;  %v533_v52 = vrot.slane %v3455_v50, 1  ;;  %v3471_v56 = vld [vmem:[%s3446_s8 + $0xa8] sm:$0xff]  ;;  %v502_v57 = vrot.slane %v3449_v48, 1  ;;  %v503_v58 = vrot.slane %v3468_v55, 1 }
  0x75   : > { %3157 = vmatpush.msra.mxu3 %v1005_v40  ;;  %1205 = vmatpush.msra.mxu1 %v1005_v40  ;;  %v535_v53 = vrot.slane %v3458_v51, 1  ;;  %v3476_v59 = vld [vmem:[%s3446_s8 + $0xb0] sm:$0xff]  ;;  %v1000_v61 = vld [vmem:[%s5563_s1 + $0xb8] sm:$0xff]  ;;  %460 = vst [vmem:[#allocation4 + $0x478] sm:$0xff] %v3455_v50  ;;  %v537_v0 = vrot.slane %v3471_v56, 1  ;;  %v982_v5 = vld [vmem:[%s5563_s1 + $0x28] sm:$0xff] }
  0x76   : > { %1129 = vmatpush.msra.mxu0 %v988_v41  ;;  %v3493_v63 = vld [vmem:[%s5563_s1 + $0x170] sm:$0xff]  ;;  %v538_v1 = vrot.slane %v3476_v59, 1  ;;  %v3510_v4 = vsel %vm501_vm0, %v502_v57, %v503_v58  ;;  %v998_v6 = vld [vmem:[%s5563_s1 + $0xa8] sm:$0xff]  ;;  %v981_v9 = vld [vmem:[%s5563_s1 + $0x20] sm:$0xff]  ;;  %461 = vst [vmem:[#allocation4 + $0x528] sm:$0xff] %v3471_v56 }
  0x77   : > { %3158 = vmatpush.msra.mxu3 %v1004_v42  ;;  %1206 = vmatpush.msra.mxu1 %v1004_v42  ;;  %v3487_v62 = vsel %vm501_vm0, %v533_v52, %v535_v53  ;;  %v983_v2 = vld [vmem:[%s5563_s1 + $0x30] sm:$0xff]  ;;  %v3521_v7 = vld [vmem:[%s5563_s1 + $0x168] sm:$0xff]  ;;  %v997_v10 = vld [vmem:[%s5563_s1 + $0xa0] sm:$0xff]  ;;  %462 = vst [vmem:[#allocation4 + $0x138] sm:$0xff] %v3476_v59 }
  0x78   : > { %1130 = vmatpush.msra.mxu0 %v987_v43  ;;  %v999_v3 = vld [vmem:[%s5563_s1 + $0xb0] sm:$0xff]  ;;  %613 = vst [vmem:[#allocation4 + $0x468] sm:$0xff] %v3487_v62  ;;  %3171 = vmatpush.msra.mxu2 %v3493_v63  ;;  %v3526_v8 = vsel %vm501_vm0, %v537_v0, %v538_v1  ;;  %v980_v12 = vld [vmem:[%s5563_s1 + $0x18] sm:$0xff]  ;;  %v978_v18 = vld [vmem:[%s5563_s1 + $0x8] sm:$0xff] }
  0x79   : > { %3159 = vmatpush.msra.mxu3 %v1003_v44  ;;  %1207 = vmatpush.msra.mxu1 %v1003_v44  ;;  %641 = vst [vmem:[#allocation4 + $0x118] sm:$0xff] %v3487_v62  ;;  %v3536_v11 = vld [vmem:[%s3446_s8 + $0x10] sm:$0x3]  ;;  %v996_v13 = vld [vmem:[%s5563_s1 + $0x98] sm:$0xff]  ;;  %v994_v19 = vld [vmem:[%s5563_s1 + $0x88] sm:$0xff] }
  0x7a   : > { %1131 = vmatpush.msra.mxu0 %v986_v45  ;;  %3172 = vmatpush.msra.mxu2 %v3521_v7  ;;  %v979_v14 = vld [vmem:[%s5563_s1 + $0x10] sm:$0xff]  ;;  %v505_v16 = vrot.slane %v3536_v11, 1  ;;  %v3552_v17 = vld [vmem:[%s3446_s8 + $0xb8] sm:$0x3]  ;;  %v1021_v20 = vld [vmem:[%s5563_s1 + $0x160] sm:$0xff]  ;;  %614 = vst [vmem:[#allocation4 + $0x2a0] sm:$0xff] %v3526_v8 }
  0x7b   : > { %3160 = vmatpush.msra.mxu3 %v1002_v46  ;;  %1208 = vmatpush.msra.mxu1 %v1002_v46  ;;  %v995_v15 = vld [vmem:[%s5563_s1 + $0x90] sm:$0xff]  ;;  %v3567_v21 = vld [vmem:[%s3446_s8 + $0x18] sm:$0xff]  ;;  %v540_v22 = vrot.slane %v3552_v17, 1  ;;  %v3571_v23 = vld [vmem:[%s3446_s8 + $0x20] sm:$0xff]  ;;  %642 = vst [vmem:[#allocation4 + $0x560] sm:$0xff] %v3526_v8 }
  0x7c   : > { %1132 = vmatpush.msra.mxu0 %v985_v47  ;;  %v1020_v24 = vld [vmem:[%s5563_s1 + $0x158] sm:$0xff]  ;;  %v977_v25 = vld [vmem:[%s5563_s1] sm:$0xff]  ;;  %v506_v27 = vsel %vm501_vm0, %v503_v58, %v505_v16  ;;  %3173 = vmatpush.msra.mxu2 %v1021_v20  ;;  %v507_v28 = vrot.slane %v3567_v21, 1  ;;  %v508_v29 = vrot.slane %v3571_v23, 1  ;;  %v3597_v32 = vld [vmem:[%s3446_s8 + $0xc8] sm:$0xff] }
  0x7d   : > { %3161 = vmatpush.msra.mxu3 %v1001_v49  ;;  %1209 = vmatpush.msra.mxu1 %v1001_v49  ;;  %v993_v26 = vld [vmem:[%s5563_s1 + $0x80] sm:$0xff]  ;;  %v3591_v30 = vsel %vm501_vm0, %v538_v1, %v540_v22  ;;  %v1040_v33 = vld [vmem:[%s5563_s1 + $0x1f8] sm:$0xff]  ;;  %v1019_v34 = vld [vmem:[%s5563_s1 + $0x150] sm:$0xff]  ;;  %v543_v38 = vrot.slane %v3597_v32, 1  ;;  %464 = vst [vmem:[#allocation4 + $0x390] sm:$0xff] %v3597_v32 }
  0x7e   : > { %1133 = vmatpush.msra.mxu0 %v984_v60  ;;  %3174 = vmatpush.msra.mxu2 %v1020_v24  ;;  %v3594_v31 = vld [vmem:[%s3446_s8 + $0xc0] sm:$0xff]  ;;  %615 = vst [vmem:[#allocation4 + $0x3c8] sm:$0xff] %v3591_v30  ;;  %v1039_v35 = vld [vmem:[%s5563_s1 + $0x1f0] sm:$0xff]  ;;  %v509_v36 = vsel %vm501_vm0, %v507_v28, %v508_v29  ;;  %v1018_v39 = vld [vmem:[%s5563_s1 + $0x148] sm:$0xff] }
  0x7f   : > { %3162 = vmatpush.msra.mxu3 %v1000_v61  ;;  %1210 = vmatpush.msra.mxu1 %v1000_v61  ;;  %643 = vst [vmem:[#allocation4 + $0x448] sm:$0xff] %v3591_v30  ;;  %v542_v37 = vrot.slane %v3594_v31, 1  ;;  %v1038_v40 = vld [vmem:[%s5563_s1 + $0x1e8] sm:$0xff]  ;;  %v1017_v41 = vld [vmem:[%s5563_s1 + $0x140] sm:$0xff]  ;;  %v1016_v44 = vld [vmem:[%s5563_s1 + $0x138] sm:$0xff] }
  0x80   : > { %1134 = vmatpush.msra.mxu0 %v983_v2  ;;  %3175 = vmatpush.msra.mxu2 %v1019_v34  ;;  %602 = vst [vmem:[#allocation4 + $0x20] sm:$0xff] %v509_v36  ;;  %v1037_v43 = vld [vmem:[%s5563_s1 + $0x1e0] sm:$0xff]  ;;  %v3644_v45 = vld [vmem:[%s3446_s8 + $0x28] sm:$0x3]  ;;  %v1036_v46 = vld [vmem:[%s5563_s1 + $0x1d8] sm:$0xff] }
  0x81   : > { %3163 = vmatpush.msra.mxu3 %v999_v3  ;;  %1211 = vmatpush.msra.mxu1 %v999_v3  ;;  %v3633_v42 = vsel %vm501_vm0, %v542_v37, %v543_v38  ;;  %v1015_v47 = vld [vmem:[%s5563_s1 + $0x130] sm:$0xff]  ;;  %v3658_v53 = vld [vmem:[%s5563_s1 + $0x128] sm:$0xff]  ;;  %463 = vst [vmem:[#allocation4 + $0x310] sm:$0xff] %v3594_v31  ;;  %v3668_v58 = vld [vmem:[%s5563_s1 + $0x120] sm:$0xff] }
  0x82   : > { %1135 = vmatpush.msra.mxu0 %v982_v5  ;;  %3176 = vmatpush.msra.mxu2 %v1018_v39  ;;  %v1035_v49 = vld [vmem:[%s5563_s1 + $0x1d0] sm:$0xff]  ;;  %v1034_v57 = vld [vmem:[%s5563_s1 + $0x1c8] sm:$0xff]  ;;  %616 = vst [vmem:[#allocation4 + $0x1e0] sm:$0xff] %v3633_v42  ;;  %v1033_v61 = vld [vmem:[%s5563_s1 + $0x1c0] sm:$0xff] }
  0x83   : > { %3164 = vmatpush.msra.mxu3 %v998_v6  ;;  %1212 = vmatpush.msra.mxu1 %v998_v6  ;;  %v3672_v60 = vld [vmem:[%s3446_s8 + $0xd0] sm:$0x3]  ;;  %644 = vst [vmem:[#allocation4 + $0x298] sm:$0xff] %v3633_v42  ;;  %v3696_v2 = vld [vmem:[%s3446_s8 + $0x38] sm:$0xff]  ;;  %v1009_v16 = vld [vmem:[%s5563_s1 + $0x100] sm:$0xff] }
  0x84   : > { %1136 = vmatpush.msra.mxu0 %v981_v9  ;;  %3177 = vmatpush.msra.mxu2 %v1017_v41  ;;  %v3689_v0 = vld [vmem:[%s3446_s8 + $0x30] sm:$0xff]  ;;  %v545_v1 = vrot.slane %v3672_v60, 1  ;;  %v1032_v3 = vld [vmem:[%s5563_s1 + $0x1b8] sm:$0xff]  ;;  %452 = vst [vmem:[#allocation4 + $0x28] sm:$0xff] %v3696_v2  ;;  %v1025_v37 = vld [vmem:[%s5563_s1 + $0x180] sm:$0xff] }
  0x85   : > { %3165 = vmatpush.msra.mxu3 %v997_v10  ;;  %1213 = vmatpush.msra.mxu1 %v997_v10  ;;  %v1031_v5 = vld [vmem:[%s5563_s1 + $0x1b0] sm:$0xff]  ;;  %v512_v9 = vrot.slane %v3689_v0, 1  ;;  %v513_v10 = vrot.slane %v3696_v2, 1  ;;  %451 = vst [vmem:[#allocation4 + $0x3f0] sm:$0xff] %v3689_v0 }
  0x86   : > { %1137 = vmatpush.msra.mxu0 %v980_v12  ;;  %3178 = vmatpush.msra.mxu2 %v1016_v44  ;;  %v3711_v6 = vld [vmem:[%s3446_s8 + $0x50] sm:$0xff] }
  0x87   : > { %3166 = vmatpush.msra.mxu3 %v996_v13  ;;  %1214 = vmatpush.msra.mxu1 %v996_v13  ;;  %v669_v12 = vrot.slane %v3711_v6, 2  ;;  %v1027_v28 = vld [vmem:[%s5563_s1 + $0x190] sm:$0xff]  ;;  %454 = vst [vmem:[#allocation4 + $0x558] sm:$0xff] %v3711_v6 }
  0x88   : > { %1138 = vmatpush.msra.mxu0 %v979_v14  ;;  %3179 = vmatpush.msra.mxu2 %v1015_v47  ;;  %v546_v14 = vsel %vm501_vm0, %v543_v38, %v545_v1 }
  0x89   : > { %3167 = vmatpush.msra.mxu3 %v995_v15  ;;  %1215 = vmatpush.msra.mxu1 %v995_v15  ;;  %v1030_v15 = vld [vmem:[%s5563_s1 + $0x1a8] sm:$0xff]  ;;  %617 = vst [vmem:[#allocation4 + $0x288] sm:$0xff] %v546_v14 }
  0x8a   : > { %1139 = vmatpush.msra.mxu0 %v978_v18  ;;  %3180 = vmatpush.msra.mxu2 %v3658_v53  ;;  %v3738_v18 = vld [vmem:[%s3446_s8 + $0xd8] sm:$0xff]  ;;  %645 = vst [vmem:[#allocation4 + $0x1b8] sm:$0xff] %v546_v14 }
  0x8b   : > { %3168 = vmatpush.msra.mxu3 %v994_v19  ;;  %1216 = vmatpush.msra.mxu1 %v994_v19  ;;  %v3741_v19 = vld [vmem:[%s3446_s8 + $0xe0] sm:$0xff]  ;;  %465 = vst [vmem:[#allocation4 + $0x438] sm:$0xff] %v3738_v18 }
  0x8c   : > { %1140 = vmatpush.msra.mxu0 %v977_v25  ;;  %3181 = vmatpush.msra.mxu2 %v3668_v58  ;;  %v1028_v25 = vld [vmem:[%s5563_s1 + $0x198] sm:$0xff]  ;;  %466 = vst [vmem:[#allocation4 + $0x108] sm:$0xff] %v3741_v19 }
  0x8d   : > { %3169 = vmatpush.msra.mxu3 %v993_v26  ;;  %1141 = vmatmul.f32.vlgmr.msra.gmra.mxu0 %v3449_v48 }
  0x8e   : > { %1257 = vmatmul.f32.vlgmr.msra.gmra.mxu3 %v3487_v62  ;;  %1279 = vmatpush.msrb.mxu0 %v3465_v54  ;;  %v510_v54 = vrot.slane %v3644_v45, 1  ;;  %v3682_v62 = vld [vmem:[%s5563_s1 + $0x118] sm:$0xff] }
  0x8f   : > { %1217 = vmatpush.msra.mxu1 %v993_v26  ;;  %1356 = vmatpush.msrb.mxu3 %v1040_v33  ;;  %v547_v26 = vrot.slane %v3738_v18, 1 }
  0x90   : > { %1218 = vmatmul.f32.vlgmr.msra.gmra.mxu1 %v3510_v4  ;;  %1280 = vmatpush.msrb.mxu0 %v3493_v63  ;;  %v511_v63 = vsel %vm501_vm0, %v508_v29, %v510_v54  ;;  %v3704_v4 = vld [vmem:[%s5563_s1 + $0x110] sm:$0xff]  ;;  %v3766_v29 = vld [vmem:[%s3446_s8 + $0x60] sm:$0xff] }
  0x91   : > { %1357 = vmatpush.msrb.mxu3 %v1039_v35  ;;  %603 = vst [vmem:[#allocation4 + $0xe8] sm:$0xff] %v511_v63  ;;  %3182 = vmatpush.msra.mxu2 %v3682_v62  ;;  %v673_v33 = vrot.slane %v3766_v29, 2  ;;  %v1026_v35 = vld [vmem:[%s5563_s1 + $0x188] sm:$0xff]  ;;  %v3820_v54 = vld [vmem:[%s3446_s8 + $0x80] sm:$0xff] }
  0x92   : > { %1281 = vmatpush.msrb.mxu0 %v3521_v7  ;;  %v3716_v7 = vld [vmem:[%s5563_s1 + $0x108] sm:$0xff]  ;;  %455 = vst [vmem:[#allocation4 + $0x330] sm:$0xff] %v3766_v29 }
  0x93   : > { %1358 = vmatpush.msrb.mxu3 %v1038_v40  ;;  %3183 = vmatpush.msra.mxu2 %v3704_v4  ;;  %458 = vst [vmem:[#allocation4 + $0x2f8] sm:$0xff] %v3820_v54 }
  0x94   : > { %1282 = vmatpush.msrb.mxu0 %v1021_v20  ;;  %v1029_v20 = vld [vmem:[%s5563_s1 + $0x1a0] sm:$0xff] }
  0x95   : > { %1144 = vmatmul.f32.gmra.mxu0 %v3468_v55  ;;  %1359 = vmatpush.msrb.mxu3 %v1037_v43  ;;  %v3802_v43 = vld [vmem:[%s3446_s8 + $0xe8] sm:$0x3] }
  0x96   : > { %1260 = vmatmul.f32.gmra.mxu3 %v3526_v8  ;;  %1283 = vmatpush.msrb.mxu0 %v1020_v24  ;;  %v3719_v8 = vld [vmem:[%s3446_s8 + $0x58] sm:$0x3]  ;;  %v514_v24 = vsel %vm501_vm0, %v512_v9, %v513_v10 }
  0x97   : > { %1360 = vmatpush.msrb.mxu3 %v1036_v46  ;;  %v671_v13 = vrot.slane %v3719_v8, 2  ;;  %3184 = vmatpush.msra.mxu2 %v3716_v7  ;;  %632 = vst [vmem:[#allocation4 + $0x3f8] sm:$0xff] %v514_v24 }
  0x98   : > { %1221 = vmatmul.f32.gmra.mxu1 %v506_v27  ;;  %1284 = vmatpush.msrb.mxu0 %v1019_v34  ;;  %v548_v27 = vrot.slane %v3741_v19, 1  ;;  %604 = vst [vmem:[#allocation4 + $0x588] sm:$0xff] %v514_v24 }
  0x99   : > { %1361 = vmatpush.msrb.mxu3 %v1035_v49  ;;  %v3749_v22 = vsel %vm652_vm1, %v669_v12, %v671_v13  ;;  %3185 = vmatpush.msra.mxu2 %v1009_v16  ;;  %v550_v49 = vrot.slane %v3802_v43, 1  ;;  %v522_v13 = vrot.slane %v3766_v29, 1 }
  0x9a   : > { %1285 = vmatpush.msrb.mxu0 %v1018_v39  ;;  %1316 = vmatmul.f32.vlgmr.msra.gmra.mxu2 %v3749_v22  ;;  %v3788_v39 = vld [vmem:[%s3446_s8 + $0x40] sm:$0x3]  ;;  %755 = vst [vmem:[#allocation4 + $0x570] sm:$0xff] %v3749_v22 }
  0x9b   : > { %1362 = vmatpush.msrb.mxu3 %v1034_v57  ;;  %v515_v40 = vrot.slane %v3788_v39, 1  ;;  %780 = vst [vmem:[#allocation4 + $0x348] sm:$0xff] %v3749_v22 }
  0x9c   : > { %1286 = vmatpush.msrb.mxu0 %v1017_v41  ;;  %v3794_v41 = vld [vmem:[%s3446_s8 + $0x70] sm:$0x3] }
  0x9d   : > { %1147 = vmatmul.f32.gmra.mxu0 %v3567_v21  ;;  %1363 = vmatpush.msrb.mxu3 %v1033_v61 }
  0x9e   : > { %1263 = vmatmul.f32.gmra.mxu3 %v3591_v30  ;;  %1287 = vmatpush.msrb.mxu0 %v1016_v44  ;;  %v3769_v30 = vld [vmem:[%s3446_s8 + $0x68] sm:$0xff]  ;;  %v516_v44 = vsel %vm501_vm0, %v513_v10, %v515_v40 }
  0x9f   : > { %1364 = vmatpush.msrb.mxu3 %v1032_v3  ;;  %v674_v34 = vrot.slane %v3769_v30, 2  ;;  %605 = vst [vmem:[#allocation4 + $0x580] sm:$0xff] %v516_v44 }
  0xa0   : > { %1224 = vmatmul.f32.gmra.mxu1 %v509_v36  ;;  %1288 = vmatpush.msrb.mxu0 %v1015_v47  ;;  %v549_v36 = vsel %vm501_vm0, %v547_v26, %v548_v27  ;;  %v3812_v47 = vld [vmem:[%s3446_s8 + $0x48] sm:$0xff]  ;;  %633 = vst [vmem:[#allocation4 + $0x498] sm:$0xff] %v516_v44 }
  0xa1   : > { %1365 = vmatpush.msrb.mxu3 %v1031_v5  ;;  %v3784_v38 = vsel %vm652_vm1, %v673_v33, %v674_v34  ;;  %618 = vst [vmem:[#allocation4 + $0x228] sm:$0xff] %v549_v36  ;;  %v517_v57 = vrot.slane %v3812_v47, 1  ;;  %v520_v5 = vrot.slane %v3719_v8, 1  ;;  %v3850_v8 = vld [vmem:[%s3446_s8 + $0x90] sm:$0xff]  ;;  %v688_v33 = vrot.slane %v3471_v56, 2 }
  0xa2   : > { %1289 = vmatpush.msrb.mxu0 %v3658_v53  ;;  %1319 = vmatmul.f32.gmra.mxu2 %v3784_v38  ;;  %646 = vst [vmem:[#allocation4 + $0x268] sm:$0xff] %v549_v36  ;;  %v3817_v53 = vld [vmem:[%s3446_s8 + $0x78] sm:$0xff] }
  0xa3   : > { %1366 = vmatpush.msrb.mxu3 %v1030_v15  ;;  %v678_v61 = vrot.slane %v3817_v53, 2  ;;  %453 = vst [vmem:[#allocation4 + $0x68] sm:$0xff] %v3812_v47  ;;  %v683_v15 = vrot.slane %v3850_v8, 2 }
  0xa4   : > { %1290 = vmatpush.msrb.mxu0 %v3668_v58  ;;  %v518_v58 = vrot.slane %v3711_v6, 1  ;;  %456 = vst [vmem:[#allocation4 + $0x2d0] sm:$0xff] %v3769_v30 }
  0xa5   : > { %1150 = vmatmul.f32.gmra.mxu0 %v3571_v23  ;;  %1367 = vmatpush.msrb.mxu3 %v1029_v20  ;;  %756 = vst [vmem:[#allocation4 + $0x1e8] sm:$0xff] %v3784_v38 }
  0xa6   : > { %1266 = vmatmul.f32.gmra.mxu3 %v3633_v42  ;;  %1291 = vmatpush.msrb.mxu0 %v3682_v62  ;;  %v676_v42 = vrot.slane %v3794_v41, 2  ;;  %v679_v62 = vrot.slane %v3820_v54, 2  ;;  %v519_v3 = vsel %vm501_vm0, %v517_v57, %v518_v58  ;;  %v521_v10 = vsel %vm501_vm0, %v518_v58, %v520_v5  ;;  %781 = vst [vmem:[#allocation4 + $0x198] sm:$0xff] %v3784_v38 }
  0xa7   : > { %1368 = vmatpush.msrb.mxu3 %v1028_v25  ;;  %606 = vst [vmem:[#allocation4 + $0x368] sm:$0xff] %v519_v3  ;;  %v686_v25 = vrot.slane %v3458_v51, 2  ;;  %v527_v51 = vrot.slane %v3817_v53, 1  ;;  %v696_v57 = vrot.slane %v3672_v60, 2  ;;  %v656_v5 = vrot.slane %v3536_v11, 2 }
  0xa8   : > { %1227 = vmatmul.f32.gmra.mxu1 %v511_v63  ;;  %1292 = vmatpush.msrb.mxu0 %v3704_v4  ;;  %v3808_v46 = vsel %vm652_vm1, %v674_v34, %v676_v42  ;;  %v551_v63 = vsel %vm501_vm0, %v548_v27, %v550_v49  ;;  %v3829_v1 = vsel %vm652_vm1, %v678_v61, %v679_v62  ;;  %v3835_v4 = vld [vmem:[%s3446_s8 + $0x88] sm:$0x3]  ;;  %v689_v34 = vrot.slane %v3476_v59, 2 }
  0xa9   : > { %1369 = vmatpush.msrb.mxu3 %v1027_v28  ;;  %619 = vst [vmem:[#allocation4 + $0x388] sm:$0xff] %v551_v63  ;;  %v528_v28 = vrot.slane %v3820_v54, 1  ;;  %v530_v38 = vrot.slane %v3835_v4, 1  ;;  %v693_v42 = vrot.slane %v3594_v31, 2  ;;  %v699_v61 = vrot.slane %v3741_v19, 2 }
  0xaa   : > { %1293 = vmatpush.msrb.mxu0 %v3716_v7  ;;  %1322 = vmatmul.f32.gmra.mxu2 %v3808_v46  ;;  %647 = vst [vmem:[#allocation4 + $0x170] sm:$0xff] %v551_v63  ;;  %v681_v7 = vrot.slane %v3835_v4, 2 }
  0xab   : > { %1370 = vmatpush.msrb.mxu3 %v1026_v35  ;;  %634 = vst [vmem:[#allocation4 + $0x370] sm:$0xff] %v519_v3  ;;  %v690_v35 = vsel %vm652_vm1, %v688_v33, %v689_v34  ;;  %v1072_v33 = vld [vmem:[%s5563_s1 + $0x2f8] sm:$0xff] }
  0xac   : > { %1294 = vmatpush.msrb.mxu0 %v1009_v16  ;;  %v3841_v9 = vsel %vm652_vm1, %v679_v62, %v681_v7  ;;  %607 = vst [vmem:[#allocation4 + $0x1b0] sm:$0xff] %v521_v10  ;;  %v684_v16 = vrot.slane %v3455_v50, 2  ;;  %1510 = vmatpush.msrb.mxu1 %v1072_v33 }
  0xad   : > { %1153 = vmatmul.f32.gmra.mxu0 %v3689_v0  ;;  %1371 = vmatpush.msrb.mxu3 %v1025_v37  ;;  %635 = vst [vmem:[#allocation4 + $0x1a0] sm:$0xff] %v521_v10  ;;  %v691_v37 = vrot.slane %v3552_v17, 2  ;;  %v532_v17 = vrot.slane %v3850_v8, 1 }
  0xae   : > { %1269 = vmatmul.f32.gmra.mxu3 %v546_v14  ;;  %v523_v14 = vrot.slane %v3769_v30, 1  ;;  %v685_v20 = vsel %vm652_vm1, %v683_v15, %v684_v16  ;;  %v687_v26 = vsel %vm652_vm1, %v684_v16, %v686_v25  ;;  %757 = vst [vmem:[#allocation4 + $0xb0] sm:$0xff] %v3808_v46  ;;  %v1052_v15 = vld [vmem:[%s5563_s1 + $0x258] sm:$0xff]  ;;  %v1050_v25 = vld [vmem:[%s5563_s1 + $0x248] sm:$0xff] }
  0xaf   : > { %782 = vst [vmem:[#allocation4 + $0x510] sm:$0xff] %v3808_v46  ;;  %v692_v40 = vsel %vm652_vm1, %v689_v34, %v691_v37  ;;  %v3918_v49 = vsel %vm501_vm0, %v532_v17, %v533_v52  ;;  %v698_v52 = vrot.slane %v3738_v18, 2  ;;  %v1048_v37 = vld [vmem:[%s5563_s1 + $0x238] sm:$0xff]  ;;  %v1102_v17 = vld [vmem:[%s5563_s1 + $0x3e8] sm:$0xff] }
  0xb0   : > { %1230 = vmatmul.f32.gmra.mxu1 %v514_v24  ;;  %v3858_v22 = vsel %vm501_vm0, %v522_v13, %v523_v14  ;;  %v525_v24 = vrot.slane %v3794_v41, 1  ;;  %758 = vst [vmem:[#allocation4 + $0x4d8] sm:$0xff] %v3829_v1  ;;  %v3900_v41 = vsel %vm501_vm0, %v528_v28, %v530_v38  ;;  %v658_v13 = vrot.slane %v3567_v21, 2  ;;  %v1071_v38 = vld [vmem:[%s5563_s1 + $0x2f0] sm:$0xff] }
  0xb1   : > { %608 = vst [vmem:[#allocation4 + $0x278] sm:$0xff] %v3858_v22  ;;  %v700_v60 = vsel %vm652_vm1, %v698_v52, %v699_v61  ;;  %1511 = vmatpush.msrb.mxu1 %v1071_v38  ;;  %v1084_v52 = vld [vmem:[%s5563_s1 + $0x358] sm:$0xff] }
  0xb2   : > { %1325 = vmatmul.f32.gmra.mxu2 %v3829_v1  ;;  %636 = vst [vmem:[#allocation4 + $0x1c0] sm:$0xff] %v3858_v22  ;;  %v3873_v27 = vsel %vm501_vm0, %v523_v14, %v525_v24  ;;  %v659_v14 = vrot.slane %v3571_v23, 2  ;;  %v661_v24 = vrot.slane %v3644_v45, 2  ;;  %v1087_v45 = vld [vmem:[%s5563_s1 + $0x370] sm:$0xff] }
  0xb3   : > { %609 = vst [vmem:[#allocation4 + $0x398] sm:$0xff] %v3873_v27 }
  0xb4   : > { %637 = vst [vmem:[#allocation4 + $0x2f0] sm:$0xff] %v3873_v27  ;;  %v3978_v16 = vsel %vm652_vm1, %v658_v13, %v659_v14  ;;  %v666_v13 = vrot.slane %v3788_v39, 2 }
  0xb5   : > { %1156 = vmatmul.f32.gmra.mxu0 %v3696_v2  ;;  %783 = vst [vmem:[#allocation4 + $0x2d8] sm:$0xff] %v3829_v1 }
  0xb6   : > { %1272 = vmatmul.f32.gmra.mxu3 %v549_v36  ;;  %v3888_v36 = vsel %vm501_vm0, %v527_v51, %v528_v28  ;;  %759 = vst [vmem:[#allocation4 + $0x1f8] sm:$0xff] %v3841_v9  ;;  %v1104_v51 = vld [vmem:[%s5563_s1 + $0x3f8] sm:$0xff]  ;;  %v1049_v28 = vld [vmem:[%s5563_s1 + $0x240] sm:$0xff] }
  0xb7   : > { %610 = vst [vmem:[#allocation4 + $0xc0] sm:$0xff] %v3888_v36  ;;  %1664 = vmatpush.msra.mxu3 %v1104_v51  ;;  %v1044_v51 = vld [vmem:[%s5563_s1 + $0x218] sm:$0xff] }
  0xb8   : > { %1233 = vmatmul.f32.gmra.mxu1 %v516_v44  ;;  %638 = vst [vmem:[#allocation4 + $0x540] sm:$0xff] %v3888_v36  ;;  %v694_v44 = vrot.slane %v3597_v32, 2 }
  0xb9   : > { %784 = vst [vmem:[#allocation4 + $0x308] sm:$0xff] %v3841_v9 }
  0xba   : > { %1328 = vmatmul.f32.gmra.mxu2 %v3841_v9  ;;  %611 = vst [vmem:[#allocation4 + $0x3d8] sm:$0xff] %v3900_v41  ;;  %v695_v46 = vsel %vm652_vm1, %v693_v42, %v694_v44  ;;  %v697_v58 = vsel %vm652_vm1, %v694_v44, %v696_v57  ;;  %v664_v57 = vrot.slane %v3696_v2, 2 }
  0xbb   : > { %639 = vst [vmem:[#allocation4 + $0x70] sm:$0xff] %v3900_v41 }
  0xbc   : > { %760 = vst [vmem:[#allocation4 + $0x4b0] sm:$0xff] %v685_v20  ;;  %v4104_v39 = vsel %vm652_vm1, %v664_v57, %v666_v13  ;;  %v1090_v13 = vld [vmem:[%s5563_s1 + $0x388] sm:$0xff] }
  0xbd   : > { %1159 = vmatmul.f32.gmra.mxu0 %v3812_v47  ;;  %785 = vst [vmem:[#allocation4 + $0x458] sm:$0xff] %v685_v20 }
  0xbe   : > { %1275 = vmatmul.f32.gmra.mxu3 %v551_v63  ;;  %640 = vst [vmem:[#allocation4 + $0x208] sm:$0xff] %v3918_v49 }
  0xbf   : > { %761 = vst [vmem:[#allocation4 + $0x248] sm:$0xff] %v687_v26 }
  0xc0   : > { %1236 = vmatmul.f32.gmra.mxu1 %v519_v3  ;;  %786 = vst [vmem:[#allocation4 + $0x130] sm:$0xff] %v687_v26  ;;  %v1056_v3 = vld [vmem:[%s5563_s1 + $0x278] sm:$0xff] }
  0xc1   : > { %762 = vst [vmem:[#allocation4 + $0x408] sm:$0xff] %v690_v35  ;;  %1433 = vmatpush.msra.mxu0 %v1056_v3  ;;  %v1046_v3 = vld [vmem:[%s5563_s1 + $0x228] sm:$0xff] }
  0xc2   : > { %1331 = vmatmul.f32.gmra.mxu2 %v685_v20  ;;  %787 = vst [vmem:[#allocation4 + $0x238] sm:$0xff] %v690_v35  ;;  %v1051_v20 = vld [vmem:[%s5563_s1 + $0x250] sm:$0xff] }
  0xc3   : > { %763 = vst [vmem:[#allocation4 + $0xb8] sm:$0xff] %v692_v40 }
  0xc4   : > { %788 = vst [vmem:[#allocation4 + $0x538] sm:$0xff] %v692_v40 }
  0xc5   : > { %1162 = vmatmul.f32.gmra.mxu0 %v3711_v6  ;;  %764 = vst [vmem:[#allocation4 + $0x150] sm:$0xff] %v695_v46 }
  0xc6   : > { %1372 = vmatmul.f32.vlgmr.msrb.gmra.mxu3 %v3567_v21  ;;  %789 = vst [vmem:[#allocation4 + $0x598] sm:$0xff] %v695_v46 }
  0xc7   : > { %765 = vst [vmem:[#allocation4 + $0x2a8] sm:$0xff] %v697_v58 }
  0xc8   : > { %1239 = vmatmul.f32.gmra.mxu1 %v521_v10  ;;  %790 = vst [vmem:[#allocation4 + $0x178] sm:$0xff] %v697_v58  ;;  %v1053_v10 = vld [vmem:[%s5563_s1 + $0x260] sm:$0xff] }
  0xc9   : > { %766 = vst [vmem:[#allocation4 + $0xe0] sm:$0xff] %v700_v60 }
  0xca   : > { %1334 = vmatmul.f32.gmra.mxu2 %v687_v26  ;;  %791 = vst [vmem:[#allocation4 + $0x260] sm:$0xff] %v700_v60  ;;  %v1088_v26 = vld [vmem:[%s5563_s1 + $0x378] sm:$0xff] }
  0xcb   : > { %1587 = vmatpush.msrb.mxu2 %v1088_v26  ;;  %v1065_v26 = vld [vmem:[%s5563_s1 + $0x2c0] sm:$0xff]  ;;  %778 = vst [vmem:[#allocation4 + $0x120] sm:$0xff] %v4104_v39 }
  0xcd   : > { %1165 = vmatmul.f32.gmra.mxu0 %v3766_v29  ;;  %1588 = vmatpush.msrb.mxu2 %v1087_v45  ;;  %v1079_v45 = vld [vmem:[%s5563_s1 + $0x330] sm:$0xff] }
  0xce   : > { %1375 = vmatmul.f32.gmra.mxu3 %v3571_v23 }
  0xd0   : > { %1242 = vmatmul.f32.gmra.mxu1 %v3858_v22 }
  0xd2   : > { %1337 = vmatmul.f32.gmra.mxu2 %v690_v35  ;;  %v1103_v35 = vld [vmem:[%s5563_s1 + $0x3f0] sm:$0xff] }
  0xd3   : > { %1665 = vmatpush.msra.mxu3 %v1103_v35  ;;  %v1095_v35 = vld [vmem:[%s5563_s1 + $0x3b0] sm:$0xff] }
  0xd5   : > { %1168 = vmatmul.f32.gmra.mxu0 %v3769_v30  ;;  %1666 = vmatpush.msra.mxu3 %v1102_v17  ;;  %v1077_v17 = vld [vmem:[%s5563_s1 + $0x320] sm:$0xff] }
  0xd6   : > { %1378 = vmatmul.f32.gmra.mxu3 %v3689_v0 }
  0xd8   : > { %1245 = vmatmul.f32.gmra.mxu1 %v3873_v27 }
  0xda   : > { %1340 = vmatmul.f32.gmra.mxu2 %v692_v40  ;;  %v1085_v40 = vld [vmem:[%s5563_s1 + $0x360] sm:$0xff] }
  0xdd   : > { %1171 = vmatmul.f32.gmra.mxu0 %v3817_v53 }
  0xde   : > { %1381 = vmatmul.f32.gmra.mxu3 %v3696_v2  ;;  %v1069_v2 = vld [vmem:[%s5563_s1 + $0x2e0] sm:$0xff] }
  0xe0   : > { %1248 = vmatmul.f32.gmra.mxu1 %v3888_v36 }
  0xe2   : > { %1343 = vmatmul.f32.gmra.mxu2 %v695_v46  ;;  %v663_v46 = vrot.slane %v3689_v0, 2  ;;  %v1047_v0 = vld [vmem:[%s5563_s1 + $0x230] sm:$0xff] }
  0xe5   : > { %1174 = vmatmul.f32.gmra.mxu0 %v3820_v54 }
  0xe6   : > { %1384 = vmatmul.f32.gmra.mxu3 %v3812_v47 }
  0xe8   : > { %1251 = vmatmul.f32.gmra.mxu1 %v3900_v41 }
  0xea   : > { %1346 = vmatmul.f32.gmra.mxu2 %v697_v58  ;;  %v1070_v58 = vld [vmem:[%s5563_s1 + $0x2e8] sm:$0xff] }
  0xeb   : > { %1512 = vmatpush.msrb.mxu1 %v1070_v58 }
  0xed   : > { %1177 = vmatmul.f32.gmra.mxu0 %v3850_v8  ;;  %1513 = vmatpush.msrb.mxu1 %v1069_v2  ;;  %v1075_v2 = vld [vmem:[%s5563_s1 + $0x310] sm:$0xff] }
  0xee   : > { %1387 = vmatmul.f32.gmra.mxu3 %v3711_v6  ;;  %v4172_v6 = vld [vmem:[%s3446_s8 + $0xf8] sm:$0xff] }
  0xf0   : > { %1254 = vmatmul.f32.gmra.mxu1 %v3918_v49 }
  0xf2   : > { %1349 = vmatmul.f32.gmra.mxu2 %v700_v60  ;;  %v4049_v60 = vsel %vm652_vm1, %v663_v46, %v664_v57  ;;  %v1094_v46 = vld [vmem:[%s5563_s1 + $0x3a8] sm:$0xff]  ;;  %v1043_v57 = vld [vmem:[%s5563_s1 + $0x210] sm:$0xff] }
  0xf3   : > { %777 = vst [vmem:[#allocation4 + $0x518] sm:$0xff] %v4049_v60 }
  0xf5   : > { %1180 = vmatmul.f32.gmra.mxu0 %v3455_v50 }
  0xf6   : > { %1390 = vmatmul.f32.gmra.mxu3 %v3766_v29  ;;  %v701_v29 = vrot.slane %v3802_v43, 2  ;;  %v654_v43 = vrot.slane %v3468_v55, 2 }
  0xf8   : > { %v702_v62 = vsel %vm652_vm1, %v699_v61, %v701_v29  ;;  %v3958_v7 = vsel %vm652_vm1, %v654_v43, %v656_v5  ;;  %v1101_v61 = vld [vmem:[%s5563_s1 + $0x3e0] sm:$0xff]  ;;  %v1083_v29 = vld [vmem:[%s5563_s1 + $0x350] sm:$0xff] }
  0xf9   : > { %767 = vst [vmem:[#allocation4 + $0x240] sm:$0xff] %v702_v62  ;;  %1667 = vmatpush.msra.mxu3 %v1101_v61  ;;  %v1081_v5 = vld [vmem:[%s5563_s1 + $0x340] sm:$0xff] }
  0xfa   : > { %1352 = vmatmul.f32.gmra.mxu2 %v702_v62  ;;  %792 = vst [vmem:[#allocation4 + $0x2b0] sm:$0xff] %v702_v62  ;;  %v1100_v62 = vld [vmem:[%s5563_s1 + $0x3d8] sm:$0xff]  ;;  %v1093_v61 = vld [vmem:[%s5563_s1 + $0x3a0] sm:$0xff] }
  0xfb   : > { %1668 = vmatpush.msra.mxu3 %v1100_v62 }
  0xfd   : > { %1183 = vmatmul.f32.gmra.mxu0 %v3471_v56 }
  0xfe   : > { %1393 = vmatmul.f32.gmra.mxu3 %v3769_v30  ;;  %v653_v30 = vrot.slane %v3449_v48, 2  ;;  %v1055_v48 = vld [vmem:[%s5563_s1 + $0x270] sm:$0xff] }
  0xff   : > { %1434 = vmatpush.msra.mxu0 %v1055_v48  ;;  %v1067_v48 = vld [vmem:[%s5563_s1 + $0x2d0] sm:$0xff] }
 0x100   : > { %v3942_v1 = vsel %vm652_vm1, %v653_v30, %v654_v43  ;;  %v1082_v30 = vld [vmem:[%s5563_s1 + $0x348] sm:$0xff]  ;;  %v1099_v43 = vld [vmem:[%s5563_s1 + $0x3d0] sm:$0xff] }
 0x101   : > { %1669 = vmatpush.msra.mxu3 %v1099_v43  ;;  %v1091_v43 = vld [vmem:[%s5563_s1 + $0x390] sm:$0xff] }
 0x105   : > { %1186 = vmatmul.f32.gmra.mxu0 %v3476_v59 }
 0x106   : > { %1396 = vmatmul.f32.gmra.mxu3 %v3817_v53 }
 0x10a   : > { %v3938_v63 = vpop.f32.mrf.mxu0 }
 0x10d   : > { %1189 = vmatmul.f32.gmra.mxu0 %v3594_v31  ;;  %v4033_v42 = vpop.f32.mrf.mxu1 }
 0x10e   : > { %1399 = vmatmul.f32.gmra.mxu3 %v3820_v54  ;;  %v1054_v54 = vld [vmem:[%s5563_s1 + $0x268] sm:$0xff] }
 0x10f   : > { %1435 = vmatpush.msra.mxu0 %v1054_v54  ;;  %v1098_v54 = vld [vmem:[%s5563_s1 + $0x3c8] sm:$0xff] }
 0x110   : > { %1670 = vmatpush.msra.mxu3 %v1098_v54  ;;  %v1073_v54 = vld [vmem:[%s5563_s1 + $0x300] sm:$0xff] }
 0x111   : > { %v3949_v4 = vpop.f32.mrf.mxu3  ;;  %1436 = vmatpush.msra.mxu0 %v1053_v10 }
 0x112   : > { %5568 = vst [vmem:[#allocation5_spill] sm:$0xff] %v3949_v4  ;;  %v3954_v55 = vpop.f32.mrf.mxu0 }
 0x113   : > { %1437 = vmatpush.msra.mxu0 %v1052_v15 }
 0x115   : > { %1192 = vmatmul.f32.gmra.mxu0 %v3597_v32  ;;  %v4095_v15 = vpop.f32.mrf.mxu1 }
 0x116   : > { %1402 = vmatmul.f32.gmra.mxu3 %v3850_v8  ;;  %1438 = vmatpush.msra.mxu0 %v1051_v20  ;;  %v1080_v20 = vld [vmem:[%s5563_s1 + $0x338] sm:$0xff] }
 0x118   : > { %1439 = vmatpush.msra.mxu0 %v1050_v25  ;;  %v1045_v25 = vld [vmem:[%s5563_s1 + $0x220] sm:$0xff] }
 0x119   : > { %v3965_v9 = vpop.f32.mrf.mxu3 }
 0x11a   : > { %5569 = vst [vmem:[#allocation6_spill] sm:$0xff] %v3965_v9  ;;  %v3970_v11 = vpop.f32.mrf.mxu0  ;;  %1440 = vmatpush.msra.mxu0 %v1049_v28  ;;  %v1064_v28 = vld [vmem:[%s5563_s1 + $0x2b8] sm:$0xff] }
 0x11c   : > { %1441 = vmatpush.msra.mxu0 %v1048_v37  ;;  %v1063_v37 = vld [vmem:[%s5563_s1 + $0x2b0] sm:$0xff] }
 0x11d   : > { %1195 = vmatmul.f32.gmra.mxu0 %v3738_v18 }
 0x11e   : > { %1405 = vmatmul.f32.gmra.mxu3 %v3455_v50  ;;  %v3997_v50 = vsel %vm652_vm1, %v659_v14, %v661_v24  ;;  %1442 = vmatpush.msra.mxu0 %v1047_v0  ;;  %v1066_v14 = vld [vmem:[%s5563_s1 + $0x2c8] sm:$0xff]  ;;  %v1097_v24 = vld [vmem:[%s5563_s1 + $0x3c0] sm:$0xff]  ;;  %v4169_v0 = vpop.f32.mrf.mxu1 }
 0x11f   : > { %1671 = vmatpush.msra.mxu3 %v1097_v24  ;;  %v1089_v24 = vld [vmem:[%s5563_s1 + $0x380] sm:$0xff] }
 0x120   : > { %1443 = vmatpush.msra.mxu0 %v1046_v3 }
 0x121   : > { %v3985_v21 = vpop.f32.mrf.mxu3 }
 0x122   : > { %5570 = vst [vmem:[#allocation7_spill] sm:$0xff] %v3985_v21  ;;  %v3987_v23 = vpop.f32.mrf.mxu0  ;;  %1444 = vmatpush.msra.mxu0 %v1045_v25  ;;  %v1120_v25 = vld [vmem:[%s5563_s1 + $0x478] sm:$0xff]  ;;  %v1113_v21 = vld [vmem:[%s5563_s1 + $0x440] sm:$0xff] }
 0x124   : > { %1445 = vmatpush.msra.mxu0 %v1044_v51  ;;  %v812_v51 = vld [vmem:[#allocation4 + $0x28] sm:$0xff] }
 0x125   : > { %1198 = vmatmul.f32.gmra.mxu0 %v3741_v19 }
 0x126   : > { %1408 = vmatmul.f32.gmra.mxu3 %v3471_v56  ;;  %v1086_v56 = vld [vmem:[%s5563_s1 + $0x368] sm:$0xff]  ;;  %1446 = vmatpush.msra.mxu0 %v1043_v57 }
 0x127   : > { %1589 = vmatpush.msrb.mxu2 %v1086_v56  ;;  %v1078_v56 = vld [vmem:[%s5563_s1 + $0x328] sm:$0xff] }
 0x129   : > { %v4016_v34 = vpop.f32.mrf.mxu3  ;;  %1590 = vmatpush.msrb.mxu2 %v1085_v40  ;;  %v668_v40 = vrot.slane %v3812_v47, 2  ;;  %v1062_v47 = vld [vmem:[%s5563_s1 + $0x2a8] sm:$0xff] }
 0x12a   : > { %v4035_v44 = vpop.f32.mrf.mxu0 }
 0x12b   : > { %1591 = vmatpush.msrb.mxu2 %v1084_v52  ;;  %v4159_v58 = vsel %vm652_vm1, %v668_v40, %v669_v12  ;;  %v1076_v52 = vld [vmem:[%s5563_s1 + $0x318] sm:$0xff]  ;;  %v1061_v12 = vld [vmem:[%s5563_s1 + $0x2a0] sm:$0xff]  ;;  %v1118_v40 = vld [vmem:[%s5563_s1 + $0x468] sm:$0xff] }
 0x12c   : > { %779 = vst [vmem:[#allocation4 + $0x90] sm:$0xff] %v4159_v58 }
 0x12d   : > { %1295 = vmatmul.f32.vlgmr.msrb.gmra.mxu0 %v3942_v1  ;;  %1592 = vmatpush.msrb.mxu2 %v1083_v29  ;;  %v1092_v29 = vld [vmem:[%s5563_s1 + $0x398] sm:$0xff] }
 0x12e   : > { %1411 = vmatmul.f32.gmra.mxu3 %v3476_v59  ;;  %v1068_v59 = vld [vmem:[%s5563_s1 + $0x2d8] sm:$0xff] }
 0x12f   : > { %1514 = vmatpush.msrb.mxu1 %v1068_v59  ;;  %1593 = vmatpush.msrb.mxu2 %v1082_v30  ;;  %v1060_v59 = vld [vmem:[%s5563_s1 + $0x298] sm:$0xff]  ;;  %v1074_v30 = vld [vmem:[%s5563_s1 + $0x308] sm:$0xff] }
 0x131   : > { %v4075_v1 = vpop.f32.mrf.mxu3  ;;  %1515 = vmatpush.msrb.mxu1 %v1067_v48  ;;  %1594 = vmatpush.msrb.mxu2 %v1081_v5  ;;  %v1041_v48 = vld [vmem:[%s5563_s1 + $0x200] sm:$0xff]  ;;  %v1059_v5 = vld [vmem:[%s5563_s1 + $0x290] sm:$0xff] }
 0x132   : > { %v4089_v10 = vpop.f32.mrf.mxu0 }
 0x133   : > { %1516 = vmatpush.msrb.mxu1 %v1066_v14  ;;  %1595 = vmatpush.msrb.mxu2 %v1080_v20  ;;  %v803_v14 = vld [vmem:[#allocation4 + $0x3f0] sm:$0xff]  ;;  %v1058_v20 = vld [vmem:[%s5563_s1 + $0x288] sm:$0xff] }
 0x135   : > { %1298 = vmatmul.f32.gmra.mxu0 %v3958_v7  ;;  %v1096_v7 = vld [vmem:[%s5563_s1 + $0x3b8] sm:$0xff]  ;;  %1517 = vmatpush.msrb.mxu1 %v1065_v26  ;;  %v4226_v26 = vpop.f32.mrf.mxu1 }
 0x136   : > { %1414 = vmatmul.f32.gmra.mxu3 %v3594_v31  ;;  %v4122_v31 = vld [vmem:[%s3446_s8 + $0xf0] sm:$0xff]  ;;  %1596 = vmatpush.msrb.mxu2 %v1079_v45 }
 0x137   : > { %1672 = vmatpush.msra.mxu3 %v1096_v7  ;;  %1518 = vmatpush.msrb.mxu1 %v1064_v28  ;;  %v1119_v28 = vld [vmem:[%s5563_s1 + $0x470] sm:$0xff] }
 0x138   : > { %1597 = vmatpush.msrb.mxu2 %v1078_v56 }
 0x139   : > { %v4130_v33 = vpop.f32.mrf.mxu3  ;;  %1673 = vmatpush.msra.mxu3 %v1095_v35  ;;  %1519 = vmatpush.msrb.mxu1 %v1063_v37 }
 0x13a   : > { %v4141_v38 = vpop.f32.mrf.mxu0  ;;  %1598 = vmatpush.msrb.mxu2 %v1077_v17 }
 0x13b   : > { %1674 = vmatpush.msra.mxu3 %v1094_v46  ;;  %1520 = vmatpush.msrb.mxu1 %v1062_v47 }
 0x13c   : > { %1599 = vmatpush.msrb.mxu2 %v1076_v52  ;;  %v801_v52 = vld [vmem:[#allocation4 + $0x20] sm:$0xff] }
 0x13d   : > { %1301 = vmatmul.f32.gmra.mxu0 %v3978_v16  ;;  %1675 = vmatpush.msra.mxu3 %v1093_v61  ;;  %v4240_v35 = vpop.f32.mrf.mxu1  ;;  %v804_v61 = vld [vmem:[#allocation4 + $0x3f8] sm:$0xff] }
 0x13e   : > { %1417 = vmatmul.f32.gmra.mxu3 %v3597_v32  ;;  %v1042_v32 = vld [vmem:[%s5563_s1 + $0x208] sm:$0xff]  ;;  %1521 = vmatpush.msrb.mxu1 %v1061_v12  ;;  %v1117_v12 = vld [vmem:[%s5563_s1 + $0x460] sm:$0xff] }
 0x13f   : > { %1447 = vmatpush.msra.mxu0 %v1042_v32  ;;  %1600 = vmatpush.msrb.mxu2 %v1075_v2  ;;  %v4267_v32 = vpop.f32.mrf.mxu2  ;;  %v839_v2 = vld [vmem:[#allocation4 + $0x330] sm:$0xff] }
 0x140   : > { %1676 = vmatpush.msra.mxu3 %v1092_v29  ;;  %1522 = vmatpush.msrb.mxu1 %v1060_v59  ;;  %5572 = vst [vmem:[#allocation9_spill] sm:$0xff] %v4267_v32 }
 0x141   : > { %v4187_v62 = vpop.f32.mrf.mxu3  ;;  %1601 = vmatpush.msrb.mxu2 %v1074_v30  ;;  %1448 = vmatpush.msra.mxu0 %v1041_v48  ;;  %v813_v48 = vld [vmem:[#allocation4 + $0x498] sm:$0xff] }
 0x142   : > { %v4198_v3 = vpop.f32.mrf.mxu0  ;;  %1677 = vmatpush.msra.mxu3 %v1091_v43  ;;  %1523 = vmatpush.msrb.mxu1 %v1059_v5  ;;  %v810_v43 = vld [vmem:[#allocation4 + $0xe8] sm:$0xff]  ;;  %v848_v5 = vld [vmem:[#allocation4 + $0x2d0] sm:$0xff] }
 0x143   : > { %1602 = vmatpush.msrb.mxu2 %v1073_v54  ;;  %1741 = vmatpush.msrb.mxu0 %v1120_v25  ;;  %v1116_v54 = vld [vmem:[%s5563_s1 + $0x458] sm:$0xff] }
 0x144   : > { %1678 = vmatpush.msra.mxu3 %v1090_v13  ;;  %1603 = vmatmul.f32.vlgmr.msrb.gmra.mxu2 %v803_v14 }
 0x145   : > { %1304 = vmatmul.f32.gmra.mxu0 %v3997_v50  ;;  %1524 = vmatpush.msrb.mxu1 %v1058_v20  ;;  %v4255_v46 = vpop.f32.mrf.mxu1 }
 0x146   : > { %1420 = vmatmul.f32.gmra.mxu3 %v3738_v18  ;;  %v1057_v18 = vld [vmem:[%s5563_s1 + $0x280] sm:$0xff]  ;;  %1742 = vmatpush.msrb.mxu0 %v1119_v28  ;;  %v1115_v28 = vld [vmem:[%s5563_s1 + $0x450] sm:$0xff] }
 0x147   : > { %1679 = vmatpush.msra.mxu3 %v1089_v24  ;;  %1525 = vmatpush.msrb.mxu1 %v1057_v18  ;;  %v4279_v13 = vpop.f32.mrf.mxu2  ;;  %v847_v24 = vld [vmem:[#allocation4 + $0x570] sm:$0xff]  ;;  %v819_v18 = vld [vmem:[#allocation4 + $0x588] sm:$0xff] }
 0x148   : > { %1526 = vmatmul.f32.vlgmr.msrb.gmra.mxu1 %v3978_v16  ;;  %1743 = vmatpush.msrb.mxu0 %v1118_v40  ;;  %5574 = vst [vmem:[#allocation11_spill] sm:$0xff] %v4279_v13 }
 0x149   : > { %v4228_v45 = vpop.f32.mrf.mxu3 }
 0x14a   : > { %v4230_v7 = vpop.f32.mrf.mxu0  ;;  %1744 = vmatpush.msrb.mxu0 %v1117_v12  ;;  %v828_v12 = vld [vmem:[#allocation4 + $0x580] sm:$0xff] }
 0x14b   : > { %5571 = vst [vmem:[#allocation8_spill] sm:$0xff] %v4230_v7  ;;  %v922_v7 = vld [vmem:[#allocation4 + $0x178] sm:$0xff] }
 0x14c   : > { %1606 = vmatmul.f32.gmra.mxu2 %v812_v51  ;;  %1745 = vmatpush.msrb.mxu0 %v1116_v54  ;;  %v822_v51 = vld [vmem:[#allocation4 + $0x370] sm:$0xff] }
 0x14d   : > { %1307 = vmatmul.f32.gmra.mxu0 %v4049_v60  ;;  %v4269_v29 = vpop.f32.mrf.mxu1 }
 0x14e   : > { %1423 = vmatmul.f32.gmra.mxu3 %v3741_v19  ;;  %v821_v19 = vld [vmem:[#allocation4 + $0x68] sm:$0xff]  ;;  %1746 = vmatpush.msrb.mxu0 %v1115_v28  ;;  %v4307_v28 = vld [vmem:[%s5564_s2] ss:$0 sm:$0xff] }
 0x150   : > { %1529 = vmatmul.f32.gmra.mxu1 %v3997_v50  ;;  %v830_v50 = vld [vmem:[#allocation4 + $0x558] sm:$0xff] }
 0x151   : > { %v4238_v56 = vpop.f32.mrf.mxu3 }
 0x152   : > { %v4242_v37 = vpop.f32.mrf.mxu0 }
 0x154   : > { %1609 = vmatmul.f32.gmra.mxu2 %v821_v19  ;;  %v1323_v19 = vpop.f32.mrf.mxu2 }
 0x155   : > { %1310 = vmatmul.f32.gmra.mxu0 %v4104_v39  ;;  %v4281_v14 = vpop.f32.mrf.mxu1 }
 0x156   : > { %1426 = vmatmul.f32.gmra.mxu3 %v4122_v31  ;;  %5575 = vst [vmem:[#allocation12_spill] sm:$0xff] %v4281_v14  ;;  %v931_v14 = vld [vmem:[#allocation4 + $0x260] sm:$0xff] }
 0x158   : > { %1532 = vmatmul.f32.gmra.mxu1 %v4049_v60 }
 0x159   : > { %v4247_v16 = vpop.f32.mrf.mxu3 }
 0x15a   : > { %v4252_v17 = vpop.f32.mrf.mxu0 }
 0x15c   : > { %1612 = vmatmul.f32.gmra.mxu2 %v830_v50  ;;  %v856_v50 = vld [vmem:[#allocation4 + $0x1e8] sm:$0xff]  ;;  %v1326_v54 = vpop.f32.mrf.mxu2 }
 0x15d   : > { %1313 = vmatmul.f32.gmra.mxu0 %v4159_v58 }
 0x15e   : > { %1429 = vmatmul.f32.gmra.mxu3 %v4172_v6 }
 0x160   : > { %1535 = vmatmul.f32.gmra.mxu1 %v4104_v39 }
 0x161   : > { %v4259_v57 = vpop.f32.mrf.mxu3 }
 0x162   : > { %v4261_v47 = vpop.f32.mrf.mxu0 }
 0x164   : > { %1615 = vmatmul.f32.gmra.mxu2 %v839_v2  ;;  %v831_v2 = vld [vmem:[#allocation4 + $0x1a0] sm:$0xff] }
 0x165   : > { %1449 = vmatmul.f32.vlgmr.msra.gmra.mxu0 %v801_v52  ;;  %v4293_v52 = vpop.f32.mrf.mxu1 }
 0x166   : > { %1680 = vmatmul.f32.vlgmr.msra.gmra.mxu3 %v804_v61  ;;  %5577 = vst [vmem:[#allocation14_spill] sm:$0xff] %v4293_v52  ;;  %v945_v52 = vld [vmem:[#allocation4 + $0x228] sm:$0xff] }
 0x168   : > { %1538 = vmatmul.f32.gmra.mxu1 %v4159_v58 }
 0x169   : > { %v4271_v59 = vpop.f32.mrf.mxu3 }
 0x16a   : > { %v4273_v30 = vpop.f32.mrf.mxu0 }
 0x16b   : > { %5573 = vst [vmem:[#allocation10_spill] sm:$0xff] %v4273_v30 }
 0x16c   : > { %1618 = vmatmul.f32.gmra.mxu2 %v848_v5  ;;  %v865_v5 = vld [vmem:[#allocation4 + $0xb0] sm:$0xff] }
 0x16d   : > { %1452 = vmatmul.f32.gmra.mxu0 %v810_v43  ;;  %v866_v43 = vld [vmem:[#allocation4 + $0x2f8] sm:$0xff] }
 0x16e   : > { %1683 = vmatmul.f32.gmra.mxu3 %v813_v48 }
 0x170   : > { %1541 = vmatmul.f32.gmra.mxu1 %v847_v24 }
 0x171   : > { %v4283_v20 = vpop.f32.mrf.mxu3 }
 0x172   : > { %v4285_v25 = vpop.f32.mrf.mxu0 }
 0x173   : > { %5576 = vst [vmem:[#allocation13_spill] sm:$0xff] %v4285_v25 }
 0x174   : > { %1621 = vmatmul.f32.gmra.mxu2 %v3817_v53  ;;  %v1114_v53 = vld [vmem:[%s5563_s1 + $0x448] sm:$0xff] }
 0x175   : > { %1455 = vmatmul.f32.gmra.mxu0 %v819_v18  ;;  %v837_v18 = vld [vmem:[#allocation4 + $0x368] sm:$0xff] }
 0x176   : > { %1686 = vmatmul.f32.gmra.mxu3 %v822_v51  ;;  %1747 = vmatpush.msrb.mxu0 %v1114_v53  ;;  %v1246_v51 = vpop.f32.mrf.mxu1 }
 0x178   : > { %1544 = vmatmul.f32.gmra.mxu1 %v856_v50  ;;  %v1170_v50 = vadd.f32 %v4307_v28, %v4242_v37  ;;  %1748 = vmatpush.msrb.mxu0 %v1113_v21  ;;  %v1112_v21 = vld [vmem:[%s5563_s1 + $0x438] sm:$0xff] }
 0x179   : > { %v4290_v40 = vpop.f32.mrf.mxu3 }
 0x17a   : > { %v4295_v61 = vpop.f32.mrf.mxu0  ;;  %v1247_v53 = vadd.f32 %v1246_v51, %v1170_v50  ;;  %1749 = vmatpush.msrb.mxu0 %v1112_v21 }
 0x17b   : > { %5578 = vst [vmem:[#allocation15_spill] sm:$0xff] %v4295_v61  ;;  %v883_v61 = vld [vmem:[#allocation4 + $0x1f8] sm:$0xff] }
 0x17c   : > { %1624 = vmatmul.f32.gmra.mxu2 %v866_v43 }
 0x17d   : > { %1458 = vmatmul.f32.gmra.mxu0 %v828_v12 }
 0x17e   : > { %1689 = vmatmul.f32.gmra.mxu3 %v831_v2  ;;  %v874_v2 = vld [vmem:[#allocation4 + $0x4d8] sm:$0xff]  ;;  %v1249_v37 = vpop.f32.mrf.mxu1 }
 0x180   : > { %1547 = vmatmul.f32.gmra.mxu1 %v865_v5  ;;  %v846_v5 = vld [vmem:[#allocation4 + $0x1b0] sm:$0xff] }
 0x181   : > { %v4297_v48 = vpop.f32.mrf.mxu3 }
 0x182   : > { %5579 = vst [vmem:[#allocation16_spill] sm:$0xff] %v4297_v48  ;;  %v4302_v24 = vpop.f32.mrf.mxu0 }
 0x183   : > { %5580 = vst [vmem:[#allocation17_spill] sm:$0xff] %v4302_v24  ;;  %v1324_v24 = vadd.f32 %v1323_v19, %v1247_v53  ;;  %v892_v53 = vld [vmem:[#allocation4 + $0x4b0] sm:$0xff] }
 0x184   : > { %1627 = vmatmul.f32.gmra.mxu2 %v3850_v8  ;;  %v1173_v8 = vadd.f32 %v4307_v28, %v4252_v17 }
 0x185   : > { %1461 = vmatmul.f32.gmra.mxu0 %v837_v18  ;;  %v1329_v18 = vpop.f32.mrf.mxu2 }
 0x186   : > { %1692 = vmatmul.f32.gmra.mxu3 %v3858_v22  ;;  %v884_v22 = vld [vmem:[#allocation4 + $0x478] sm:$0xff]  ;;  %v1250_v4 = vadd.f32 %v1249_v37, %v1173_v8 }
 0x187   : > { %v902_v8 = vld [vmem:[#allocation4 + $0x138] sm:$0xff] }
 0x188   : > { %1550 = vmatmul.f32.gmra.mxu1 %v874_v2  ;;  %v855_v2 = vld [vmem:[#allocation4 + $0x278] sm:$0xff]  ;;  %v1327_v17 = vadd.f32 %v1326_v54, %v1250_v4  ;;  %v1111_v4 = vld [vmem:[%s5563_s1 + $0x430] sm:$0xff] }
 0x189   : > { %v4312_v12 = vpop.f32.mrf.mxu3  ;;  %1750 = vmatpush.msrb.mxu0 %v1111_v4  ;;  %v920_v4 = vld [vmem:[#allocation4 + $0x390] sm:$0xff] }
 0x18a   : > { %5581 = vst [vmem:[#allocation18_spill] sm:$0xff] %v4312_v12  ;;  %v4315_v43 = vpop.f32.mrf.mxu0 }
 0x18c   : > { %1630 = vmatmul.f32.gmra.mxu2 %v884_v22 }
 0x18d   : > { %1464 = vmatmul.f32.gmra.mxu0 %v846_v5  ;;  %v4331_v19 = vpop.f32.mrf.mxu2 }
 0x18e   : > { %1695 = vmatmul.f32.gmra.mxu3 %v3873_v27  ;;  %v893_v27 = vld [vmem:[#allocation4 + $0x528] sm:$0xff]  ;;  %5583 = vst [vmem:[#allocation20_spill] sm:$0xff] %v4331_v19 }
 0x190   : > { %1553 = vmatmul.f32.gmra.mxu1 %v883_v61 }
 0x191   : > { %v1400_v9 = vpop.f32.mrf.mxu3 }
 0x192   : > { %v4323_v51 = vadd.f32 %v1400_v9, %v1324_v24  ;;  %v4325_v50 = vpop.f32.mrf.mxu0  ;;  %v1176_v9 = vadd.f32 %v4307_v28, %v4261_v47  ;;  %v1252_v24 = vpop.f32.mrf.mxu1 }
 0x194   : > { %5582 = vst [vmem:[#allocation19_spill] sm:$0xff] %v4323_v51  ;;  %1633 = vmatmul.f32.gmra.mxu2 %v893_v27  ;;  %v1253_v37 = vadd.f32 %v1252_v24, %v1176_v9  ;;  %v901_v27 = vld [vmem:[#allocation4 + $0x248] sm:$0xff]  ;;  %v873_v9 = vld [vmem:[#allocation4 + $0xc0] sm:$0xff] }
 0x195   : > { %1467 = vmatmul.f32.gmra.mxu0 %v855_v2  ;;  %v4343_v54 = vpop.f32.mrf.mxu2 }
 0x196   : > { %1698 = vmatmul.f32.gmra.mxu3 %v3888_v36  ;;  %v864_v36 = vld [vmem:[#allocation4 + $0x398] sm:$0xff]  ;;  %v1330_v47 = vadd.f32 %v1329_v18, %v1253_v37  ;;  %5585 = vst [vmem:[#allocation22_spill] sm:$0xff] %v4343_v54  ;;  %v909_v54 = vld [vmem:[#allocation4 + $0x2a0] sm:$0xff] }
 0x197   : > { %v1110_v18 = vld [vmem:[%s5563_s1 + $0x428] sm:$0xff] }
 0x198   : > { %1556 = vmatmul.f32.gmra.mxu1 %v892_v53  ;;  %v882_v37 = vld [vmem:[#allocation4 + $0x3d8] sm:$0xff]  ;;  %1751 = vmatpush.msrb.mxu0 %v1110_v18 }
 0x199   : > { %v1403_v5 = vpop.f32.mrf.mxu3 }
 0x19a   : > { %v4335_v61 = vadd.f32 %v1403_v5, %v1327_v17  ;;  %v4337_v22 = vpop.f32.mrf.mxu0  ;;  %v910_v5 = vld [vmem:[#allocation4 + $0x408] sm:$0xff] }
 0x19c   : > { %5584 = vst [vmem:[#allocation21_spill] sm:$0xff] %v4335_v61  ;;  %1636 = vmatmul.f32.gmra.mxu2 %v902_v8  ;;  %v885_v8 = vld [vmem:[#allocation4 + $0x118] sm:$0xff]  ;;  %v744_v61 = vrot.slane %v4172_v6, 2 }
 0x19d   : > { %1470 = vmatmul.f32.gmra.mxu0 %v864_v36  ;;  %v4355_v53 = vpop.f32.mrf.mxu2 }
 0x19e   : > { %1701 = vmatmul.f32.gmra.mxu3 %v3900_v41  ;;  %v911_v41 = vld [vmem:[#allocation4 + $0x310] sm:$0xff]  ;;  %5588 = vst [vmem:[#allocation25_spill] sm:$0xff] %v4355_v53 }
 0x1a0   : > { %1559 = vmatmul.f32.gmra.mxu1 %v901_v27 }
 0x1a1   : > { %v1406_v2 = vpop.f32.mrf.mxu3 }
 0x1a2   : > { %v4345_v21 = vadd.f32 %v1406_v2, %v1330_v47  ;;  %v4347_v17 = vpop.f32.mrf.mxu0  ;;  %v919_v2 = vld [vmem:[#allocation4 + $0xb8] sm:$0xff] }
 0x1a3   : > { %v1200_v12 = vadd.f32 %v4307_v28, %v4347_v17  ;;  %v1105_v17 = vld [vmem:[%s5563_s1 + $0x400] sm:$0xff] }
 0x1a4   : > { %5586 = vst [vmem:[#allocation23_spill] sm:$0xff] %v4345_v21  ;;  %1639 = vmatmul.f32.gmra.mxu2 %v911_v41  ;;  %v1109_v41 = vld [vmem:[%s5563_s1 + $0x420] sm:$0xff]  ;;  %v946_v21 = vld [vmem:[#allocation4 + $0xe0] sm:$0xff] }
 0x1a5   : > { %1473 = vmatmul.f32.gmra.mxu0 %v873_v9  ;;  %v894_v9 = vld [vmem:[#allocation4 + $0x560] sm:$0xff]  ;;  %v4366_v53 = vpop.f32.mrf.mxu2 }
 0x1a6   : > { %1704 = vmatmul.f32.gmra.mxu3 %v3918_v49  ;;  %5590 = vst [vmem:[#allocation27_spill] sm:$0xff] %v4366_v53  ;;  %1752 = vmatpush.msrb.mxu0 %v1109_v41  ;;  %v1108_v41 = vld [vmem:[%s5563_s1 + $0x418] sm:$0xff] }
 0x1a8   : > { %1562 = vmatmul.f32.gmra.mxu1 %v910_v5  ;;  %v929_v5 = vld [vmem:[#allocation4 + $0x438] sm:$0xff]  ;;  %1753 = vmatpush.msrb.mxu0 %v1108_v41 }
 0x1a9   : > { %v4350_v24 = vpop.f32.mrf.mxu3 }
 0x1aa   : > { %5587 = vst [vmem:[#allocation24_spill] sm:$0xff] %v4350_v24  ;;  %v4357_v36 = vpop.f32.mrf.mxu0 }
 0x1ac   : > { %1642 = vmatmul.f32.gmra.mxu2 %v920_v4  ;;  %v900_v4 = vld [vmem:[#allocation4 + $0x468] sm:$0xff] }
 0x1ad   : > { %1476 = vmatmul.f32.gmra.mxu0 %v882_v37  ;;  %v928_v37 = vld [vmem:[#allocation4 + $0x150] sm:$0xff]  ;;  %v1344_v53 = vpop.f32.mrf.mxu2 }
 0x1ae   : > { %1707 = vmatmul.f32.gmra.mxu3 %v885_v8 }
 0x1b0   : > { %1565 = vmatmul.f32.gmra.mxu1 %v919_v2  ;;  %v938_v2 = vld [vmem:[#allocation4 + $0x108] sm:$0xff] }
 0x1b1   : > { %v4359_v47 = vpop.f32.mrf.mxu3 }
 0x1b2   : > { %5589 = vst [vmem:[#allocation26_spill] sm:$0xff] %v4359_v47  ;;  %v4361_v27 = vpop.f32.mrf.mxu0  ;;  %v903_v47 = vld [vmem:[#allocation4 + $0x448] sm:$0xff] }
 0x1b4   : > { %1645 = vmatmul.f32.gmra.mxu2 %v929_v5  ;;  %v937_v5 = vld [vmem:[#allocation4 + $0x2a8] sm:$0xff] }
 0x1b5   : > { %1479 = vmatmul.f32.gmra.mxu0 %v3918_v49  ;;  %v1191_v49 = vadd.f32 %v4307_v28, %v4315_v43  ;;  %v1347_v25 = vpop.f32.mrf.mxu2 }
 0x1b6   : > { %1710 = vmatmul.f32.gmra.mxu3 %v894_v9 }
 0x1b7   : > { %v1268_v24 = vadd.f32 %v4016_v34, %v1191_v49  ;;  %v407_v49 = vld [vmem:[%s3446_s8 + $0x100] sm:$0x3] }
 0x1b8   : > { %1568 = vmatmul.f32.gmra.mxu1 %v928_v37  ;;  %v912_v37 = vld [vmem:[#allocation4 + $0x298] sm:$0xff] }
 0x1b9   : > { %v4369_v18 = vpop.f32.mrf.mxu3  ;;  %v1345_v43 = vadd.f32 %v1344_v53, %v1268_v24  ;;  %v921_v24 = vld [vmem:[#allocation4 + $0x1b8] sm:$0xff] }
 0x1ba   : > { %5591 = vst [vmem:[#allocation28_spill] sm:$0xff] %v4369_v18  ;;  %v4371_v8 = vpop.f32.mrf.mxu0 }
 0x1bc   : > { %1648 = vmatmul.f32.gmra.mxu2 %v938_v2  ;;  %v1194_v2 = vadd.f32 %v4307_v28, %v4325_v50  ;;  %v598_v50 = vrot.slane %v407_v49, 1 }
 0x1bd   : > { %1482 = vmatmul.f32.gmra.mxu0 %v900_v4  ;;  %v596_v4 = vrot.slane %v4172_v6, 1 }
 0x1be   : > { %1713 = vmatmul.f32.gmra.mxu3 %v903_v47  ;;  %v595_v47 = vrot.slane %v4122_v31, 1  ;;  %v1271_v53 = vadd.f32 %v4075_v1, %v1194_v2  ;;  %v1106_v1 = vld [vmem:[%s5563_s1 + $0x408] sm:$0xff]  ;;  %v1350_v2 = vpop.f32.mrf.mxu2 }
 0x1c0   : > { %1571 = vmatmul.f32.gmra.mxu1 %v937_v5  ;;  %v4386_v41 = vsel %vm501_vm0, %v595_v47, %v596_v4  ;;  %v1348_v47 = vadd.f32 %v1347_v25, %v1271_v53  ;;  %v927_v25 = vld [vmem:[#allocation4 + $0x1e0] sm:$0xff] }
 0x1c1   : > { %v4378_v9 = vpop.f32.mrf.mxu3 }
 0x1c2   : > { %5592 = vst [vmem:[#allocation29_spill] sm:$0xff] %v4378_v9  ;;  %v4380_v18 = vpop.f32.mrf.mxu0  ;;  %v1107_v9 = vld [vmem:[%s5563_s1 + $0x410] sm:$0xff] }
 0x1c3   : > { %1754 = vmatpush.msrb.mxu0 %v1107_v9 }
 0x1c4   : > { %1651 = vmatmul.f32.gmra.mxu2 %v4122_v31 }
 0x1c5   : > { %1485 = vmatmul.f32.gmra.mxu0 %v909_v54  ;;  %v918_v54 = vld [vmem:[#allocation4 + $0x3c8] sm:$0xff] }
 0x1c6   : > { %1716 = vmatmul.f32.gmra.mxu3 %v912_v37  ;;  %v4401_v37 = vsel %vm501_vm0, %v596_v4, %v598_v50  ;;  %v4415_v4 = vld [vmem:[%s3446_s8 + $0x110] sm:$0xff]  ;;  %1755 = vmatpush.msrb.mxu0 %v1106_v1 }
 0x1c7   : > { %v626_v50 = vrot.slane %v4415_v4, 1 }
 0x1c8   : > { %1574 = vmatmul.f32.gmra.mxu1 %v946_v21  ;;  %v4412_v21 = vld [vmem:[%s3446_s8 + $0x108] sm:$0xff]  ;;  %1756 = vmatpush.msrb.mxu0 %v1105_v17 }
 0x1c9   : > { %v1421_v19 = vpop.f32.mrf.mxu3 }
 0x1ca   : > { %v4394_v34 = vadd.f32 %v1421_v19, %v1345_v43  ;;  %v4397_v5 = vpop.f32.mrf.mxu0  ;;  %v1197_v19 = vadd.f32 %v4307_v28, %v4337_v22  ;;  %v955_v43 = vld [vmem:[#allocation4 + $0x240] sm:$0xff]  ;;  %v625_v22 = vrot.slane %v4412_v21, 1 }
 0x1cc   : > { %1654 = vmatmul.f32.gmra.mxu2 %v4172_v6  ;;  %v1274_v53 = vadd.f32 %v4130_v33, %v1197_v19  ;;  %v4434_v19 = vld [vmem:[%s3446_s8 + $0x118] sm:$0x3]  ;;  %v939_v6 = vld [vmem:[#allocation4 + $0x170] sm:$0xff] }
 0x1cd   : > { %1488 = vmatmul.f32.gmra.mxu0 %v918_v54 }
 0x1ce   : > { %1719 = vmatmul.f32.gmra.mxu3 %v921_v24  ;;  %v930_v24 = vld [vmem:[#allocation4 + $0x268] sm:$0xff]  ;;  %v1351_v1 = vadd.f32 %v1350_v2, %v1274_v53  ;;  %v1353_v2 = vpop.f32.mrf.mxu2 }
 0x1d0   : > { %1577 = vmatmul.f32.gmra.mxu1 %v955_v43 }
 0x1d1   : > { %v1424_v9 = vpop.f32.mrf.mxu3 }
 0x1d2   : > { %v4406_v30 = vadd.f32 %v1424_v9, %v1348_v47  ;;  %v4417_v54 = vpop.f32.mrf.mxu0  ;;  %v627_v47 = vsel %vm501_vm0, %v625_v22, %v626_v50  ;;  %v743_v9 = vrot.slane %v4122_v31, 2  ;;  %v936_v31 = vld [vmem:[#allocation4 + $0x288] sm:$0xff]  ;;  %v746_v22 = vrot.slane %v407_v49, 2 }
 0x1d4   : > { %v4426_v51 = vsel %vm652_vm1, %v743_v9, %v744_v61  ;;  %1657 = vmatmul.f32.gmra.mxu2 %v4412_v21  ;;  %v4446_v53 = vsel %vm652_vm1, %v744_v61, %v746_v22  ;;  %v868_v22 = vld [vmem:[#allocation4 + $0x308] sm:$0xff] }
 0x1d5   : > { %1491 = vmatmul.f32.gmra.mxu0 %v927_v25  ;;  %v628_v25 = vrot.slane %v4434_v19, 1 }
 0x1d6   : > { %1722 = vmatmul.f32.gmra.mxu3 %v930_v24  ;;  %v1277_v24 = vadd.f32 %v4187_v62, %v1200_v12 }
 0x1d8   : > { %1580 = vmatmul.f32.gmra.mxu1 %v4426_v51  ;;  %v1354_v9 = vadd.f32 %v1353_v2, %v1277_v24  ;;  %v850_v2 = vld [vmem:[#allocation4 + $0x510] sm:$0xff] }
 0x1d9   : > { %v1427_v13 = vpop.f32.mrf.mxu3 }
 0x1da   : > { %v4431_v33 = vadd.f32 %v1427_v13, %v1351_v1  ;;  %v4436_v43 = vpop.f32.mrf.mxu0  ;;  %v629_v13 = vsel %vm501_vm0, %v626_v50, %v628_v25  ;;  %v954_v50 = vld [vmem:[#allocation4 + $0x388] sm:$0xff] }
 0x1dc   : > { %1660 = vmatmul.f32.gmra.mxu2 %v4415_v4 }
 0x1dd   : > { %1494 = vmatmul.f32.gmra.mxu0 %v936_v31 }
 0x1de   : > { %1725 = vmatmul.f32.gmra.mxu3 %v939_v6 }
 0x1e0   : > { %1583 = vmatmul.f32.gmra.mxu1 %v4446_v53 }
 0x1e1   : > { %v1430_v1 = vpop.f32.mrf.mxu3 }
 0x1e2   : > { %v4449_v62 = vadd.f32 %v1430_v1, %v1354_v9  ;;  %v4451_v12 = vpop.f32.mrf.mxu0  ;;  %v877_v9 = vld [vmem:[#allocation4 + $0x458] sm:$0xff]  ;;  %v4485_v1 = vpop.f32.mrf.mxu1 }
 0x1e3   : > { %5600 = vst [vmem:[#allocation37_spill] sm:$0xff] %v4485_v1  ;;  %v913_v1 = vld [vmem:[#allocation4 + $0x598] sm:$0xff] }
 0x1e5   : > { %1497 = vmatmul.f32.gmra.mxu0 %v945_v52 }
 0x1e6   : > { %1728 = vmatmul.f32.gmra.mxu3 %v4386_v41 }
 0x1ea   : > { %v4455_v49 = vpop.f32.mrf.mxu0 }
 0x1ed   : > { %1500 = vmatmul.f32.gmra.mxu0 %v954_v50 }
 0x1ee   : > { %1731 = vmatmul.f32.gmra.mxu3 %v4401_v37 }
 0x1f2   : > { %v4458_v61 = vpop.f32.mrf.mxu0 }
 0x1f5   : > { %1503 = vmatmul.f32.gmra.mxu0 %v4386_v41  ;;  %v832_v41 = vld [vmem:[#allocation4 + $0x348] sm:$0xff] }
 0x1f6   : > { %1734 = vmatmul.f32.gmra.mxu3 %v627_v47 }
 0x1fa   : > { %v4461_v31 = vpop.f32.mrf.mxu0 }
 0x1fd   : > { %1506 = vmatmul.f32.gmra.mxu0 %v4401_v37  ;;  %v841_v37 = vld [vmem:[#allocation4 + $0x198] sm:$0xff] }
 0x1fe   : > { %1737 = vmatmul.f32.gmra.mxu3 %v629_v13  ;;  %v859_v13 = vld [vmem:[#allocation4 + $0x2d8] sm:$0xff] }
 0x202   : > { %v4464_v6 = vpop.f32.mrf.mxu0 }
 0x205   : > { %1757 = vmatmul.f32.vlgmr.msrb.gmra.mxu0 %v4049_v60 }
 0x20a   : > { %v4467_v52 = vpop.f32.mrf.mxu0 }
 0x20d   : > { %1760 = vmatmul.f32.gmra.mxu0 %v4104_v39 }
 0x212   : > { %v4470_v25 = vpop.f32.mrf.mxu0 }
 0x213   : > { %5593 = vst [vmem:[#allocation30_spill] sm:$0xff] %v4470_v25 }
 0x215   : > { %1763 = vmatmul.f32.gmra.mxu0 %v4159_v58 }
 0x21a   : > { %v4473_v24 = vpop.f32.mrf.mxu0 }
 0x21b   : > { %5594 = vst [vmem:[#allocation31_spill] sm:$0xff] %v4473_v24 }
 0x21d   : > { %1766 = vmatmul.f32.gmra.mxu0 %v832_v41  ;;  %v886_v41 = vld [vmem:[#allocation4 + $0x130] sm:$0xff] }
 0x222   : > { %v4475_v47 = vpop.f32.mrf.mxu0 }
 0x223   : > { %5595 = vst [vmem:[#allocation32_spill] sm:$0xff] %v4475_v47 }
 0x225   : > { %1769 = vmatmul.f32.gmra.mxu0 %v841_v37  ;;  %v1527_v37 = vpop.f32.mrf.mxu1 }
 0x22a   : > { %v4477_v17 = vpop.f32.mrf.mxu0 }
 0x22b   : > { %5596 = vst [vmem:[#allocation33_spill] sm:$0xff] %v4477_v17  ;;  %v1604_v17 = vpop.f32.mrf.mxu2 }
 0x22d   : > { %1772 = vmatmul.f32.gmra.mxu0 %v850_v2 }
 0x232   : > { %v4479_v60 = vpop.f32.mrf.mxu0 }
 0x233   : > { %5597 = vst [vmem:[#allocation34_spill] sm:$0xff] %v4479_v60  ;;  %v895_v60 = vld [vmem:[#allocation4 + $0x238] sm:$0xff] }
 0x235   : > { %1775 = vmatmul.f32.gmra.mxu0 %v859_v13  ;;  %v1681_v13 = vpop.f32.mrf.mxu3 }
 0x23a   : > { %v4481_v39 = vpop.f32.mrf.mxu0 }
 0x23b   : > { %5598 = vst [vmem:[#allocation35_spill] sm:$0xff] %v4481_v39  ;;  %v1530_v39 = vpop.f32.mrf.mxu1 }
 0x23d   : > { %1778 = vmatmul.f32.gmra.mxu0 %v868_v22  ;;  %v904_v22 = vld [vmem:[#allocation4 + $0x538] sm:$0xff] }
 0x242   : > { %v4483_v58 = vpop.f32.mrf.mxu0 }
 0x243   : > { %5599 = vst [vmem:[#allocation36_spill] sm:$0xff] %v4483_v58  ;;  %v1607_v58 = vpop.f32.mrf.mxu2 }
 0x245   : > { %1781 = vmatmul.f32.gmra.mxu0 %v877_v9  ;;  %v1684_v9 = vpop.f32.mrf.mxu3 }
 0x24a   : > { %v4487_v50 = vpop.f32.mrf.mxu0 }
 0x24b   : > { %5601 = vst [vmem:[#allocation38_spill] sm:$0xff] %v4487_v50  ;;  %v4496_v48 = vpop.f32.mrf.mxu2 }
 0x24d   : > { %1784 = vmatmul.f32.gmra.mxu0 %v886_v41  ;;  %v1533_v41 = vpop.f32.mrf.mxu1 }
 0x252   : > { %v4489_v2 = vpop.f32.mrf.mxu0 }
 0x253   : > { %5602 = vst [vmem:[#allocation39_spill] sm:$0xff] %v4489_v2 }
 0x255   : > { %1787 = vmatmul.f32.gmra.mxu0 %v895_v60  ;;  %v1143_v60 = vadd.f32 %v4307_v28, %v3938_v63  ;;  %v4506_v25 = vpop.f32.mrf.mxu1  ;;  %v4512_v63 = vpop.f32.mrf.mxu2 }
 0x257   : > { %v1220_v32 = vadd.f32 %v4033_v42, %v1143_v60 }
 0x25a   : > { %v4491_v47 = vpop.f32.mrf.mxu0 }
 0x25b   : > { %5603 = vst [vmem:[#allocation40_spill] sm:$0xff] %v4491_v47 }
 0x25d   : > { %1790 = vmatmul.f32.gmra.mxu0 %v904_v22  ;;  %v4503_v22 = vpop.f32.mrf.mxu3  ;;  %v4527_v60 = vpop.f32.mrf.mxu1 }
 0x262   : > { %v1498_v24 = vpop.f32.mrf.mxu0 }
 0x263   : > { %v4494_v50 = vadd.f32 %v1498_v24, %v4394_v34  ;;  %v1297_v34 = vadd.f32 %v4357_v36, %v1220_v32  ;;  %v770_v24 = vrot.slane %v4412_v21, 2 }
 0x265   : > { %5604 = vst [vmem:[#allocation41_spill] sm:$0xff] %v4494_v50  ;;  %1793 = vmatmul.f32.gmra.mxu0 %v913_v1  ;;  %v1146_v1 = vadd.f32 %v4307_v28, %v3954_v55  ;;  %v4524_v55 = vpop.f32.mrf.mxu3 }
 0x267   : > { %v1223_v32 = vadd.f32 %v4095_v15, %v1146_v1 }
 0x269   : > { %v1300_v21 = vadd.f32 %v4361_v27, %v1223_v32  ;;  %v1542_v32 = vpop.f32.mrf.mxu1 }
 0x26a   : > { %v1501_v2 = vpop.f32.mrf.mxu0 }
 0x26b   : > { %v4501_v47 = vadd.f32 %v1501_v2, %v4406_v30  ;;  %v771_v30 = vrot.slane %v4415_v4, 2  ;;  %v1374_v2 = vadd.f32 %v4228_v45, %v1297_v34  ;;  %v1149_v45 = vadd.f32 %v4307_v28, %v3970_v11 }
 0x26c   : > { %v773_v34 = vrot.slane %v4434_v19, 2 }
 0x26d   : > { %1796 = vmatmul.f32.gmra.mxu0 %v922_v7  ;;  %v4520_v7 = vsel %vm652_vm1, %v770_v24, %v771_v30  ;;  %v1451_v36 = vadd.f32 %v4451_v12, %v1374_v2  ;;  %v1377_v24 = vadd.f32 %v4238_v56, %v1300_v21  ;;  %v1226_v27 = vadd.f32 %v4169_v0, %v1149_v45 }
 0x26e   : > { %v4537_v12 = vsel %vm652_vm1, %v771_v30, %v773_v34  ;;  %v1152_v56 = vadd.f32 %v4307_v28, %v3987_v23  ;;  %v1155_v23 = vadd.f32 %v4307_v28, %v4035_v44 }
 0x26f   : > { %v1528_v4 = vadd.f32 %v1527_v37, %v1451_v36  ;;  %v1454_v2 = vadd.f32 %v4455_v49, %v1377_v24  ;;  %v1303_v11 = vadd.f32 %v4371_v8, %v1226_v27  ;;  %v4542_v37 = vpop.f32.mrf.mxu3 }
 0x270   : > { %v1229_v0 = vadd.f32 %v4226_v26, %v1152_v56 }
 0x271   : > { %v1605_v1 = vadd.f32 %v1604_v17, %v1528_v4  ;;  %v1380_v30 = vadd.f32 %v4247_v16, %v1303_v11 }
 0x272   : > { %v1504_v50 = vpop.f32.mrf.mxu0  ;;  %v1306_v4 = vadd.f32 %v4380_v18, %v1229_v0 }
 0x273   : > { %v4517_v42 = vadd.f32 %v1504_v50, %v4431_v33  ;;  %v940_v50 = vld [vmem:[#allocation4 + $0x2b0] sm:$0xff]  ;;  %v1682_v19 = vadd.f32 %v1681_v13, %v1605_v1  ;;  %v1457_v49 = vadd.f32 %v4458_v61, %v1380_v30  ;;  %v1232_v61 = vadd.f32 %v4240_v35, %v1155_v23  ;;  %v5607_v23 = vld [vmem:[#allocation9_spill] sm:$0xff] }
 0x275   : > { %1799 = vmatmul.f32.gmra.mxu0 %v931_v14  ;;  %v1616_v14 = vpop.f32.mrf.mxu2  ;;  %v1534_v13 = vadd.f32 %v1533_v41, %v1457_v49  ;;  %v1309_v18 = vadd.f32 %v4397_v5, %v1232_v61 }
 0x277   : > { %v1611_v34 = vadd.f32 %v4496_v48, %v1534_v13  ;;  %v1386_v35 = vadd.f32 %v4271_v59, %v1309_v18  ;;  %v5608_v13 = vld [vmem:[#allocation8_spill] sm:$0xff] }
 0x279   : > { %v1463_v5 = vadd.f32 %v4464_v6, %v1386_v35 }
 0x27a   : > { %v1507_v33 = vpop.f32.mrf.mxu0 }
 0x27b   : > { %v4534_v15 = vadd.f32 %v1507_v33, %v4449_v62  ;;  %v1531_v62 = vadd.f32 %v1530_v39, %v1454_v2  ;;  %v1696_v33 = vpop.f32.mrf.mxu3 }
 0x27d   : > { %1802 = vmatmul.f32.gmra.mxu0 %v940_v50  ;;  %v1608_v17 = vadd.f32 %v1607_v58, %v1531_v62  ;;  %v1619_v8 = vpop.f32.mrf.mxu2  ;;  %v1383_v50 = vadd.f32 %v4259_v57, %v1306_v4  ;;  %v1545_v58 = vpop.f32.mrf.mxu1  ;;  %v1688_v57 = vadd.f32 %v4503_v22, %v1611_v34  ;;  %v1540_v22 = vadd.f32 %v4527_v60, %v1463_v5  ;;  %v5610_v34 = vld [vmem:[#allocation14_spill] sm:$0xff] }
 0x27e   : > { %v1164_v60 = vadd.f32 %v4307_v28, %v4198_v3  ;;  %v1167_v3 = vadd.f32 %v4307_v28, %v5608_v13 }
 0x27f   : > { %v1685_v39 = vadd.f32 %v1684_v9, %v1608_v17  ;;  %v1158_v9 = vadd.f32 %v4307_v28, %v4089_v10  ;;  %v1617_v62 = vadd.f32 %v1616_v14, %v1540_v22 }
 0x281   : > { %v1694_v30 = vadd.f32 %v4542_v37, %v1617_v62 }
 0x282   : > { %v1758_v36 = vpop.f32.mrf.mxu0 }
 0x283   : > { %v1759_v21 = vadd.f32 %v1758_v36, %v1682_v19  ;;  %v1699_v1 = vpop.f32.mrf.mxu3 }
 0x285   : > { %v1818_v45 = vmax.f32 %v1759_v21, 0.0  ;;  %1805 = vmatmul.f32.gmra.mxu0 %v4426_v51  ;;  %v1460_v51 = vadd.f32 %v4461_v31, %v1383_v50  ;;  %v1622_v44 = vpop.f32.mrf.mxu2  ;;  %v1235_v31 = vadd.f32 %v4255_v46, %v1158_v9  ;;  %v1548_v11 = vpop.f32.mrf.mxu1 }
 0x287   : > { %1838 = vst [vmem:[#allocation3 + $0x1] sm:$0xff] %v1818_v45  ;;  %v1537_v41 = vadd.f32 %v4506_v25, %v1460_v51  ;;  %v1312_v10 = vadd.f32 %v4417_v54, %v1235_v31  ;;  %v1161_v25 = vadd.f32 %v4307_v28, %v4141_v38  ;;  %v1244_v51 = vadd.f32 %v5610_v34, %v1167_v3  ;;  %v5620_v3 = vld [vmem:[#allocation37_spill] sm:$0xff]  ;;  %v5623_v34 = vld [vmem:[#allocation20_spill] sm:$0xff] }
 0x289   : > { %v1238_v6 = vadd.f32 %v4269_v29, %v1161_v25  ;;  %v5614_v25 = vld [vmem:[#allocation32_spill] sm:$0xff] }
 0x28a   : > { %v1761_v16 = vpop.f32.mrf.mxu0 }
 0x28b   : > { %v1762_v26 = vadd.f32 %v1761_v16, %v1685_v39  ;;  %v1702_v54 = vpop.f32.mrf.mxu3  ;;  %v1315_v38 = vadd.f32 %v4436_v43, %v1238_v6 }
 0x28d   : > { %v1819_v24 = vmax.f32 %v1762_v26, 0.0  ;;  %1808 = vmatmul.f32.gmra.mxu0 %v4446_v53  ;;  %v1614_v53 = vadd.f32 %v4512_v63, %v1537_v41  ;;  %v1625_v56 = vpop.f32.mrf.mxu2  ;;  %v1389_v63 = vadd.f32 %v4283_v20, %v1312_v10  ;;  %v1392_v29 = vadd.f32 %v4290_v40, %v1315_v38  ;;  %v5609_v40 = vld [vmem:[#allocation16_spill] sm:$0xff]  ;;  %v5612_v41 = vld [vmem:[#allocation11_spill] sm:$0xff] }
 0x28f   : > { %1839 = vst [vmem:[#allocation3 + $0x9] sm:$0xff] %v1819_v24  ;;  %v1691_v59 = vadd.f32 %v4524_v55, %v1614_v53  ;;  %v1551_v55 = vpop.f32.mrf.mxu1  ;;  %v5611_v24 = vld [vmem:[#allocation31_spill] sm:$0xff] }
 0x292   : > { %v1764_v27 = vpop.f32.mrf.mxu0 }
 0x293   : > { %v1765_v48 = vadd.f32 %v1764_v27, %v1688_v57  ;;  %v1705_v43 = vpop.f32.mrf.mxu3  ;;  %v1321_v27 = vadd.f32 %v5612_v41, %v1244_v51 }
 0x295   : > { %v1820_v2 = vmax.f32 %v1765_v48, 0.0  ;;  %1811 = vmatmul.f32.gmra.mxu0 %v4520_v7  ;;  %v1466_v7 = vadd.f32 %v4467_v52, %v1389_v63  ;;  %v1628_v0 = vpop.f32.mrf.mxu2  ;;  %v5605_v52 = vld [vmem:[#allocation12_spill] sm:$0xff] }
 0x296   : > { %v1241_v17 = vadd.f32 %v5605_v52, %v1164_v60  ;;  %v5617_v52 = vld [vmem:[#allocation21_spill] sm:$0xff] }
 0x297   : > { %1840 = vst [vmem:[#allocation3 + $0x19] sm:$0xff] %v1820_v2  ;;  %v1543_v20 = vadd.f32 %v1542_v32, %v1466_v7  ;;  %v1554_v16 = vpop.f32.mrf.mxu1 }
 0x298   : > { %v1318_v39 = vadd.f32 %v5607_v23, %v1241_v17  ;;  %v5618_v17 = vld [vmem:[#allocation34_spill] sm:$0xff] }
 0x299   : > { %v1620_v49 = vadd.f32 %v1619_v8, %v1543_v20 }
 0x29a   : > { %v1767_v46 = vpop.f32.mrf.mxu0  ;;  %v1395_v26 = vadd.f32 %v5609_v40, %v1318_v39 }
 0x29b   : > { %v1768_v19 = vadd.f32 %v1767_v46, %v1691_v59  ;;  %v1697_v37 = vadd.f32 %v1696_v33, %v1620_v49  ;;  %v1708_v31 = vpop.f32.mrf.mxu3 }
 0x29c   : > { %v1472_v18 = vadd.f32 %v5611_v24, %v1395_v26 }
 0x29d   : > { %v1821_v36 = vmax.f32 %v1768_v19, 0.0  ;;  %1814 = vmatmul.f32.gmra.mxu0 %v4537_v12  ;;  %v5606_v12 = vld [vmem:[#allocation30_spill] sm:$0xff]  ;;  %v1631_v57 = vpop.f32.mrf.mxu2 }
 0x29e   : > { %v1469_v45 = vadd.f32 %v5606_v12, %v1392_v29  ;;  %v1549_v48 = vadd.f32 %v1548_v11, %v1472_v18  ;;  %v5616_v11 = vld [vmem:[#allocation33_spill] sm:$0xff] }
 0x29f   : > { %1841 = vst [vmem:[#allocation3 + $0x21] sm:$0xff] %v1821_v36  ;;  %v1557_v2 = vpop.f32.mrf.mxu1 }
 0x2a0   : > { %v1546_v32 = vadd.f32 %v1545_v58, %v1469_v45  ;;  %v5613_v58 = vld [vmem:[#allocation18_spill] sm:$0xff]  ;;  %v1626_v10 = vadd.f32 %v1625_v56, %v1549_v48 }
 0x2a1   : > { %v1398_v53 = vadd.f32 %v5613_v58, %v1321_v27  ;;  %v5625_v27 = vld [vmem:[#allocation24_spill] sm:$0xff] }
 0x2a2   : > { %v1770_v21 = vpop.f32.mrf.mxu0  ;;  %v1623_v8 = vadd.f32 %v1622_v44, %v1546_v32  ;;  %v1703_v46 = vadd.f32 %v1702_v54, %v1626_v10  ;;  %v1481_v54 = vadd.f32 %v5618_v17, %v5617_v52  ;;  %v5634_v52 = vld [vmem:[#allocation17_spill] sm:$0xff] }
 0x2a3   : > { %v1771_v14 = vadd.f32 %v1770_v21, %v1694_v30  ;;  %v1475_v59 = vadd.f32 %v5614_v25, %v1398_v53  ;;  %v1711_v62 = vpop.f32.mrf.mxu3  ;;  %v5627_v53 = vld [vmem:[#allocation36_spill] sm:$0xff]  ;;  %v5628_v25 = vld [vmem:[#allocation22_spill] sm:$0xff]  ;;  %v1188_v17 = vadd.f32 %v4307_v28, %v5634_v52 }
 0x2a4   : > { %v1700_v35 = vadd.f32 %v1699_v1, %v1623_v8  ;;  %v5615_v1 = vld [vmem:[#allocation19_spill] sm:$0xff]  ;;  %v1558_v23 = vadd.f32 %v1557_v2, %v1481_v54  ;;  %v5624_v8 = vld [vmem:[#allocation13_spill] sm:$0xff] }
 0x2a5   : > { %v1822_v4 = vmax.f32 %v1771_v14, 0.0  ;;  %v1634_v44 = vpop.f32.mrf.mxu2  ;;  %v1552_v63 = vadd.f32 %v1551_v55, %v1475_v59  ;;  %v1478_v36 = vadd.f32 %v5616_v11, %v5615_v1  ;;  %v1182_v24 = vadd.f32 %v4307_v28, %v5624_v8 }
 0x2a6   : > { %v1635_v32 = vadd.f32 %v1634_v44, %v1558_v23  ;;  %v5636_v23 = vld [vmem:[#allocation7_spill] sm:$0xff] }
 0x2a7   : > { %1842 = vst [vmem:[#allocation3 + $0x31] sm:$0xff] %v1822_v4  ;;  %v1629_v7 = vadd.f32 %v1628_v0, %v1552_v63  ;;  %v1560_v60 = vpop.f32.mrf.mxu1  ;;  %v1555_v20 = vadd.f32 %v1554_v16, %v1478_v36  ;;  %v5619_v0 = vld [vmem:[#allocation10_spill] sm:$0xff]  ;;  %v5621_v16 = vld [vmem:[#allocation23_spill] sm:$0xff] }
 0x2a8   : > { %v1179_v45 = vadd.f32 %v4307_v28, %v5619_v0  ;;  %v1712_v18 = vadd.f32 %v1711_v62, %v1635_v32  ;;  %v5630_v62 = vld [vmem:[#allocation26_spill] sm:$0xff] }
 0x2a9   : > { %v1706_v30 = vadd.f32 %v1705_v43, %v1629_v7  ;;  %v1632_v14 = vadd.f32 %v1631_v57, %v1555_v20  ;;  %v5631_v36 = vld [vmem:[#allocation6_spill] sm:$0xff] }
 0x2aa   : > { %v1773_v50 = vpop.f32.mrf.mxu0 }
 0x2ab   : > { %v1774_v61 = vadd.f32 %v1773_v50, %v1697_v37  ;;  %v1714_v49 = vpop.f32.mrf.mxu3  ;;  %v1709_v4 = vadd.f32 %v1708_v31, %v1632_v14  ;;  %v1256_v37 = vadd.f32 %v5620_v3, %v1179_v45  ;;  %v5622_v50 = vld [vmem:[#allocation35_spill] sm:$0xff]  ;;  %v5626_v31 = vld [vmem:[#allocation5_spill] sm:$0xff] }
 0x2ac   : > { %v1484_v40 = vadd.f32 %v5622_v50, %v5621_v16  ;;  %v5638_v16 = vld [vmem:[#allocation27_spill] sm:$0xff] }
 0x2ad   : > { %v1823_v9 = vmax.f32 %v1774_v61, 0.0  ;;  %v1637_v56 = vpop.f32.mrf.mxu2  ;;  %v1333_v51 = vadd.f32 %v5623_v34, %v1256_v37  ;;  %v5639_v34 = vld [vmem:[#allocation29_spill] sm:$0xff] }
 0x2af   : > { %1843 = vst [vmem:[#allocation3 + $0x39] sm:$0xff] %v1823_v9  ;;  %v1563_v12 = vpop.f32.mrf.mxu1  ;;  %v1561_v9 = vadd.f32 %v1560_v60, %v1484_v40 }
 0x2b1   : > { %v1638_v58 = vadd.f32 %v1637_v56, %v1561_v9 }
 0x2b2   : > { %v1776_v33 = vpop.f32.mrf.mxu0 }
 0x2b3   : > { %v1777_v5 = vadd.f32 %v1776_v33, %v1700_v35  ;;  %v1717_v61 = vpop.f32.mrf.mxu3  ;;  %v1410_v35 = vadd.f32 %v5625_v27, %v1333_v51  ;;  %v1259_v33 = vadd.f32 %v5626_v31, %v1182_v24 }
 0x2b5   : > { %v1824_v22 = vmax.f32 %v1777_v5, 0.0  ;;  %v1640_v43 = vpop.f32.mrf.mxu2  ;;  %v1487_v5 = vadd.f32 %v5627_v53, %v1410_v35  ;;  %v1336_v59 = vadd.f32 %v5628_v25, %v1259_v33  ;;  %v5641_v25 = vld [vmem:[#allocation41_spill] sm:$0xff] }
 0x2b7   : > { %1844 = vst [vmem:[#allocation3 + $0x49] sm:$0xff] %v1824_v22  ;;  %v1566_v57 = vpop.f32.mrf.mxu1  ;;  %v5629_v22 = vld [vmem:[#allocation15_spill] sm:$0xff]  ;;  %v1564_v63 = vadd.f32 %v1563_v12, %v1487_v5  ;;  %v1413_v7 = vadd.f32 %v5630_v62, %v1336_v59  ;;  %v5635_v12 = vld [vmem:[#allocation28_spill] sm:$0xff]  ;;  %v3289_v62 = vmov 0.0  }
 0x2b8   : > { %v1185_v44 = vadd.f32 %v4307_v28, %v5629_v22  ;;  %1858 = vst [vmem:[#allocation3] sm:$0x1] %v3289_v62 }
 0x2b9   : > { %v1641_v60 = vadd.f32 %v1640_v43, %v1564_v63  ;;  %v5637_v43 = vld [vmem:[#allocation39_spill] sm:$0xff]  ;;  %1859 = vst [vmem:[#allocation3 + $0x18] sm:$0x1] %v3289_v62 }
 0x2ba   : > { %v1779_v19 = vpop.f32.mrf.mxu0  ;;  %1860 = vst [vmem:[#allocation3 + $0x30] sm:$0x1] %v3289_v62 }
 0x2bb   : > { %v1780_v6 = vadd.f32 %v1779_v19, %v1703_v46  ;;  %v1715_v46 = vadd.f32 %v1714_v49, %v1638_v58  ;;  %v1720_v19 = vpop.f32.mrf.mxu3  ;;  %v1718_v54 = vadd.f32 %v1717_v61, %v1641_v60  ;;  %1861 = vst [vmem:[#allocation3 + $0x48] sm:$0x1] %v3289_v62 }
 0x2bc   : > { %1862 = vst [vmem:[#allocation3 + $0x60] sm:$0x1] %v3289_v62 }
 0x2bd   : > { %v1825_v38 = vmax.f32 %v1780_v6, 0.0  ;;  %v1643_v10 = vpop.f32.mrf.mxu2  ;;  %1863 = vst [vmem:[#allocation3 + $0x78] sm:$0x1] %v3289_v62 }
 0x2be   : > { %1864 = vst [vmem:[#allocation3 + $0x90] sm:$0x1] %v3289_v62 }
 0x2bf   : > { %1845 = vst [vmem:[#allocation3 + $0x51] sm:$0xff] %v1825_v38  ;;  %v1569_v11 = vpop.f32.mrf.mxu1  ;;  %v1262_v38 = vadd.f32 %v5631_v36, %v1185_v44 }
 0x2c0   : > { %1865 = vst [vmem:[#allocation3 + $0xa8] sm:$0x1] %v3289_v62 }
 0x2c1   : > { %1866 = vst [vmem:[#allocation3 + $0xc0] sm:$0x1] %v3289_v62 }
 0x2c2   : > { %v1782_v21 = vpop.f32.mrf.mxu0  ;;  %1867 = vst [vmem:[#allocation3 + $0xd8] sm:$0x1] %v3289_v62 }
 0x2c3   : > { %v1783_v29 = vadd.f32 %v1782_v21, %v1706_v30  ;;  %v5632_v30 = vld [vmem:[#allocation38_spill] sm:$0xff]  ;;  %1868 = vst [vmem:[#allocation3 + $0x11] sm:$0x1] %v3289_v62 }
 0x2c4   : > { %v1490_v20 = vadd.f32 %v5632_v30, %v1413_v7  ;;  %1869 = vst [vmem:[#allocation3 + $0x29] sm:$0x1] %v3289_v62 }
 0x2c5   : > { %v1826_v55 = vmax.f32 %v1783_v29, 0.0  ;;  %v1646_v21 = vpop.f32.mrf.mxu2  ;;  %v5633_v29 = vld [vmem:[#allocation25_spill] sm:$0xff]  ;;  %1870 = vst [vmem:[#allocation3 + $0x41] sm:$0x1] %v3289_v62 }
 0x2c6   : > { %v1339_v14 = vadd.f32 %v5633_v29, %v1262_v38  ;;  %1871 = vst [vmem:[#allocation3 + $0x59] sm:$0x1] %v3289_v62 }
 0x2c7   : > { %1846 = vst [vmem:[#allocation3 + $0x61] sm:$0xff] %v1826_v55  ;;  %v1567_v55 = vadd.f32 %v1566_v57, %v1490_v20  ;;  %v1572_v32 = vpop.f32.mrf.mxu1 }
 0x2c8   : > { %v1416_v0 = vadd.f32 %v5635_v12, %v1339_v14  ;;  %1872 = vst [vmem:[#allocation3 + $0x71] sm:$0x1] %v3289_v62 }
 0x2c9   : > { %1873 = vst [vmem:[#allocation3 + $0x89] sm:$0x1] %v3289_v62 }
 0x2ca   : > { %v1785_v39 = vpop.f32.mrf.mxu0  ;;  %v1493_v3 = vadd.f32 %v5637_v43, %v1416_v0  ;;  %1874 = vst [vmem:[#allocation3 + $0xa1] sm:$0x1] %v3289_v62 }
 0x2cb   : > { %v1786_v13 = vadd.f32 %v1785_v39, %v1709_v4  ;;  %v1723_v4 = vpop.f32.mrf.mxu3  ;;  %v1265_v39 = vadd.f32 %v5636_v23, %v1188_v17  ;;  %1875 = vst [vmem:[#allocation3 + $0xb9] sm:$0x1] %v3289_v62 }
 0x2cc   : > { %1876 = vst [vmem:[#allocation3 + $0xd1] sm:$0x1] %v3289_v62 }
 0x2cd   : > { %v1827_v26 = vmax.f32 %v1786_v13, 0.0  ;;  %v1644_v13 = vadd.f32 %v1643_v10, %v1567_v55  ;;  %v1342_v50 = vadd.f32 %v5638_v16, %v1265_v39  ;;  %v1649_v28 = vpop.f32.mrf.mxu2  ;;  %1877 = vst [vmem:[#allocation3 + $0xe9] sm:$0x1] %v3289_v62 }
 0x2cf   : > { %1847 = vst [vmem:[#allocation3 + $0x69] sm:$0xff] %v1827_v26  ;;  %v1721_v40 = vadd.f32 %v1720_v19, %v1644_v13  ;;  %v1570_v26 = vadd.f32 %v1569_v11, %v1493_v3  ;;  %v1419_v51 = vadd.f32 %v5639_v34, %v1342_v50  ;;  %v1575_v27 = vpop.f32.mrf.mxu1 }
 0x2d0   : > { %v1576_v59 = vadd.f32 %v1575_v27, %v5641_v25 }
 0x2d1   : > { %v1647_v24 = vadd.f32 %v1646_v21, %v1570_v26 }
 0x2d2   : > { %v1788_v41 = vpop.f32.mrf.mxu0 }
 0x2d3   : > { %v1789_v48 = vadd.f32 %v1788_v41, %v1712_v18  ;;  %v5640_v18 = vld [vmem:[#allocation40_spill] sm:$0xff]  ;;  %v1726_v41 = vpop.f32.mrf.mxu3  ;;  %v1724_v35 = vadd.f32 %v1723_v4, %v1647_v24 }
 0x2d4   : > { %v1496_v9 = vadd.f32 %v5640_v18, %v1419_v51 }
 0x2d5   : > { %v1828_v2 = vmax.f32 %v1789_v48, 0.0  ;;  %v1652_v58 = vpop.f32.mrf.mxu2 }
 0x2d6   : > { %v1573_v48 = vadd.f32 %v1572_v32, %v1496_v9  ;;  %v1653_v63 = vadd.f32 %v1652_v58, %v1576_v59 }
 0x2d7   : > { %1848 = vst [vmem:[#allocation3 + $0x79] sm:$0xff] %v1828_v2  ;;  %v1578_v22 = vpop.f32.mrf.mxu1 }
 0x2d8   : > { %v1650_v53 = vadd.f32 %v1649_v28, %v1573_v48 }
 0x2da   : > { %v1791_v6 = vpop.f32.mrf.mxu0  ;;  %v1727_v10 = vadd.f32 %v1726_v41, %v1650_v53 }
 0x2db   : > { %v1792_v1 = vadd.f32 %v1791_v6, %v1715_v46  ;;  %v1729_v2 = vpop.f32.mrf.mxu3 }
 0x2dc   : > { %v1730_v7 = vadd.f32 %v1729_v2, %v1653_v63 }
 0x2dd   : > { %v1829_v56 = vmax.f32 %v1792_v1, 0.0  ;;  %v1655_v6 = vpop.f32.mrf.mxu2  ;;  %v1579_v1 = vadd.f32 %v1578_v22, %v4501_v47 }
 0x2df   : > { %1849 = vst [vmem:[#allocation3 + $0x81] sm:$0xff] %v1829_v56  ;;  %v1581_v60 = vpop.f32.mrf.mxu1  ;;  %v1656_v30 = vadd.f32 %v1655_v6, %v1579_v1 }
 0x2e0   : > { %v1582_v29 = vadd.f32 %v1581_v60, %v4517_v42 }
 0x2e2   : > { %v1794_v49 = vpop.f32.mrf.mxu0 }
 0x2e3   : > { %v1795_v45 = vadd.f32 %v1794_v49, %v1718_v54  ;;  %v1732_v11 = vpop.f32.mrf.mxu3 }
 0x2e4   : > { %v1733_v21 = vadd.f32 %v1732_v11, %v1656_v30 }
 0x2e5   : > { %v1830_v37 = vmax.f32 %v1795_v45, 0.0  ;;  %v1658_v56 = vpop.f32.mrf.mxu2 }
 0x2e6   : > { %v1659_v17 = vadd.f32 %v1658_v56, %v1582_v29 }
 0x2e7   : > { %1850 = vst [vmem:[#allocation3 + $0x91] sm:$0xff] %v1830_v37  ;;  %v1584_v55 = vpop.f32.mrf.mxu1 }
 0x2e8   : > { %v1585_v12 = vadd.f32 %v1584_v55, %v4534_v15 }
 0x2ea   : > { %v1797_v61 = vpop.f32.mrf.mxu0 }
 0x2eb   : > { %v1798_v8 = vadd.f32 %v1797_v61, %v1721_v40  ;;  %v1735_v52 = vpop.f32.mrf.mxu3 }
 0x2ec   : > { %v1736_v49 = vadd.f32 %v1735_v52, %v1659_v17 }
 0x2ed   : > { %v1831_v57 = vmax.f32 %v1798_v8, 0.0  ;;  %v1661_v0 = vpop.f32.mrf.mxu2 }
 0x2ee   : > { %v1662_v4 = vadd.f32 %v1661_v0, %v1585_v12 }
 0x2ef   : > { %1851 = vst [vmem:[#allocation3 + $0x99] sm:$0xff] %v1831_v57 }
 0x2f2   : > { %v1800_v31 = vpop.f32.mrf.mxu0 }
 0x2f3   : > { %v1801_v33 = vadd.f32 %v1800_v31, %v1724_v35  ;;  %v1738_v39 = vpop.f32.mrf.mxu3 }
 0x2f4   : > { %v1739_v13 = vadd.f32 %v1738_v39, %v1662_v4 }
 0x2f5   : > { %v1832_v5 = vmax.f32 %v1801_v33, 0.0 }
 0x2f7   : > { %1852 = vst [vmem:[#allocation3 + $0xa9] sm:$0xff] %v1832_v5 }
 0x2fa   : > { %v1803_v44 = vpop.f32.mrf.mxu0 }
 0x2fb   : > { %v1804_v46 = vadd.f32 %v1803_v44, %v1727_v10 }
 0x2fd   : > { %v1833_v19 = vmax.f32 %v1804_v46, 0.0 }
 0x2ff   : > { %1853 = vst [vmem:[#allocation3 + $0xb1] sm:$0xff] %v1833_v19 }
 0x302   : > { %v1806_v36 = vpop.f32.mrf.mxu0 }
 0x303   : > { %v1807_v38 = vadd.f32 %v1806_v36, %v1730_v7 }
 0x305   : > { %v1834_v20 = vmax.f32 %v1807_v38, 0.0 }
 0x307   : > { %1854 = vst [vmem:[#allocation3 + $0xc1] sm:$0xff] %v1834_v20 }
 0x30a   : > { %v1809_v47 = vpop.f32.mrf.mxu0 }
 0x30b   : > { %v1810_v14 = vadd.f32 %v1809_v47, %v1733_v21 }
 0x30d   : > { %v1835_v54 = vmax.f32 %v1810_v14, 0.0 }
 0x30f   : > { %1855 = vst [vmem:[#allocation3 + $0xc9] sm:$0xff] %v1835_v54 }
 0x312   : > { %v1812_v42 = vpop.f32.mrf.mxu0 }
 0x313   : > { %v1813_v45 = vadd.f32 %v1812_v42, %v1736_v49 }
 0x315   : > { %v1836_v23 = vmax.f32 %v1813_v45, 0.0 }
 0x317   : > { %1856 = vst [vmem:[#allocation3 + $0xd9] sm:$0xff] %v1836_v23 }
 0x31a   : > { %v1815_v43 = vpop.f32.mrf.mxu0 }
 0x31b   : > { %v1816_v3 = vadd.f32 %v1815_v43, %v1739_v13  ;;  %1880 = sbr.rel (%p3145_p7) target bundleno = 804 (0x324), region = 48 }
 0x31d   : > { %v1837_v37 = vmax.f32 %v1816_v3, 0.0 }
 0x31f   : > { %1857 = vst [vmem:[#allocation3 + $0xe1] sm:$0xff] %v1837_v37 }
 0x320   : > { %v3290_v15 = vmov 0.0  }
 0x321   : > { %1881 = vst [vmem:[#allocation3] sm:$0xff] %v3290_v15 }
 0x322   : > { %1882 = vst [vmem:[#allocation3 + $0x8] sm:$0xff] %v3290_v15 }
 0x323   : > { %1883 = vst [vmem:[#allocation3 + $0x10] sm:$0x3] %v3290_v15 }
 0x324 PF: > { %p3148_p8 = scmp.ne.s32.totalorder %s3270_s18, 1 }
 0x326   : > { %1887 = sbr.rel (%p3148_p8) target bundleno = 815 (0x32f), region = 52 }
 0x32b   : > { %v3291_v32 = vmov 0.0  }
 0x32c   : > { %1889 = vst [vmem:[#allocation3 + $0xd8] sm:$0xff] %v3291_v32 }
 0x32d   : > { %1890 = vst [vmem:[#allocation3 + $0xe0] sm:$0xff] %v3291_v32 }
 0x32e   : > { %1891 = vst [vmem:[#allocation3 + $0xe8] sm:$0x3] %v3291_v32 }
 0x32f PF: > { %v2255_v16 = vld [vmem:[%s5565_s3 + $0x78] sm:$0xff]  ;;  %v2254_v26 = vld [vmem:[%s5565_s3 + $0x70] sm:$0xff]  ;;  %v2253_v34 = vld [vmem:[%s5565_s3 + $0x68] sm:$0xff]  ;;  %s3153_s14 = sshll.u32 %s3270_s18, 7 }
 0x330   : > { %v2271_v50 = vld [vmem:[%s5565_s3 + $0xf8] sm:$0xff]  ;;  %2388 = vmatpush.msra.mxu1 %v2255_v16  ;;  %v2270_v28 = vld [vmem:[%s5565_s3 + $0xf0] sm:$0xff]  ;;  %v2269_v51 = vld [vmem:[%s5565_s3 + $0xe8] sm:$0xff]  ;;  %s5498_s15 = scalar_lea.vmem %s3358_s30, %s3153_s14 }
 0x331   : > { %v2287_v40 = vld [vmem:[%s5565_s3 + $0x178] sm:$0xff]  ;;  %2453 = vmatpush.msra.mxu2 %v2271_v50  ;;  %v2286_v61 = vld [vmem:[%s5565_s3 + $0x170] sm:$0xff]  ;;  %v2285_v8 = vld [vmem:[%s5565_s3 + $0x168] sm:$0xff] }
 0x332   : > { %2518 = vmatpush.msrb.mxu3 %v2287_v40  ;;  %2389 = vmatpush.msra.mxu1 %v2254_v26  ;;  %v2252_v24 = vld [vmem:[%s5565_s3 + $0x60] sm:$0xff]  ;;  %v2251_v57 = vld [vmem:[%s5565_s3 + $0x58] sm:$0xff]  ;;  %v2250_v35 = vld [vmem:[%s5565_s3 + $0x50] sm:$0xff] }
 0x333   : > { %2454 = vmatpush.msra.mxu2 %v2270_v28  ;;  %v2268_v18 = vld [vmem:[%s5565_s3 + $0xe0] sm:$0xff]  ;;  %v2267_v41 = vld [vmem:[%s5565_s3 + $0xd8] sm:$0xff]  ;;  %v2266_v48 = vld [vmem:[%s5565_s3 + $0xd0] sm:$0xff] }
 0x334   : > { %2519 = vmatpush.msrb.mxu3 %v2286_v61  ;;  %2390 = vmatpush.msra.mxu1 %v2253_v34  ;;  %v2284_v9 = vld [vmem:[%s5565_s3 + $0x160] sm:$0xff]  ;;  %v2283_v27 = vld [vmem:[%s5565_s3 + $0x158] sm:$0xff]  ;;  %v2282_v31 = vld [vmem:[%s5565_s3 + $0x150] sm:$0xff] }
 0x335   : > { %2455 = vmatpush.msra.mxu2 %v2269_v51  ;;  %v2249_v33 = vld [vmem:[%s5565_s3 + $0x48] sm:$0xff]  ;;  %v2248_v5 = vld [vmem:[%s5565_s3 + $0x40] sm:$0xff]  ;;  %v2247_v25 = vld [vmem:[%s5565_s3 + $0x38] sm:$0xff] }
 0x336   : > { %2520 = vmatpush.msrb.mxu3 %v2285_v8  ;;  %2391 = vmatpush.msra.mxu1 %v2252_v24  ;;  %v2265_v58 = vld [vmem:[%s5565_s3 + $0xc8] sm:$0xff]  ;;  %v2264_v2 = vld [vmem:[%s5565_s3 + $0xc0] sm:$0xff]  ;;  %v2263_v59 = vld [vmem:[%s5565_s3 + $0xb8] sm:$0xff] }
 0x337   : > { %2456 = vmatpush.msra.mxu2 %v2268_v18  ;;  %v2281_v53 = vld [vmem:[%s5565_s3 + $0x148] sm:$0xff]  ;;  %v2280_v10 = vld [vmem:[%s5565_s3 + $0x140] sm:$0xff]  ;;  %v2279_v22 = vld [vmem:[%s5565_s3 + $0x138] sm:$0xff] }
 0x338   : > { %2521 = vmatpush.msrb.mxu3 %v2284_v9  ;;  %2392 = vmatpush.msra.mxu1 %v2251_v57  ;;  %v2246_v44 = vld [vmem:[%s5565_s3 + $0x30] sm:$0xff]  ;;  %v1892_v63 = vld [vmem:[#allocation3] sm:$0xff]  ;;  %v2245_v62 = vld [vmem:[%s5565_s3 + $0x28] sm:$0xff] }
 0x339   : > { %2457 = vmatpush.msra.mxu2 %v2267_v41  ;;  %v2262_v46 = vld [vmem:[%s5565_s3 + $0xb0] sm:$0xff]  ;;  %v1960_v6 = vld [vmem:[#allocation3 + $0x1] sm:$0xff]  ;;  %v2243_v21 = vld [vmem:[%s5565_s3 + $0x18] sm:$0xff] }
 0x33a   : > { %2522 = vmatpush.msrb.mxu3 %v2283_v27  ;;  %2393 = vmatpush.msra.mxu1 %v2250_v35  ;;  %v2278_v19 = vld [vmem:[%s5565_s3 + $0x130] sm:$0xff]  ;;  %v2261_v7 = vld [vmem:[%s5565_s3 + $0xa8] sm:$0xff]  ;;  %v2244_v38 = vld [vmem:[%s5565_s3 + $0x20] sm:$0xff] }
 0x33b   : > { %2458 = vmatpush.msra.mxu2 %v2266_v48  ;;  %v2028_v1 = vld [vmem:[#allocation3 + $0x2] sm:$0xff]  ;;  %v4742_v56 = vld [vmem:[#allocation3 + $0xa] sm:$0xff]  ;;  %v2259_v29 = vld [vmem:[%s5565_s3 + $0x98] sm:$0xff] }
 0x33c   : > { %2523 = vmatpush.msrb.mxu3 %v2282_v31  ;;  %2394 = vmatpush.msra.mxu1 %v2249_v33  ;;  %v2277_v11 = vld [vmem:[%s5565_s3 + $0x128] sm:$0xff]  ;;  %v2260_v60 = vld [vmem:[%s5565_s3 + $0xa0] sm:$0xff]  ;;  %v4750_v47 = vld [vmem:[#allocation3 + $0x18] sm:$0xff] }
 0x33d   : > { %2459 = vmatpush.msra.mxu2 %v2265_v58  ;;  %v4729_v36 = vld [vmem:[#allocation3 + $0x8] sm:$0xff]  ;;  %v2276_v20 = vld [vmem:[%s5565_s3 + $0x120] sm:$0xff]  ;;  %v2275_v14 = vld [vmem:[%s5565_s3 + $0x118] sm:$0xff] }
 0x33e   : > { %2524 = vmatpush.msrb.mxu3 %v2281_v53  ;;  %2395 = vmatpush.msra.mxu1 %v2248_v5  ;;  %v4737_v30 = vld [vmem:[#allocation3 + $0x9] sm:$0xff]  ;;  %v4761_v54 = vld [vmem:[#allocation3 + $0x19] sm:$0xff]  ;;  %v4789_v13 = vld [vmem:[#allocation3 + $0x21] sm:$0xff] }
 0x33f   : > { %2460 = vmatpush.msra.mxu2 %v2264_v2  ;;  %v2242_v52 = vld [vmem:[%s5565_s3 + $0x10] sm:$0xff]  ;;  %v2241_v49 = vld [vmem:[%s5565_s3 + $0x8] sm:$0xff]  ;;  %1996 = vst [vmem:[#allocation4 + $0x20] sm:$0xff] %v4761_v54  ;;  %v4773_v0 = vld [vmem:[#allocation3 + $0x1a] sm:$0xff] }
 0x340   : > { %2525 = vmatpush.msrb.mxu3 %v2280_v10  ;;  %2396 = vmatpush.msra.mxu1 %v2247_v25  ;;  %v2258_v17 = vld [vmem:[%s5565_s3 + $0x90] sm:$0xff]  ;;  %v2257_v12 = vld [vmem:[%s5565_s3 + $0x88] sm:$0xff]  ;;  %v2240_v45 = vld [vmem:[%s5565_s3] sm:$0xff]  ;;  %1997 = vst [vmem:[#allocation4 + $0xe8] sm:$0xff] %v4789_v13 }
 0x341   : > { %2461 = vmatpush.msra.mxu2 %v2263_v59  ;;  %v2274_v55 = vld [vmem:[%s5565_s3 + $0x110] sm:$0xff]  ;;  %v2273_v42 = vld [vmem:[%s5565_s3 + $0x108] sm:$0xff]  ;;  %v2256_v4 = vld [vmem:[%s5565_s3 + $0x80] sm:$0xff] }
 0x342   : > { %2526 = vmatpush.msrb.mxu3 %v2279_v22  ;;  %2397 = vmatpush.msra.mxu1 %v2246_v44  ;;  %v4784_v23 = vld [vmem:[#allocation3 + $0x20] sm:$0xff]  ;;  %v2319_v43 = vld [vmem:[%s5565_s3 + $0x278] sm:$0xff]  ;;  %v2318_v15 = vld [vmem:[%s5565_s3 + $0x270] sm:$0xff] }
 0x343   : > { %2462 = vmatpush.msra.mxu2 %v2262_v46  ;;  %v2272_v39 = vld [vmem:[%s5565_s3 + $0x100] sm:$0xff]  ;;  %v2303_v3 = vld [vmem:[%s5565_s3 + $0x1f8] sm:$0xff]  ;;  %v2302_v32 = vld [vmem:[%s5565_s3 + $0x1f0] sm:$0xff] }
 0x344   : > { %2527 = vmatpush.msrb.mxu3 %v2278_v19  ;;  %2398 = vmatpush.msra.mxu1 %v2245_v62  ;;  %v4798_v37 = vld [vmem:[#allocation3 + $0x22] sm:$0xff]  ;;  %v4806_v16 = vld [vmem:[#allocation3 + $0x30] sm:$0xff]  ;;  %v2315_v34 = vld [vmem:[%s5565_s3 + $0x258] sm:$0xff] }
 0x345   : > { %2463 = vmatpush.msra.mxu2 %v2261_v7  ;;  %v2317_v50 = vld [vmem:[%s5565_s3 + $0x268] sm:$0xff]  ;;  %v2316_v26 = vld [vmem:[%s5565_s3 + $0x260] sm:$0xff]  ;;  %1944 = vst [vmem:[#allocation4 + $0x3f0] sm:$0xff] %v4806_v16  ;;  %v4818_v28 = vld [vmem:[#allocation3 + $0x31] sm:$0xff] }
 0x346   : > { %2528 = vmatpush.msrb.mxu3 %v2277_v11  ;;  %2399 = vmatpush.msra.mxu1 %v2244_v38  ;;  %v2301_v40 = vld [vmem:[%s5565_s3 + $0x1e8] sm:$0xff]  ;;  %v2300_v61 = vld [vmem:[%s5565_s3 + $0x1e0] sm:$0xff]  ;;  %2012 = vst [vmem:[#allocation4 + $0x3f8] sm:$0xff] %v4818_v28  ;;  %v4829_v51 = vld [vmem:[#allocation3 + $0x32] sm:$0xff] }
 0x347   : > { %2464 = vmatpush.msra.mxu2 %v2260_v60  ;;  %1998 = vst [vmem:[#allocation4 + $0x588] sm:$0xff] %v4818_v28  ;;  %v2299_v8 = vld [vmem:[%s5565_s3 + $0x1d8] sm:$0xff]  ;;  %v2314_v24 = vld [vmem:[%s5565_s3 + $0x250] sm:$0xff]  ;;  %v2313_v27 = vld [vmem:[%s5565_s3 + $0x248] sm:$0xff] }
 0x348   : > { %2529 = vmatpush.msrb.mxu3 %v2276_v20  ;;  %2400 = vmatpush.msra.mxu1 %v2243_v21  ;;  %2080 = vst [vmem:[#allocation4 + $0x518] sm:$0xff] %v4829_v51  ;;  %v4840_v18 = vld [vmem:[#allocation3 + $0x38] sm:$0xff]  ;;  %v2298_v9 = vld [vmem:[%s5565_s3 + $0x1d0] sm:$0xff]  ;;  %v2297_v35 = vld [vmem:[%s5565_s3 + $0x1c8] sm:$0xff] }
 0x349   : > { %2465 = vmatpush.msra.mxu2 %v2259_v29  ;;  %1945 = vst [vmem:[#allocation4 + $0x28] sm:$0xff] %v4840_v18  ;;  %v4846_v57 = vld [vmem:[#allocation3 + $0x39] sm:$0xff]  ;;  %v4862_v48 = vld [vmem:[#allocation3 + $0x48] sm:$0xff]  ;;  %v4881_v5 = vld [vmem:[#allocation3 + $0x50] sm:$0xff] }
 0x34a   : > { %2530 = vmatpush.msrb.mxu3 %v2275_v14  ;;  %2401 = vmatpush.msra.mxu1 %v2242_v52  ;;  %1999 = vst [vmem:[#allocation4 + $0x580] sm:$0xff] %v4846_v57  ;;  %v4853_v41 = vld [vmem:[#allocation3 + $0x3a] sm:$0xff]  ;;  %v4865_v31 = vld [vmem:[#allocation3 + $0x49] sm:$0xff]  ;;  %v4885_v2 = vld [vmem:[#allocation3 + $0x51] sm:$0xff] }
 0x34b   : > { %2466 = vmatpush.msra.mxu2 %v2258_v17  ;;  %2013 = vst [vmem:[#allocation4 + $0x498] sm:$0xff] %v4846_v57  ;;  %v2312_v33 = vld [vmem:[%s5565_s3 + $0x240] sm:$0xff]  ;;  %v4878_v53 = vld [vmem:[#allocation3 + $0x4a] sm:$0xff]  ;;  %v2311_v10 = vld [vmem:[%s5565_s3 + $0x238] sm:$0xff] }
 0x34c   : > { %2531 = vmatpush.msrb.mxu3 %v2274_v55  ;;  %2402 = vmatpush.msra.mxu1 %v2241_v49  ;;  %2081 = vst [vmem:[#allocation4 + $0x120] sm:$0xff] %v4853_v41  ;;  %v2296_v58 = vld [vmem:[%s5565_s3 + $0x1c0] sm:$0xff]  ;;  %v2295_v25 = vld [vmem:[%s5565_s3 + $0x1b8] sm:$0xff]  ;;  %v2310_v46 = vld [vmem:[%s5565_s3 + $0x230] sm:$0xff] }
 0x34d   : > { %2467 = vmatpush.msra.mxu2 %v2257_v12  ;;  %1946 = vst [vmem:[#allocation4 + $0x68] sm:$0xff] %v4862_v48  ;;  %v4897_v59 = vld [vmem:[#allocation3 + $0x52] sm:$0xff]  ;;  %v4901_v22 = vld [vmem:[#allocation3 + $0x60] sm:$0xff]  ;;  %v2309_v62 = vld [vmem:[%s5565_s3 + $0x228] sm:$0xff] }
 0x34e   : > { %2532 = vmatpush.msrb.mxu3 %v2273_v42  ;;  %2403 = vmatpush.msra.mxu1 %v2240_v45  ;;  %2000 = vst [vmem:[#allocation4 + $0x368] sm:$0xff] %v4865_v31  ;;  %v4907_v44 = vld [vmem:[#allocation3 + $0x61] sm:$0xff]  ;;  %v4937_v11 = vld [vmem:[#allocation3 + $0x6a] sm:$0xff]  ;;  %v2307_v21 = vld [vmem:[%s5565_s3 + $0x218] sm:$0xff] }
 0x34f   : > { %2468 = vmatpush.msra.mxu2 %v2256_v4  ;;  %2404 = vmatmul.f32.vlgmr.msra.gmra.mxu1 %v1892_v63  ;;  %2014 = vst [vmem:[#allocation4 + $0x370] sm:$0xff] %v4865_v31  ;;  %v2294_v63 = vld [vmem:[%s5565_s3 + $0x1b0] sm:$0xff]  ;;  %v4917_v19 = vld [vmem:[#allocation3 + $0x62] sm:$0xff]  ;;  %v4956_v20 = vld [vmem:[#allocation3 + $0x7a] sm:$0xff] }
 0x350   : > { %2533 = vmatpush.msrb.mxu3 %v2272_v39  ;;  %2469 = vmatmul.f32.vlgmr.msra.gmra.mxu2 %v1960_v6  ;;  %2082 = vst [vmem:[#allocation4 + $0x90] sm:$0xff] %v4878_v53  ;;  %v4921_v6 = vld [vmem:[#allocation3 + $0x68] sm:$0xff]  ;;  %v2308_v38 = vld [vmem:[%s5565_s3 + $0x220] sm:$0xff]  ;;  %v2335_v29 = vld [vmem:[%s5565_s3 + $0x2f8] sm:$0xff] }
 0x351   : > { %2534 = vmatmul.f32.vlgmr.msrb.gmra.mxu3 %v2028_v1  ;;  %2648 = vmatpush.msrb.mxu2 %v2319_v43  ;;  %1947 = vst [vmem:[#allocation4 + $0x558] sm:$0xff] %v4881_v5  ;;  %v2293_v7 = vld [vmem:[%s5565_s3 + $0x1a8] sm:$0xff]  ;;  %v2292_v60 = vld [vmem:[%s5565_s3 + $0x1a0] sm:$0xff]  ;;  %v2334_v14 = vld [vmem:[%s5565_s3 + $0x2f0] sm:$0xff] }
 0x352   : > { %2583 = vmatpush.msrb.mxu1 %v2303_v3  ;;  %2001 = vst [vmem:[#allocation4 + $0x1b0] sm:$0xff] %v4885_v2  ;;  %v4933_v1 = vld [vmem:[#allocation3 + $0x69] sm:$0xff]  ;;  %2713 = vmatpush.msra.mxu3 %v2335_v29  ;;  %v2291_v52 = vld [vmem:[%s5565_s3 + $0x198] sm:$0xff]  ;;  %v4981_v55 = vld [vmem:[#allocation3 + $0x81] sm:$0xff] }
 0x353   : > { %2649 = vmatpush.msrb.mxu2 %v2318_v15  ;;  %2015 = vst [vmem:[#allocation4 + $0x1a0] sm:$0xff] %v4885_v2  ;;  %v2333_v17 = vld [vmem:[%s5565_s3 + $0x2e8] sm:$0xff]  ;;  %v2332_v49 = vld [vmem:[%s5565_s3 + $0x2e0] sm:$0xff]  ;;  %v2306_v42 = vld [vmem:[%s5565_s3 + $0x210] sm:$0xff] }
 0x354   : > { %2584 = vmatpush.msrb.mxu1 %v2302_v32  ;;  %2069 = vst [vmem:[#allocation4 + $0x570] sm:$0xff] %v4897_v59  ;;  %2714 = vmatpush.msra.mxu3 %v2334_v14  ;;  %v4988_v12 = vld [vmem:[#allocation3 + $0x82] sm:$0xff]  ;;  %v2331_v45 = vld [vmem:[%s5565_s3 + $0x2d8] sm:$0xff]  ;;  %v2330_v4 = vld [vmem:[%s5565_s3 + $0x2d0] sm:$0xff] }
 0x355   : > { %2650 = vmatpush.msrb.mxu2 %v2317_v50  ;;  %2083 = vst [vmem:[#allocation4 + $0x348] sm:$0xff] %v4897_v59  ;;  %v5004_v39 = vld [vmem:[#allocation3 + $0x90] sm:$0xff]  ;;  %v5009_v43 = vld [vmem:[%s5565_s3 + $0x378] sm:$0xff]  ;;  %v2329_v15 = vld [vmem:[%s5565_s3 + $0x2c8] sm:$0xff] }
 0x356   : > { %2585 = vmatpush.msrb.mxu1 %v2301_v40  ;;  %1948 = vst [vmem:[#allocation4 + $0x330] sm:$0xff] %v4901_v22  ;;  %2715 = vmatpush.msra.mxu3 %v2333_v17  ;;  %v2290_v3 = vld [vmem:[%s5565_s3 + $0x190] sm:$0xff]  ;;  %v5026_v50 = vld [vmem:[%s5565_s3 + $0x368] sm:$0xff]  ;;  %v2288_v29 = vld [vmem:[%s5565_s3 + $0x180] sm:$0xff] }
 0x357   : > { %2407 = vmatmul.f32.gmra.mxu1 %v4729_v36  ;;  %2651 = vmatpush.msrb.mxu2 %v2316_v26  ;;  %2002 = vst [vmem:[#allocation4 + $0x278] sm:$0xff] %v4907_v44  ;;  %v4942_v36 = vld [vmem:[#allocation3 + $0x78] sm:$0xff]  ;;  %v5021_v32 = vld [vmem:[%s5565_s3 + $0x370] sm:$0xff]  ;;  %v2328_v26 = vld [vmem:[%s5565_s3 + $0x2c0] sm:$0xff] }
 0x358   : > { %2472 = vmatmul.f32.gmra.mxu2 %v4737_v30  ;;  %2586 = vmatpush.msrb.mxu1 %v2300_v61  ;;  %2016 = vst [vmem:[#allocation4 + $0x1c0] sm:$0xff] %v4907_v44  ;;  %v4952_v30 = vld [vmem:[#allocation3 + $0x79] sm:$0xff]  ;;  %v5028_v40 = vld [vmem:[#allocation3 + $0x91] sm:$0xff]  ;;  %v2321_v17 = vld [vmem:[%s5565_s3 + $0x288] sm:$0xff] }
 0x359   : > { %2537 = vmatmul.f32.gmra.mxu3 %v4742_v56  ;;  %2652 = vmatpush.msrb.mxu2 %v2315_v34  ;;  %2070 = vst [vmem:[#allocation4 + $0x1e8] sm:$0xff] %v4917_v19  ;;  %v4960_v56 = vld [vmem:[#allocation3 + $0x80] sm:$0xff]  ;;  %v5037_v61 = vld [vmem:[#allocation3 + $0x92] sm:$0xff]  ;;  %v2305_v34 = vld [vmem:[%s5565_s3 + $0x208] sm:$0xff] }
 0x35a   : > { %2587 = vmatpush.msrb.mxu1 %v2299_v8  ;;  %2084 = vst [vmem:[#allocation4 + $0x198] sm:$0xff] %v4917_v19  ;;  %2716 = vmatpush.msra.mxu3 %v2332_v49  ;;  %v2327_v8 = vld [vmem:[%s5565_s3 + $0x2b8] sm:$0xff]  ;;  %v5130_v49 = vld [vmem:[%s5565_s3 + $0x330] sm:$0xff] }
 0x35b   : > { %2653 = vmatpush.msrb.mxu2 %v2314_v24  ;;  %1949 = vst [vmem:[#allocation4 + $0x2d0] sm:$0xff] %v4921_v6  ;;  %2778 = vmatpush.msra.mxu0 %v5009_v43  ;;  %v5050_v24 = vld [vmem:[%s5565_s3 + $0x360] sm:$0xff]  ;;  %v5118_v14 = vld [vmem:[%s5565_s3 + $0x338] sm:$0xff] }
 0x35c   : > { %2588 = vmatpush.msrb.mxu1 %v2298_v9  ;;  %2003 = vst [vmem:[#allocation4 + $0x398] sm:$0xff] %v4933_v1  ;;  %2717 = vmatpush.msra.mxu3 %v2331_v45  ;;  %v2326_v9 = vld [vmem:[%s5565_s3 + $0x2b0] sm:$0xff]  ;;  %v2320_v45 = vld [vmem:[%s5565_s3 + $0x280] sm:$0xff] }
 0x35d   : > { %2654 = vmatpush.msrb.mxu2 %v2313_v27  ;;  %2017 = vst [vmem:[#allocation4 + $0x2f0] sm:$0xff] %v4933_v1  ;;  %2779 = vmatpush.msra.mxu0 %v5021_v32  ;;  %v5059_v27 = vld [vmem:[%s5565_s3 + $0x358] sm:$0xff] }
 0x35e   : > { %2589 = vmatpush.msrb.mxu1 %v2297_v35  ;;  %2071 = vst [vmem:[#allocation4 + $0xb0] sm:$0xff] %v4937_v11  ;;  %2718 = vmatpush.msra.mxu3 %v2330_v4  ;;  %v2289_v35 = vld [vmem:[%s5565_s3 + $0x188] sm:$0xff] }
 0x35f   : > { %2410 = vmatmul.f32.gmra.mxu1 %v4750_v47  ;;  %2655 = vmatpush.msrb.mxu2 %v2312_v33  ;;  %2085 = vst [vmem:[#allocation4 + $0x510] sm:$0xff] %v4937_v11  ;;  %v5065_v33 = vld [vmem:[#allocation3 + $0x98] sm:$0xff]  ;;  %v5142_v4 = vld [vmem:[%s5565_s3 + $0x328] sm:$0xff] }
 0x360   : > { %2475 = vmatmul.f32.gmra.mxu2 %v4761_v54  ;;  %2590 = vmatpush.msrb.mxu1 %v2296_v58  ;;  %2004 = vst [vmem:[#allocation4 + $0xc0] sm:$0xff] %v4952_v30  ;;  %v2325_v58 = vld [vmem:[%s5565_s3 + $0x2a8] sm:$0xff] }
 0x361   : > { %2540 = vmatmul.f32.gmra.mxu3 %v4773_v0  ;;  %2656 = vmatpush.msrb.mxu2 %v2311_v10  ;;  %2018 = vst [vmem:[#allocation4 + $0x540] sm:$0xff] %v4952_v30  ;;  %v5074_v10 = vld [vmem:[%s5565_s3 + $0x350] sm:$0xff] }
 0x362   : > { %2591 = vmatpush.msrb.mxu1 %v2295_v25  ;;  %2072 = vst [vmem:[#allocation4 + $0x4d8] sm:$0xff] %v4956_v20  ;;  %2719 = vmatpush.msra.mxu3 %v2329_v15  ;;  %v2324_v25 = vld [vmem:[%s5565_s3 + $0x2a0] sm:$0xff] }
 0x363   : > { %2657 = vmatpush.msrb.mxu2 %v2310_v46  ;;  %2086 = vst [vmem:[#allocation4 + $0x2d8] sm:$0xff] %v4956_v20  ;;  %2780 = vmatpush.msra.mxu0 %v5026_v50  ;;  %v5081_v46 = vld [vmem:[#allocation3 + $0x99] sm:$0xff] }
 0x364   : > { %2592 = vmatpush.msrb.mxu1 %v2294_v63  ;;  %1951 = vst [vmem:[#allocation4 + $0x2f8] sm:$0xff] %v4960_v56  ;;  %2720 = vmatpush.msra.mxu3 %v2328_v26  ;;  %v5087_v63 = vld [vmem:[%s5565_s3 + $0x348] sm:$0xff]  ;;  %v2340_v15 = vld [vmem:[%s5565_s3 + $0x320] sm:$0xff] }
 0x365   : > { %2658 = vmatpush.msrb.mxu2 %v2309_v62  ;;  %2005 = vst [vmem:[#allocation4 + $0x3d8] sm:$0xff] %v4981_v55  ;;  %2781 = vmatpush.msra.mxu0 %v5050_v24  ;;  %v5091_v62 = vld [vmem:[#allocation3 + $0x9a] sm:$0xff]  ;;  %v5156_v26 = vld [vmem:[#allocation3 + $0xaa] sm:$0xff] }
 0x366   : > { %2593 = vmatpush.msrb.mxu1 %v2293_v7  ;;  %2019 = vst [vmem:[#allocation4 + $0x70] sm:$0xff] %v4981_v55  ;;  %2721 = vmatpush.msra.mxu3 %v2327_v8  ;;  %v2304_v7 = vld [vmem:[%s5565_s3 + $0x200] sm:$0xff]  ;;  %v5167_v8 = vld [vmem:[#allocation3 + $0xb0] sm:$0xff] }
 0x367   : > { %2413 = vmatmul.f32.gmra.mxu1 %v4784_v23  ;;  %2659 = vmatpush.msrb.mxu2 %v2308_v38  ;;  %2073 = vst [vmem:[#allocation4 + $0x1f8] sm:$0xff] %v4988_v12  ;;  %v2323_v38 = vld [vmem:[%s5565_s3 + $0x298] sm:$0xff] }
 0x368   : > { %2478 = vmatmul.f32.gmra.mxu2 %v4789_v13  ;;  %2594 = vmatpush.msrb.mxu1 %v2292_v60  ;;  %2087 = vst [vmem:[#allocation4 + $0x308] sm:$0xff] %v4988_v12  ;;  %v5105_v60 = vld [vmem:[%s5565_s3 + $0x340] sm:$0xff] }
 0x369   : > { %2543 = vmatmul.f32.gmra.mxu3 %v4798_v37  ;;  %2660 = vmatpush.msrb.mxu2 %v2307_v21  ;;  %2020 = vst [vmem:[#allocation4 + $0x208] sm:$0xff] %v5028_v40  ;;  %v2322_v21 = vld [vmem:[%s5565_s3 + $0x290] sm:$0xff] }
 0x36a   : > { %2595 = vmatpush.msrb.mxu1 %v2291_v52  ;;  %2074 = vst [vmem:[#allocation4 + $0x4b0] sm:$0xff] %v5037_v61  ;;  %2722 = vmatpush.msra.mxu3 %v2326_v9  ;;  %v5121_v52 = vld [vmem:[#allocation3 + $0xa8] sm:$0xff]  ;;  %v5172_v9 = vld [vmem:[%s5565_s3 + $0x310] sm:$0xff] }
 0x36b   : > { %2661 = vmatpush.msrb.mxu2 %v2306_v42  ;;  %2088 = vst [vmem:[#allocation4 + $0x458] sm:$0xff] %v5037_v61  ;;  %2782 = vmatpush.msra.mxu0 %v5059_v27  ;;  %v5134_v42 = vld [vmem:[#allocation3 + $0xa9] sm:$0xff] }
 0x36c   : > { %2596 = vmatpush.msrb.mxu1 %v2290_v3  ;;  %1953 = vst [vmem:[#allocation4 + $0x478] sm:$0xff] %v5065_v33  ;;  %2723 = vmatpush.msra.mxu3 %v2325_v58  ;;  %v2383_v3 = vld [vmem:[%s5565_s3 + $0x478] sm:$0xff] }
 0x36d   : > { %2662 = vmatpush.msrb.mxu2 %v2305_v34  ;;  %2783 = vmatpush.msra.mxu0 %v5074_v10  ;;  %2007 = vst [vmem:[#allocation4 + $0x468] sm:$0xff] %v5081_v46  ;;  %v5162_v34 = vld [vmem:[%s5565_s3 + $0x318] sm:$0xff] }
 0x36e   : > { %2597 = vmatpush.msrb.mxu1 %v2289_v35  ;;  %2724 = vmatpush.msra.mxu3 %v2324_v25  ;;  %2021 = vst [vmem:[#allocation4 + $0x118] sm:$0xff] %v5081_v46  ;;  %v5182_v35 = vld [vmem:[%s5565_s3 + $0x308] sm:$0xff]  ;;  %v5187_v58 = vld [vmem:[#allocation3 + $0xb1] sm:$0xff] }
 0x36f   : > { %2416 = vmatmul.f32.gmra.mxu1 %v4806_v16  ;;  %2784 = vmatpush.msra.mxu0 %v5087_v63  ;;  %2075 = vst [vmem:[#allocation4 + $0x248] sm:$0xff] %v5091_v62  ;;  %v5201_v25 = vld [vmem:[#allocation3 + $0xb2] sm:$0xff] }
 0x370   : > { %2481 = vmatmul.f32.gmra.mxu2 %v4818_v28  ;;  %2725 = vmatpush.msra.mxu3 %v2323_v38  ;;  %2089 = vst [vmem:[#allocation4 + $0x130] sm:$0xff] %v5091_v62 }
 0x371   : > { %2546 = vmatmul.f32.gmra.mxu3 %v4829_v51  ;;  %2663 = vmatpush.msrb.mxu2 %v2304_v7  ;;  %1954 = vst [vmem:[#allocation4 + $0x528] sm:$0xff] %v5121_v52  ;;  %v2366_v7 = vld [vmem:[%s5565_s3 + $0x3f0] sm:$0xff] }
 0x372   : > { %2598 = vmatpush.msrb.mxu1 %v2288_v29  ;;  %2785 = vmatpush.msra.mxu0 %v5105_v60  ;;  %2008 = vst [vmem:[#allocation4 + $0x2a0] sm:$0xff] %v5134_v42  ;;  %v2379_v29 = vld [vmem:[%s5565_s3 + $0x458] sm:$0xff] }
 0x373   : > { %2726 = vmatpush.msra.mxu3 %v2322_v21  ;;  %2022 = vst [vmem:[#allocation4 + $0x560] sm:$0xff] %v5134_v42  ;;  %2908 = vmatpush.msra.mxu2 %v2383_v3 }
 0x374   : > { %2786 = vmatpush.msra.mxu0 %v5118_v14  ;;  %2076 = vst [vmem:[#allocation4 + $0x408] sm:$0xff] %v5156_v26 }
 0x375   : > { %2727 = vmatpush.msra.mxu3 %v2321_v17  ;;  %2090 = vst [vmem:[#allocation4 + $0x238] sm:$0xff] %v5156_v26 }
 0x376   : > { %2787 = vmatpush.msra.mxu0 %v5130_v49  ;;  %1955 = vst [vmem:[#allocation4 + $0x138] sm:$0xff] %v5167_v8 }
 0x377   : > { %2419 = vmatmul.f32.gmra.mxu1 %v4840_v18  ;;  %2728 = vmatpush.msra.mxu3 %v2320_v45  ;;  %2009 = vst [vmem:[#allocation4 + $0x3c8] sm:$0xff] %v5187_v58 }
 0x378   : > { %2484 = vmatmul.f32.gmra.mxu2 %v4846_v57  ;;  %2788 = vmatpush.msra.mxu0 %v5142_v4  ;;  %2023 = vst [vmem:[#allocation4 + $0x448] sm:$0xff] %v5187_v58 }
 0x379   : > { %2549 = vmatmul.f32.gmra.mxu3 %v4853_v41  ;;  %2077 = vst [vmem:[#allocation4 + $0xb8] sm:$0xff] %v5201_v25 }
 0x37a   : > { %3186 = vmatpush.msrb.mxu3 %v5009_v43  ;;  %2789 = vmatpush.msra.mxu0 %v2340_v15  ;;  %v2367_v43 = vld [vmem:[%s5565_s3 + $0x3f8] sm:$0xff]  ;;  %2091 = vst [vmem:[#allocation4 + $0x538] sm:$0xff] %v5201_v25 }
 0x37b   : > { %2843 = vmatpush.msra.mxu1 %v2367_v43  ;;  %v2377_v43 = vld [vmem:[%s5565_s3 + $0x448] sm:$0xff] }
 0x37c   : > { %3187 = vmatpush.msrb.mxu3 %v5021_v32  ;;  %2790 = vmatpush.msra.mxu0 %v5162_v34  ;;  %v2382_v32 = vld [vmem:[%s5565_s3 + $0x470] sm:$0xff] }
 0x37d   : > { %2909 = vmatpush.msra.mxu2 %v2382_v32  ;;  %2844 = vmatpush.msra.mxu1 %v2366_v7 }
 0x37e   : > { %3188 = vmatpush.msrb.mxu3 %v5026_v50  ;;  %2791 = vmatpush.msra.mxu0 %v5172_v9  ;;  %v2336_v50 = vld [vmem:[%s5565_s3 + $0x300] sm:$0xff] }
 0x37f   : > { %2422 = vmatmul.f32.gmra.mxu1 %v4862_v48 }
 0x380   : > { %2487 = vmatmul.f32.gmra.mxu2 %v4865_v31  ;;  %2792 = vmatpush.msra.mxu0 %v5182_v35 }
 0x381   : > { %2552 = vmatmul.f32.gmra.mxu3 %v4878_v53 }
 0x382   : > { %3189 = vmatpush.msrb.mxu3 %v5050_v24  ;;  %2793 = vmatpush.msra.mxu0 %v2336_v50  ;;  %v2381_v24 = vld [vmem:[%s5565_s3 + $0x468] sm:$0xff] }
 0x383   : > { %2794 = vmatmul.f32.vlgmr.msra.gmra.mxu0 %v4806_v16  ;;  %2910 = vmatpush.msra.mxu2 %v2381_v24 }
 0x384   : > { %3190 = vmatpush.msrb.mxu3 %v5059_v27  ;;  %v2365_v27 = vld [vmem:[%s5565_s3 + $0x3e8] sm:$0xff] }
 0x385   : > { %2845 = vmatpush.msra.mxu1 %v2365_v27 }
 0x386   : > { %3191 = vmatpush.msrb.mxu3 %v5074_v10  ;;  %v2380_v10 = vld [vmem:[%s5565_s3 + $0x460] sm:$0xff] }
 0x387   : > { %2425 = vmatmul.f32.gmra.mxu1 %v4881_v5  ;;  %2911 = vmatpush.msra.mxu2 %v2380_v10 }
 0x388   : > { %2490 = vmatmul.f32.gmra.mxu2 %v4885_v2  ;;  %3192 = vmatpush.msrb.mxu3 %v5087_v63  ;;  %v5235_v63 = vld [vmem:[%s5566_s4] ss:$0 sm:$0xff] }
 0x389   : > { %2555 = vmatmul.f32.gmra.mxu3 %v4897_v59  ;;  %2912 = vmatpush.msra.mxu2 %v2379_v29 }
 0x38a   : > { %3193 = vmatpush.msrb.mxu3 %v5105_v60  ;;  %v2364_v60 = vld [vmem:[%s5565_s3 + $0x3e0] sm:$0xff] }
 0x38b   : > { %2797 = vmatmul.f32.gmra.mxu0 %v4840_v18  ;;  %2846 = vmatpush.msra.mxu1 %v2364_v60 }
 0x38c   : > { %3194 = vmatpush.msrb.mxu3 %v5118_v14 }
 0x38e   : > { %3195 = vmatpush.msrb.mxu3 %v5130_v49 }
 0x38f   : > { %2428 = vmatmul.f32.gmra.mxu1 %v4901_v22 }
 0x390   : > { %2493 = vmatmul.f32.gmra.mxu2 %v4907_v44  ;;  %3196 = vmatpush.msrb.mxu3 %v5142_v4  ;;  %v2378_v4 = vld [vmem:[%s5565_s3 + $0x450] sm:$0xff] }
 0x391   : > { %2558 = vmatmul.f32.gmra.mxu3 %v4917_v19  ;;  %2913 = vmatpush.msra.mxu2 %v2378_v4 }
 0x392   : > { %3197 = vmatpush.msrb.mxu3 %v2340_v15 }
 0x393   : > { %2800 = vmatmul.f32.gmra.mxu0 %v4862_v48  ;;  %2914 = vmatpush.msra.mxu2 %v2377_v43 }
 0x394   : > { %3198 = vmatpush.msrb.mxu3 %v5162_v34 }
 0x396   : > { %3199 = vmatpush.msrb.mxu3 %v5172_v9 }
 0x397   : > { %2431 = vmatmul.f32.gmra.mxu1 %v4921_v6 }
 0x398   : > { %2496 = vmatmul.f32.gmra.mxu2 %v4933_v1  ;;  %3200 = vmatpush.msrb.mxu3 %v5182_v35 }
 0x399   : > { %2561 = vmatmul.f32.gmra.mxu3 %v4937_v11 }
 0x39a   : > { %3201 = vmatpush.msrb.mxu3 %v2336_v50 }
 0x39b   : > { %2803 = vmatmul.f32.gmra.mxu0 %v4881_v5 }
 0x39f   : > { %2434 = vmatmul.f32.gmra.mxu1 %v4942_v36 }
 0x3a0   : > { %2499 = vmatmul.f32.gmra.mxu2 %v4952_v30 }
 0x3a1   : > { %2564 = vmatmul.f32.gmra.mxu3 %v4956_v20 }
 0x3a3   : > { %2806 = vmatmul.f32.gmra.mxu0 %v4901_v22 }
 0x3a7   : > { %2437 = vmatmul.f32.gmra.mxu1 %v4960_v56 }
 0x3a8   : > { %2502 = vmatmul.f32.gmra.mxu2 %v4981_v55 }
 0x3a9   : > { %2567 = vmatmul.f32.gmra.mxu3 %v4988_v12 }
 0x3ab   : > { %2809 = vmatmul.f32.gmra.mxu0 %v4921_v6 }
 0x3af   : > { %2440 = vmatmul.f32.gmra.mxu1 %v5004_v39 }
 0x3b0   : > { %2505 = vmatmul.f32.gmra.mxu2 %v5028_v40 }
 0x3b1   : > { %2570 = vmatmul.f32.gmra.mxu3 %v5037_v61 }
 0x3b3   : > { %2812 = vmatmul.f32.gmra.mxu0 %v4942_v36 }
 0x3b7   : > { %2443 = vmatmul.f32.gmra.mxu1 %v5065_v33 }
 0x3b8   : > { %2508 = vmatmul.f32.gmra.mxu2 %v5081_v46 }
 0x3b9   : > { %2573 = vmatmul.f32.gmra.mxu3 %v5091_v62 }
 0x3bb   : > { %2815 = vmatmul.f32.gmra.mxu0 %v4960_v56 }
 0x3bf   : > { %2446 = vmatmul.f32.gmra.mxu1 %v5121_v52 }
 0x3c0   : > { %2511 = vmatmul.f32.gmra.mxu2 %v5134_v42 }
 0x3c1   : > { %2576 = vmatmul.f32.gmra.mxu3 %v5156_v26 }
 0x3c3   : > { %2818 = vmatmul.f32.gmra.mxu0 %v5004_v39 }
 0x3c7   : > { %2449 = vmatmul.f32.gmra.mxu1 %v5167_v8 }
 0x3c8   : > { %2514 = vmatmul.f32.gmra.mxu2 %v5187_v58 }
 0x3c9   : > { %2579 = vmatmul.f32.gmra.mxu3 %v5201_v25 }
 0x3cb   : > { %2821 = vmatmul.f32.gmra.mxu0 %v5065_v33 }
 0x3cc   : > { %v2405_v38 = vpop.f32.mrf.mxu1 }
 0x3cd   : > { %v2406_v21 = vadd.f32 %v5235_v63, %v2405_v38 }
 0x3cf   : > { %2599 = vmatmul.f32.vlgmr.msrb.gmra.mxu1 %v4750_v47 }
 0x3d0   : > { %2664 = vmatmul.f32.vlgmr.msrb.gmra.mxu2 %v4761_v54  ;;  %v2363_v54 = vld [vmem:[%s5565_s3 + $0x3d8] sm:$0xff] }
 0x3d1   : > { %2729 = vmatmul.f32.vlgmr.msra.gmra.mxu3 %v4773_v0  ;;  %2847 = vmatpush.msra.mxu1 %v2363_v54 }
 0x3d3   : > { %v2470_v14 = vpop.f32.mrf.mxu2  ;;  %2824 = vmatmul.f32.gmra.mxu0 %v5121_v52 }
 0x3d4   : > { %v2535_v17 = vpop.f32.mrf.mxu3  ;;  %v2471_v49 = vadd.f32 %v2470_v14, %v2406_v21  ;;  %v2408_v45 = vpop.f32.mrf.mxu1 }
 0x3d5   : > { %v2409_v0 = vadd.f32 %v5235_v63, %v2408_v45 }
 0x3d6   : > { %v5252_v47 = vadd.f32 %v2535_v17, %v2471_v49 }
 0x3d7   : > { %2602 = vmatmul.f32.gmra.mxu1 %v4784_v23 }
 0x3d8   : > { %2667 = vmatmul.f32.gmra.mxu2 %v4789_v13  ;;  %v2362_v13 = vld [vmem:[%s5565_s3 + $0x3d0] sm:$0xff] }
 0x3d9   : > { %2732 = vmatmul.f32.gmra.mxu3 %v4798_v37  ;;  %2848 = vmatpush.msra.mxu1 %v2362_v13 }
 0x3db   : > { %v2473_v3 = vpop.f32.mrf.mxu2  ;;  %2827 = vmatmul.f32.gmra.mxu0 %v5167_v8 }
 0x3dc   : > { %v2538_v15 = vpop.f32.mrf.mxu3  ;;  %v2474_v34 = vadd.f32 %v2473_v3, %v2409_v0  ;;  %v2411_v9 = vpop.f32.mrf.mxu1 }
 0x3dd   : > { %v2412_v37 = vadd.f32 %v5235_v63, %v2411_v9 }
 0x3de   : > { %v5266_v23 = vadd.f32 %v2538_v15, %v2474_v34 }
 0x3df   : > { %2605 = vmatmul.f32.gmra.mxu1 %v4806_v16  ;;  %v2361_v16 = vld [vmem:[%s5565_s3 + $0x3c8] sm:$0xff] }
 0x3e0   : > { %2670 = vmatmul.f32.gmra.mxu2 %v4818_v28  ;;  %2849 = vmatpush.msra.mxu1 %v2361_v16 }
 0x3e1   : > { %2735 = vmatmul.f32.gmra.mxu3 %v4829_v51  ;;  %v2376_v51 = vld [vmem:[%s5565_s3 + $0x440] sm:$0xff] }
 0x3e2   : > { %2915 = vmatpush.msra.mxu2 %v2376_v51 }
 0x3e3   : > { %v2476_v35 = vpop.f32.mrf.mxu2 }
 0x3e4   : > { %v2541_v32 = vpop.f32.mrf.mxu3  ;;  %v2477_v50 = vadd.f32 %v2476_v35, %v2412_v37  ;;  %v2414_v7 = vpop.f32.mrf.mxu1 }
 0x3e5   : > { %v2415_v28 = vadd.f32 %v5235_v63, %v2414_v7 }
 0x3e6   : > { %v5279_v24 = vadd.f32 %v2541_v32, %v2477_v50 }
 0x3e7   : > { %2608 = vmatmul.f32.gmra.mxu1 %v4840_v18  ;;  %v2360_v18 = vld [vmem:[%s5565_s3 + $0x3c0] sm:$0xff] }
 0x3e8   : > { %2673 = vmatmul.f32.gmra.mxu2 %v4846_v57  ;;  %2850 = vmatpush.msra.mxu1 %v2360_v18 }
 0x3e9   : > { %2738 = vmatmul.f32.gmra.mxu3 %v4853_v41  ;;  %v2375_v41 = vld [vmem:[%s5565_s3 + $0x438] sm:$0xff] }
 0x3ea   : > { %2916 = vmatpush.msra.mxu2 %v2375_v41 }
 0x3eb   : > { %v2479_v27 = vpop.f32.mrf.mxu2 }
 0x3ec   : > { %v2544_v10 = vpop.f32.mrf.mxu3  ;;  %v2480_v38 = vadd.f32 %v2479_v27, %v2415_v28  ;;  %v2417_v60 = vpop.f32.mrf.mxu1 }
 0x3ed   : > { %v2418_v57 = vadd.f32 %v5235_v63, %v2417_v60  ;;  %v5369_v60 = vld [vmem:[#allocation3 + $0xc0] sm:$0xff] }
 0x3ee   : > { %v5292_v21 = vadd.f32 %v2544_v10, %v2480_v38  ;;  %1956 = vst [vmem:[#allocation4 + $0x310] sm:$0xff] %v5369_v60  ;;  %2830 = vmatmul.f32.gmra.mxu0 %v5369_v60 }
 0x3ef   : > { %2611 = vmatmul.f32.gmra.mxu1 %v4862_v48  ;;  %v2359_v48 = vld [vmem:[%s5565_s3 + $0x3b8] sm:$0xff] }
 0x3f0   : > { %2676 = vmatmul.f32.gmra.mxu2 %v4865_v31  ;;  %2851 = vmatpush.msra.mxu1 %v2359_v48 }
 0x3f1   : > { %2741 = vmatmul.f32.gmra.mxu3 %v4878_v53  ;;  %v2374_v53 = vld [vmem:[%s5565_s3 + $0x430] sm:$0xff] }
 0x3f2   : > { %2917 = vmatpush.msra.mxu2 %v2374_v53 }
 0x3f3   : > { %v2482_v29 = vpop.f32.mrf.mxu2 }
 0x3f4   : > { %v2547_v14 = vpop.f32.mrf.mxu3  ;;  %v2483_v17 = vadd.f32 %v2482_v29, %v2418_v57  ;;  %v2420_v49 = vpop.f32.mrf.mxu1 }
 0x3f5   : > { %v2421_v31 = vadd.f32 %v5235_v63, %v2420_v49  ;;  %v5389_v49 = vld [vmem:[#allocation3 + $0xc2] sm:$0xff] }
 0x3f6   : > { %v5305_v45 = vadd.f32 %v2547_v14, %v2483_v17  ;;  %v2369_v17 = vld [vmem:[%s5565_s3 + $0x408] sm:$0xff]  ;;  %2078 = vst [vmem:[#allocation4 + $0x150] sm:$0xff] %v5389_v49 }
 0x3f7   : > { %2614 = vmatmul.f32.gmra.mxu1 %v4881_v5  ;;  %v2358_v5 = vld [vmem:[%s5565_s3 + $0x3b0] sm:$0xff]  ;;  %2092 = vst [vmem:[#allocation4 + $0x598] sm:$0xff] %v5389_v49 }
 0x3f8   : > { %2679 = vmatmul.f32.gmra.mxu2 %v4885_v2  ;;  %2852 = vmatpush.msra.mxu1 %v2358_v5  ;;  %v5409_v5 = vld [vmem:[#allocation3 + $0xca] sm:$0xff] }
 0x3f9   : > { %2744 = vmatmul.f32.gmra.mxu3 %v4897_v59  ;;  %v2373_v59 = vld [vmem:[%s5565_s3 + $0x428] sm:$0xff]  ;;  %2079 = vst [vmem:[#allocation4 + $0x2a8] sm:$0xff] %v5409_v5 }
 0x3fa   : > { %2918 = vmatpush.msra.mxu2 %v2373_v59  ;;  %2093 = vst [vmem:[#allocation4 + $0x178] sm:$0xff] %v5409_v5 }
 0x3fb   : > { %v2485_v54 = vpop.f32.mrf.mxu2 }
 0x3fc   : > { %v2550_v0 = vpop.f32.mrf.mxu3  ;;  %v2486_v4 = vadd.f32 %v2485_v54, %v2421_v31  ;;  %v2423_v3 = vpop.f32.mrf.mxu1  ;;  %v2353_v54 = vld [vmem:[%s5565_s3 + $0x388] sm:$0xff] }
 0x3fd   : > { %v2424_v2 = vadd.f32 %v5235_v63, %v2423_v3  ;;  %v2368_v3 = vld [vmem:[%s5565_s3 + $0x400] sm:$0xff] }
 0x3fe   : > { %v5318_v15 = vadd.f32 %v2550_v0, %v2486_v4  ;;  %v5399_v0 = vld [vmem:[#allocation3 + $0xc9] sm:$0xff] }
 0x3ff   : > { %2617 = vmatmul.f32.gmra.mxu1 %v4901_v22  ;;  %v2357_v22 = vld [vmem:[%s5565_s3 + $0x3a8] sm:$0xff]  ;;  %2011 = vst [vmem:[#allocation4 + $0x288] sm:$0xff] %v5399_v0 }
 0x400   : > { %2682 = vmatmul.f32.gmra.mxu2 %v4907_v44  ;;  %2853 = vmatpush.msra.mxu1 %v2357_v22  ;;  %2025 = vst [vmem:[#allocation4 + $0x1b8] sm:$0xff] %v5399_v0 }
 0x401   : > { %2747 = vmatmul.f32.gmra.mxu3 %v4917_v19  ;;  %v2372_v19 = vld [vmem:[%s5565_s3 + $0x420] sm:$0xff] }
 0x402   : > { %2919 = vmatpush.msra.mxu2 %v2372_v19 }
 0x403   : > { %v2488_v34 = vpop.f32.mrf.mxu2 }
 0x404   : > { %v2553_v9 = vpop.f32.mrf.mxu3  ;;  %v2489_v13 = vadd.f32 %v2488_v34, %v2424_v2  ;;  %v2426_v37 = vpop.f32.mrf.mxu1  ;;  %v2352_v34 = vld [vmem:[%s5565_s3 + $0x380] sm:$0xff] }
 0x405   : > { %v2427_v44 = vadd.f32 %v5235_v63, %v2426_v37 }
 0x406   : > { %v5331_v43 = vadd.f32 %v2553_v9, %v2489_v13  ;;  %v1910_v9 = vld [vmem:[#allocation3 + $0xd8] sm:$0xff] }
 0x407   : > { %2620 = vmatmul.f32.gmra.mxu1 %v4921_v6  ;;  %v2356_v6 = vld [vmem:[%s5565_s3 + $0x3a0] sm:$0xff]  ;;  %1958 = vst [vmem:[#allocation4 + $0x438] sm:$0xff] %v1910_v9 }
 0x408   : > { %2685 = vmatmul.f32.gmra.mxu2 %v4933_v1  ;;  %2854 = vmatpush.msra.mxu1 %v2356_v6 }
 0x409   : > { %2750 = vmatmul.f32.gmra.mxu3 %v4937_v11  ;;  %v2371_v11 = vld [vmem:[%s5565_s3 + $0x418] sm:$0xff] }
 0x40a   : > { %2920 = vmatpush.msra.mxu2 %v2371_v11 }
 0x40b   : > { %v2491_v35 = vpop.f32.mrf.mxu2 }
 0x40c   : > { %v2556_v32 = vpop.f32.mrf.mxu3  ;;  %v2492_v50 = vadd.f32 %v2491_v35, %v2427_v44  ;;  %v2429_v7 = vpop.f32.mrf.mxu1 }
 0x40d   : > { %v2430_v1 = vadd.f32 %v5235_v63, %v2429_v7 }
 0x40e   : > { %v5344_v16 = vadd.f32 %v2556_v32, %v2492_v50  ;;  %v1911_v32 = vld [vmem:[#allocation3 + $0xe0] sm:$0xff] }
 0x40f   : > { %2623 = vmatmul.f32.gmra.mxu1 %v4942_v36  ;;  %v2355_v36 = vld [vmem:[%s5565_s3 + $0x398] sm:$0xff]  ;;  %1959 = vst [vmem:[#allocation4 + $0x108] sm:$0xff] %v1911_v32 }
 0x410   : > { %2688 = vmatmul.f32.gmra.mxu2 %v4952_v30  ;;  %2855 = vmatpush.msra.mxu1 %v2355_v36 }
 0x411   : > { %2753 = vmatmul.f32.gmra.mxu3 %v4956_v20  ;;  %v2370_v20 = vld [vmem:[%s5565_s3 + $0x410] sm:$0xff] }
 0x412   : > { %2921 = vmatpush.msra.mxu2 %v2370_v20 }
 0x413   : > { %v2494_v28 = vpop.f32.mrf.mxu2 }
 0x414   : > { %v2559_v51 = vpop.f32.mrf.mxu3  ;;  %v2495_v27 = vadd.f32 %v2494_v28, %v2430_v1  ;;  %v2432_v10 = vpop.f32.mrf.mxu1  ;;  %2922 = vmatpush.msra.mxu2 %v2369_v17  ;;  %v2112_v17 = vld [vmem:[#allocation4 + $0x498] sm:$0xff] }
 0x415   : > { %v2433_v30 = vadd.f32 %v5235_v63, %v2432_v10 }
 0x416   : > { %v5357_v38 = vadd.f32 %v2559_v51, %v2495_v27  ;;  %2923 = vmatpush.msra.mxu2 %v2368_v3 }
 0x417   : > { %2626 = vmatmul.f32.gmra.mxu1 %v4960_v56 }
 0x418   : > { %2691 = vmatmul.f32.gmra.mxu2 %v4981_v55  ;;  %v2354_v55 = vld [vmem:[%s5565_s3 + $0x390] sm:$0xff] }
 0x419   : > { %2756 = vmatmul.f32.gmra.mxu3 %v4988_v12  ;;  %v5379_v12 = vld [vmem:[#allocation3 + $0xc1] sm:$0xff]  ;;  %2856 = vmatpush.msra.mxu1 %v2354_v55 }
 0x41a   : > { %2010 = vst [vmem:[#allocation4 + $0x1e0] sm:$0xff] %v5379_v12 }
 0x41b   : > { %v2497_v18 = vpop.f32.mrf.mxu2  ;;  %2024 = vst [vmem:[#allocation4 + $0x298] sm:$0xff] %v5379_v12  ;;  %2857 = vmatpush.msra.mxu1 %v2353_v54  ;;  %v2121_v54 = vld [vmem:[#allocation4 + $0x370] sm:$0xff] }
 0x41c   : > { %v2562_v57 = vpop.f32.mrf.mxu3  ;;  %v2498_v41 = vadd.f32 %v2497_v18, %v2433_v30  ;;  %v2435_v56 = vpop.f32.mrf.mxu1 }
 0x41d   : > { %v2436_v14 = vadd.f32 %v5235_v63, %v2435_v56  ;;  %2858 = vmatpush.msra.mxu1 %v2352_v34 }
 0x41e   : > { %v5373_v29 = vadd.f32 %v2562_v57, %v2498_v41  ;;  %v2104_v57 = vld [vmem:[#allocation4 + $0x518] sm:$0xff] }
 0x41f   : > { %2629 = vmatmul.f32.gmra.mxu1 %v5004_v39  ;;  %v1909_v39 = vld [vmem:[#allocation3 + $0xc8] sm:$0xff] }
 0x420   : > { %2694 = vmatmul.f32.gmra.mxu2 %v5028_v40  ;;  %1957 = vst [vmem:[#allocation4 + $0x390] sm:$0xff] %v1909_v39  ;;  %2833 = vmatmul.f32.gmra.mxu0 %v1909_v39 }
 0x421   : > { %2759 = vmatmul.f32.gmra.mxu3 %v5037_v61 }
 0x423   : > { %v2500_v48 = vpop.f32.mrf.mxu2 }
 0x424   : > { %v2565_v31 = vpop.f32.mrf.mxu3  ;;  %v2501_v40 = vadd.f32 %v2500_v48, %v2436_v14  ;;  %v2438_v61 = vpop.f32.mrf.mxu1 }
 0x425   : > { %v2439_v4 = vadd.f32 %v5235_v63, %v2438_v61 }
 0x426   : > { %v5393_v53 = vadd.f32 %v2565_v31, %v2501_v40 }
 0x427   : > { %2632 = vmatmul.f32.gmra.mxu1 %v5065_v33 }
 0x428   : > { %2697 = vmatmul.f32.gmra.mxu2 %v5081_v46 }
 0x429   : > { %2762 = vmatmul.f32.gmra.mxu3 %v5091_v62 }
 0x42b   : > { %v2503_v33 = vpop.f32.mrf.mxu2 }
 0x42c   : > { %v2568_v2 = vpop.f32.mrf.mxu3  ;;  %v2504_v46 = vadd.f32 %v2503_v33, %v2439_v4  ;;  %v2441_v62 = vpop.f32.mrf.mxu1  ;;  %v2122_v4 = vld [vmem:[#allocation4 + $0x90] sm:$0xff] }
 0x42d   : > { %v2442_v13 = vadd.f32 %v5235_v63, %v2441_v62  ;;  %v2131_v62 = vld [vmem:[#allocation4 + $0x348] sm:$0xff] }
 0x42e   : > { %v5413_v59 = vadd.f32 %v2568_v2, %v2504_v46  ;;  %v2130_v46 = vld [vmem:[#allocation4 + $0x1a0] sm:$0xff] }
 0x42f   : > { %2635 = vmatmul.f32.gmra.mxu1 %v5121_v52 }
 0x430   : > { %2700 = vmatmul.f32.gmra.mxu2 %v5134_v42 }
 0x431   : > { %2765 = vmatmul.f32.gmra.mxu3 %v5156_v26 }
 0x433   : > { %v2506_v37 = vpop.f32.mrf.mxu2 }
 0x434   : > { %v2571_v22 = vpop.f32.mrf.mxu3  ;;  %v2507_v44 = vadd.f32 %v2506_v37, %v2442_v13  ;;  %v2444_v19 = vpop.f32.mrf.mxu1  ;;  %v2139_v37 = vld [vmem:[#allocation4 + $0x1c0] sm:$0xff] }
 0x435   : > { %v2445_v50 = vadd.f32 %v5235_v63, %v2444_v19 }
 0x436   : > { %v5422_v35 = vadd.f32 %v2571_v22, %v2507_v44  ;;  %v2140_v22 = vld [vmem:[#allocation4 + $0x198] sm:$0xff] }
 0x437   : > { %2638 = vmatmul.f32.gmra.mxu1 %v5167_v8 }
 0x438   : > { %2703 = vmatmul.f32.gmra.mxu2 %v5187_v58 }
 0x439   : > { %2768 = vmatmul.f32.gmra.mxu3 %v5201_v25 }
 0x43b   : > { %v2509_v52 = vpop.f32.mrf.mxu2 }
 0x43c   : > { %v2574_v42 = vpop.f32.mrf.mxu3  ;;  %v2510_v26 = vadd.f32 %v2509_v52, %v2445_v50  ;;  %v2447_v7 = vpop.f32.mrf.mxu1  ;;  %v2148_v50 = vld [vmem:[#allocation4 + $0x2f0] sm:$0xff] }
 0x43d   : > { %v2448_v1 = vadd.f32 %v5235_v63, %v2447_v7  ;;  %v2149_v52 = vld [vmem:[#allocation4 + $0x510] sm:$0xff] }
 0x43e   : > { %v5428_v6 = vadd.f32 %v2574_v42, %v2510_v26 }
 0x43f   : > { %2641 = vmatmul.f32.gmra.mxu1 %v5369_v60  ;;  %v2103_v60 = vld [vmem:[#allocation4 + $0x3f8] sm:$0xff] }
 0x440   : > { %2706 = vmatmul.f32.gmra.mxu2 %v5379_v12 }
 0x441   : > { %2771 = vmatmul.f32.gmra.mxu3 %v5389_v49 }
 0x443   : > { %v2512_v8 = vpop.f32.mrf.mxu2 }
 0x444   : > { %v2577_v11 = vpop.f32.mrf.mxu3  ;;  %v2513_v28 = vadd.f32 %v2512_v8, %v2448_v1  ;;  %v2450_v51 = vpop.f32.mrf.mxu1  ;;  %v2157_v1 = vld [vmem:[#allocation4 + $0x540] sm:$0xff]  ;;  %v2158_v8 = vld [vmem:[#allocation4 + $0x2d8] sm:$0xff] }
 0x445   : > { %v2451_v10 = vadd.f32 %v5235_v63, %v2450_v51 }
 0x446   : > { %v5434_v27 = vadd.f32 %v2577_v11, %v2513_v28 }
 0x447   : > { %2644 = vmatmul.f32.gmra.mxu1 %v1909_v39  ;;  %v2113_v39 = vld [vmem:[#allocation4 + $0x120] sm:$0xff] }
 0x448   : > { %2709 = vmatmul.f32.gmra.mxu2 %v5399_v0 }
 0x449   : > { %2774 = vmatmul.f32.gmra.mxu3 %v5409_v5 }
 0x44b   : > { %v2515_v36 = vpop.f32.mrf.mxu2 }
 0x44c   : > { %v2516_v30 = vadd.f32 %v2515_v36, %v2451_v10  ;;  %v2600_v20 = vpop.f32.mrf.mxu1  ;;  %v2580_v18 = vpop.f32.mrf.mxu3  ;;  %v2166_v10 = vld [vmem:[#allocation4 + $0x70] sm:$0xff]  ;;  %v2167_v36 = vld [vmem:[#allocation4 + $0x308] sm:$0xff] }
 0x44d   : > { %v2601_v56 = vadd.f32 %v2600_v20, %v5252_v47 }
 0x44e   : > { %v5439_v41 = vadd.f32 %v2580_v18, %v2516_v30  ;;  %v2175_v18 = vld [vmem:[#allocation4 + $0x208] sm:$0xff] }
 0x44f   : > { %2859 = vmatmul.f32.vlgmr.msra.gmra.mxu1 %v2103_v60 }
 0x450   : > { %2924 = vmatmul.f32.vlgmr.msra.gmra.mxu2 %v2104_v57 }
 0x451   : > { %2836 = vmatmul.f32.vlgmr.msrb.gmra.mxu3 %v1910_v9 }
 0x453   : > { %v2665_v55 = vpop.f32.mrf.mxu2 }
 0x454   : > { %v5442_v14 = vadd.f32 %v2665_v55, %v2601_v56  ;;  %v2603_v63 = vpop.f32.mrf.mxu1  ;;  %v2176_v56 = vld [vmem:[#allocation4 + $0x458] sm:$0xff] }
 0x455   : > { %v2604_v48 = vadd.f32 %v2603_v63, %v5266_v23 }
 0x457   : > { %2862 = vmatmul.f32.gmra.mxu1 %v2112_v17  ;;  %v2184_v17 = vld [vmem:[#allocation4 + $0x118] sm:$0xff] }
 0x458   : > { %2927 = vmatmul.f32.gmra.mxu2 %v2113_v39 }
 0x459   : > { %2839 = vmatmul.f32.gmra.mxu3 %v1911_v32 }
 0x45b   : > { %v2668_v31 = vpop.f32.mrf.mxu2 }
 0x45c   : > { %v5445_v40 = vadd.f32 %v2668_v31, %v2604_v48  ;;  %v2606_v61 = vpop.f32.mrf.mxu1  ;;  %v2185_v48 = vld [vmem:[#allocation4 + $0x130] sm:$0xff] }
 0x45d   : > { %v2607_v47 = vadd.f32 %v2606_v61, %v5279_v24 }
 0x45f   : > { %2865 = vmatmul.f32.gmra.mxu1 %v2121_v54 }
 0x460   : > { %2930 = vmatmul.f32.gmra.mxu2 %v2122_v4  ;;  %v2193_v4 = vld [vmem:[#allocation4 + $0x560] sm:$0xff] }
 0x463   : > { %v2671_v3 = vpop.f32.mrf.mxu2 }
 0x464   : > { %v5448_v33 = vadd.f32 %v2671_v3, %v2607_v47  ;;  %v2609_v2 = vpop.f32.mrf.mxu1  ;;  %v2194_v47 = vld [vmem:[#allocation4 + $0x238] sm:$0xff]  ;;  %v1978_v3 = vld [vmem:[#allocation3 + $0xd9] sm:$0xff] }
 0x465   : > { %v2610_v23 = vadd.f32 %v2609_v2, %v5292_v21  ;;  %2026 = vst [vmem:[#allocation4 + $0x268] sm:$0xff] %v1978_v3  ;;  %v2046_v2 = vld [vmem:[#allocation3 + $0xda] sm:$0xff] }
 0x466   : > { %2094 = vst [vmem:[#allocation4 + $0x260] sm:$0xff] %v2046_v2 }
 0x467   : > { %2868 = vmatmul.f32.gmra.mxu1 %v2130_v46 }
 0x468   : > { %2933 = vmatmul.f32.gmra.mxu2 %v2131_v62 }
 0x46b   : > { %v2674_v34 = vpop.f32.mrf.mxu2 }
 0x46c   : > { %v5451_v9 = vadd.f32 %v2674_v34, %v2610_v23  ;;  %v2612_v13 = vpop.f32.mrf.mxu1 }
 0x46d   : > { %v2613_v24 = vadd.f32 %v2612_v13, %v5305_v45  ;;  %v1979_v13 = vld [vmem:[#allocation3 + $0xe1] sm:$0xff] }
 0x46e   : > { %2027 = vst [vmem:[#allocation4 + $0x170] sm:$0xff] %v1979_v13 }
 0x46f   : > { %2871 = vmatmul.f32.gmra.mxu1 %v2139_v37  ;;  %v2047_v37 = vld [vmem:[#allocation3 + $0xe2] sm:$0xff] }
 0x470   : > { %2936 = vmatmul.f32.gmra.mxu2 %v2140_v22  ;;  %2095 = vst [vmem:[#allocation4 + $0x2b0] sm:$0xff] %v2047_v37 }
 0x473   : > { %v2677_v44 = vpop.f32.mrf.mxu2 }
 0x474   : > { %v5454_v19 = vadd.f32 %v2677_v44, %v2613_v24  ;;  %v2615_v32 = vpop.f32.mrf.mxu1 }
 0x475   : > { %v2616_v21 = vadd.f32 %v2615_v32, %v5318_v15 }
 0x477   : > { %2874 = vmatmul.f32.gmra.mxu1 %v2148_v50 }
 0x478   : > { %2939 = vmatmul.f32.gmra.mxu2 %v2149_v52 }
 0x47b   : > { %v2680_v42 = vpop.f32.mrf.mxu2 }
 0x47c   : > { %v5457_v26 = vadd.f32 %v2680_v42, %v2616_v21  ;;  %v2618_v7 = vpop.f32.mrf.mxu1 }
 0x47d   : > { %v2619_v45 = vadd.f32 %v2618_v7, %v5331_v43 }
 0x47f   : > { %2877 = vmatmul.f32.gmra.mxu1 %v2157_v1 }
 0x480   : > { %2942 = vmatmul.f32.gmra.mxu2 %v2158_v8 }
 0x483   : > { %v2683_v11 = vpop.f32.mrf.mxu2 }
 0x484   : > { %v5460_v28 = vadd.f32 %v2683_v11, %v2619_v45  ;;  %v2621_v51 = vpop.f32.mrf.mxu1 }
 0x485   : > { %v2622_v15 = vadd.f32 %v2621_v51, %v5344_v16  ;;  %v2730_v16 = vpop.f32.mrf.mxu3 }
 0x486   : > { %v2731_v51 = vadd.f32 %v2730_v16, %v5442_v14 }
 0x487   : > { %2880 = vmatmul.f32.gmra.mxu1 %v2166_v10 }
 0x488   : > { %2945 = vmatmul.f32.gmra.mxu2 %v2167_v36 }
 0x48b   : > { %v2686_v30 = vpop.f32.mrf.mxu2 }
 0x48c   : > { %v5463_v20 = vadd.f32 %v2686_v30, %v2622_v15  ;;  %v2624_v60 = vpop.f32.mrf.mxu1 }
 0x48d   : > { %v2625_v57 = vadd.f32 %v2624_v60, %v5357_v38  ;;  %v2733_v23 = vpop.f32.mrf.mxu3 }
 0x48f   : > { %2883 = vmatmul.f32.gmra.mxu1 %v2175_v18  ;;  %v2975_v18 = vld [vmem:[%s5498_s15] sm:$0xff] }
 0x490   : > { %2948 = vmatmul.f32.gmra.mxu2 %v2176_v56 }
 0x493   : > { %v2689_v43 = vpop.f32.mrf.mxu2 }
 0x494   : > { %v5466_v55 = vadd.f32 %v2689_v43, %v2625_v57  ;;  %v2627_v63 = vpop.f32.mrf.mxu1  ;;  %v2734_v57 = vadd.f32 %v2733_v23, %v5445_v40 }
 0x495   : > { %v2628_v39 = vadd.f32 %v2627_v63, %v5373_v29  ;;  %v2736_v32 = vpop.f32.mrf.mxu3 }
 0x497   : > { %2886 = vmatmul.f32.gmra.mxu1 %v2184_v17 }
 0x498   : > { %2951 = vmatmul.f32.gmra.mxu2 %v2185_v48 }
 0x49b   : > { %v2692_v31 = vpop.f32.mrf.mxu2 }
 0x49c   : > { %v5469_v61 = vadd.f32 %v2692_v31, %v2628_v39  ;;  %v2630_v54 = vpop.f32.mrf.mxu1 }
 0x49d   : > { %v2631_v38 = vadd.f32 %v2630_v54, %v5393_v53  ;;  %v2976_v54 = vld [vmem:[%s5498_s15 + $0x8] sm:$0xff] }
 0x49f   : > { %2889 = vmatmul.f32.gmra.mxu1 %v2193_v4  ;;  %v2737_v4 = vadd.f32 %v2736_v32, %v5448_v33 }
 0x4a0   : > { %2954 = vmatmul.f32.gmra.mxu2 %v2194_v47 }
 0x4a3   : > { %v2695_v46 = vpop.f32.mrf.mxu2 }
 0x4a4   : > { %v5472_v29 = vadd.f32 %v2695_v46, %v2631_v38  ;;  %v2633_v62 = vpop.f32.mrf.mxu1 }
 0x4a5   : > { %v2634_v34 = vadd.f32 %v2633_v62, %v5413_v59  ;;  %v2795_v59 = vpop.f32.mrf.mxu0 }
 0x4a6   : > { %v2796_v15 = vadd.f32 %v2795_v59, %v2731_v51 }
 0x4a7   : > { %2892 = vmatmul.f32.gmra.mxu1 %v5187_v58 }
 0x4a8   : > { %2957 = vmatmul.f32.gmra.mxu2 %v5201_v25  ;;  %v2739_v25 = vpop.f32.mrf.mxu3 }
 0x4ab   : > { %v2698_v53 = vpop.f32.mrf.mxu2 }
 0x4ac   : > { %v5477_v22 = vadd.f32 %v2698_v53, %v2634_v34  ;;  %v2636_v24 = vpop.f32.mrf.mxu1  ;;  %v2977_v34 = vld [vmem:[%s5498_s15 + $0x10] sm:$0xff] }
 0x4ad   : > { %v2637_v44 = vadd.f32 %v2636_v24, %v5422_v35  ;;  %v2798_v1 = vpop.f32.mrf.mxu0 }
 0x4ae   : > { %v2799_v17 = vadd.f32 %v2798_v1, %v2734_v57  ;;  %v2980_v57 = vld [vmem:[%s5498_s15 + $0x28] sm:$0xff] }
 0x4af   : > { %2895 = vmatmul.f32.gmra.mxu1 %v5379_v12 }
 0x4b0   : > { %2960 = vmatmul.f32.gmra.mxu2 %v5389_v49  ;;  %v2742_v49 = vpop.f32.mrf.mxu3 }
 0x4b3   : > { %v2701_v50 = vpop.f32.mrf.mxu2 }
 0x4b4   : > { %v5482_v52 = vadd.f32 %v2701_v50, %v2637_v44  ;;  %v2639_v58 = vpop.f32.mrf.mxu1 }
 0x4b5   : > { %v2640_v21 = vadd.f32 %v2639_v58, %v5428_v6 }
 0x4b7   : > { %2898 = vmatmul.f32.gmra.mxu1 %v5399_v0 }
 0x4b8   : > { %2963 = vmatmul.f32.gmra.mxu2 %v5409_v5  ;;  %v2801_v5 = vpop.f32.mrf.mxu0  ;;  %v2745_v36 = vpop.f32.mrf.mxu3 }
 0x4b9   : > { %v2802_v40 = vadd.f32 %v2801_v5, %v2737_v4  ;;  %v2979_v5 = vld [vmem:[%s5498_s15 + $0x20] sm:$0xff] }
 0x4bb   : > { %v2704_v42 = vpop.f32.mrf.mxu2 }
 0x4bc   : > { %v5487_v7 = vadd.f32 %v2704_v42, %v2640_v21  ;;  %v2642_v35 = vpop.f32.mrf.mxu1  ;;  %v2978_v21 = vld [vmem:[%s5498_s15 + $0x18] sm:$0xff]  ;;  %v2743_v42 = vadd.f32 %v2742_v49, %v5454_v19 }
 0x4bd   : > { %v2643_v12 = vadd.f32 %v2642_v35, %v5434_v27 }
 0x4bf   : > { %2901 = vmatmul.f32.gmra.mxu1 %v1978_v3 }
 0x4c0   : > { %2966 = vmatmul.f32.gmra.mxu2 %v2046_v2  ;;  %v2804_v30 = vpop.f32.mrf.mxu0  ;;  %v2748_v63 = vpop.f32.mrf.mxu3 }
 0x4c3   : > { %v2707_v8 = vpop.f32.mrf.mxu2 }
 0x4c4   : > { %v5490_v45 = vadd.f32 %v2707_v8, %v2643_v12  ;;  %v2645_v6 = vpop.f32.mrf.mxu1 }
 0x4c5   : > { %v2646_v0 = vadd.f32 %v2645_v6, %v5439_v41 }
 0x4c7   : > { %2904 = vmatmul.f32.gmra.mxu1 %v1979_v13  ;;  %v2740_v13 = vadd.f32 %v2739_v25, %v5451_v9 }
 0x4c8   : > { %2969 = vmatmul.f32.gmra.mxu2 %v2047_v37  ;;  %v2807_v16 = vpop.f32.mrf.mxu0  ;;  %v2751_v46 = vpop.f32.mrf.mxu3 }
 0x4c9   : > { %v2805_v33 = vadd.f32 %v2804_v30, %v2740_v13  ;;  %v2808_v25 = vadd.f32 %v2807_v16, %v2743_v42  ;;  %v2752_v4 = vadd.f32 %v2751_v46, %v5463_v20 }
 0x4cb   : > { %v2710_v11 = vpop.f32.mrf.mxu2 }
 0x4cc   : > { %v5494_v10 = vadd.f32 %v2710_v11, %v2646_v0  ;;  %v2860_v27 = vpop.f32.mrf.mxu1  ;;  %v2746_v11 = vadd.f32 %v2745_v36, %v5457_v26 }
 0x4cd   : > { %v2861_v60 = vadd.f32 %v2860_v27, %v2796_v15 }
 0x4d0   : > { %v2810_v24 = vpop.f32.mrf.mxu0  ;;  %v2754_v50 = vpop.f32.mrf.mxu3 }
 0x4d1   : > { %v2811_v19 = vadd.f32 %v2810_v24, %v2746_v11 }
 0x4d3   : > { %v2925_v41 = vpop.f32.mrf.mxu2 }
 0x4d4   : > { %v2926_v56 = vadd.f32 %v2925_v41, %v2861_v60  ;;  %v2863_v43 = vpop.f32.mrf.mxu1 }
 0x4d5   : > { %v2864_v48 = vadd.f32 %v2863_v43, %v2799_v17 }
 0x4d6   : > { %v2991_v14 = vadd.f32 %v2975_v18, %v2926_v56  ;;  %v2749_v56 = vadd.f32 %v2748_v63, %v5460_v28 }
 0x4d8   : > { %v3007_v39 = vmax.f32 %v2991_v14, 0.0  ;;  %v2813_v9 = vpop.f32.mrf.mxu0  ;;  %v2757_v15 = vpop.f32.mrf.mxu3 }
 0x4d9   : > { %v2814_v36 = vadd.f32 %v2813_v9, %v2749_v56 }
 0x4da   : > { %3023 = vst [vmem:[%s3363_s11] sm:$0xff] %v3007_v39 }
 0x4db   : > { %v2928_v31 = vpop.f32.mrf.mxu2 }
 0x4dc   : > { %v2929_v38 = vadd.f32 %v2928_v31, %v2864_v48  ;;  %v2866_v47 = vpop.f32.mrf.mxu1 }
 0x4dd   : > { %v2867_v62 = vadd.f32 %v2866_v47, %v2802_v40 }
 0x4de   : > { %v2992_v3 = vadd.f32 %v2976_v54, %v2929_v38  ;;  %v2981_v54 = vld [vmem:[%s5498_s15 + $0x30] sm:$0xff] }
 0x4e0   : > { %v3008_v2 = vmax.f32 %v2992_v3, 0.0  ;;  %v2816_v60 = vpop.f32.mrf.mxu0  ;;  %v2760_v26 = vpop.f32.mrf.mxu3 }
 0x4e1   : > { %v2817_v28 = vadd.f32 %v2816_v60, %v2752_v4 }
 0x4e2   : > { %3024 = vst [vmem:[%s3363_s11 + $0x8] sm:$0xff] %v3008_v2 }
 0x4e3   : > { %v2931_v23 = vpop.f32.mrf.mxu2 }
 0x4e4   : > { %v2932_v37 = vadd.f32 %v2931_v23, %v2867_v62  ;;  %v2869_v53 = vpop.f32.mrf.mxu1  ;;  %v2982_v23 = vld [vmem:[%s5498_s15 + $0x38] sm:$0xff] }
 0x4e5   : > { %v2870_v59 = vadd.f32 %v2869_v53, %v2805_v33 }
 0x4e6   : > { %v2993_v44 = vadd.f32 %v2977_v34, %v2932_v37  ;;  %v2755_v34 = vadd.f32 %v2754_v50, %v5466_v55 }
 0x4e8   : > { %v3009_v32 = vmax.f32 %v2993_v44, 0.0  ;;  %v2819_v16 = vpop.f32.mrf.mxu0  ;;  %v2763_v40 = vpop.f32.mrf.mxu3 }
 0x4e9   : > { %v2820_v20 = vadd.f32 %v2819_v16, %v2755_v34 }
 0x4ea   : > { %3025 = vst [vmem:[%s3363_s11 + $0x10] sm:$0xff] %v3009_v32 }
 0x4eb   : > { %v2934_v58 = vpop.f32.mrf.mxu2 }
 0x4ec   : > { %v2935_v35 = vadd.f32 %v2934_v58, %v2870_v59  ;;  %v2872_v1 = vpop.f32.mrf.mxu1  ;;  %v2983_v59 = vld [vmem:[%s5498_s15 + $0x40] sm:$0xff]  ;;  %v2758_v58 = vadd.f32 %v2757_v15, %v5469_v61 }
 0x4ed   : > { %v2873_v6 = vadd.f32 %v2872_v1, %v2808_v25  ;;  %v2984_v25 = vld [vmem:[%s5498_s15 + $0x48] sm:$0xff] }
 0x4ee   : > { %v2994_v12 = vadd.f32 %v2978_v21, %v2935_v35 }
 0x4f0   : > { %v3010_v8 = vmax.f32 %v2994_v12, 0.0  ;;  %v2822_v53 = vpop.f32.mrf.mxu0  ;;  %v2766_v33 = vpop.f32.mrf.mxu3 }
 0x4f1   : > { %v2823_v50 = vadd.f32 %v2822_v53, %v2758_v58 }
 0x4f2   : > { %3026 = vst [vmem:[%s3363_s11 + $0x18] sm:$0xff] %v3010_v8  ;;  %v2761_v8 = vadd.f32 %v2760_v26, %v5472_v29  ;;  %v2986_v26 = vld [vmem:[%s5498_s15 + $0x58] sm:$0xff] }
 0x4f3   : > { %v2937_v0 = vpop.f32.mrf.mxu2 }
 0x4f4   : > { %v2938_v51 = vadd.f32 %v2937_v0, %v2873_v6  ;;  %v2875_v27 = vpop.f32.mrf.mxu1 }
 0x4f5   : > { %v2876_v41 = vadd.f32 %v2875_v27, %v2811_v19  ;;  %v2985_v19 = vld [vmem:[%s5498_s15 + $0x50] sm:$0xff] }
 0x4f6   : > { %v2995_v30 = vadd.f32 %v2979_v5, %v2938_v51 }
 0x4f8   : > { %v3011_v49 = vmax.f32 %v2995_v30, 0.0  ;;  %v2825_v55 = vpop.f32.mrf.mxu0  ;;  %v2769_v5 = vpop.f32.mrf.mxu3 }
 0x4f9   : > { %v2826_v61 = vadd.f32 %v2825_v55, %v2761_v8 }
 0x4fa   : > { %3027 = vst [vmem:[%s3363_s11 + $0x20] sm:$0xff] %v3011_v49  ;;  %v2764_v49 = vadd.f32 %v2763_v40, %v5477_v22 }
 0x4fb   : > { %v2940_v18 = vpop.f32.mrf.mxu2 }
 0x4fc   : > { %v2941_v43 = vadd.f32 %v2940_v18, %v2876_v41  ;;  %v2878_v14 = vpop.f32.mrf.mxu1 }
 0x4fd   : > { %v2879_v48 = vadd.f32 %v2878_v14, %v2814_v36  ;;  %v2767_v36 = vadd.f32 %v2766_v33, %v5482_v52 }
 0x4fe   : > { %v2996_v17 = vadd.f32 %v2980_v57, %v2941_v43 }
 0x500   : > { %v3012_v39 = vmax.f32 %v2996_v17, 0.0  ;;  %v2828_v27 = vpop.f32.mrf.mxu0  ;;  %v2772_v29 = vpop.f32.mrf.mxu3 }
 0x501   : > { %v2829_v57 = vadd.f32 %v2828_v27, %v2764_v49 }
 0x502   : > { %3028 = vst [vmem:[%s3363_s11 + $0x28] sm:$0xff] %v3012_v39 }
 0x503   : > { %v2943_v31 = vpop.f32.mrf.mxu2 }
 0x504   : > { %v2944_v38 = vadd.f32 %v2943_v31, %v2879_v48  ;;  %v2881_v47 = vpop.f32.mrf.mxu1 }
 0x505   : > { %v2882_v2 = vadd.f32 %v2881_v47, %v2817_v28  ;;  %v2987_v47 = vld [vmem:[%s5498_s15 + $0x60] sm:$0xff] }
 0x506   : > { %v2997_v3 = vadd.f32 %v2981_v54, %v2944_v38 }
 0x508   : > { %v3013_v63 = vmax.f32 %v2997_v3, 0.0  ;;  %v2831_v14 = vpop.f32.mrf.mxu0  ;;  %v2775_v54 = vpop.f32.mrf.mxu3  ;;  %v2770_v3 = vadd.f32 %v2769_v5, %v5487_v7 }
 0x509   : > { %v2832_v22 = vadd.f32 %v2831_v14, %v2767_v36 }
 0x50a   : > { %3029 = vst [vmem:[%s3363_s11 + $0x30] sm:$0xff] %v3013_v63 }
 0x50b   : > { %v2946_v62 = vpop.f32.mrf.mxu2 }
 0x50c   : > { %v2947_v13 = vadd.f32 %v2946_v62, %v2882_v2  ;;  %v2884_v37 = vpop.f32.mrf.mxu1 }
 0x50d   : > { %v2885_v44 = vadd.f32 %v2884_v37, %v2820_v20  ;;  %v2988_v37 = vld [vmem:[%s5498_s15 + $0x68] sm:$0xff]  ;;  %v2773_v20 = vadd.f32 %v2772_v29, %v5490_v45 }
 0x50e   : > { %v2998_v24 = vadd.f32 %v2982_v23, %v2947_v13 }
 0x510   : > { %v3014_v46 = vmax.f32 %v2998_v24, 0.0  ;;  %v2834_v40 = vpop.f32.mrf.mxu0  ;;  %v2837_v34 = vpop.f32.mrf.mxu3 }
 0x511   : > { %v2835_v52 = vadd.f32 %v2834_v40, %v2770_v3  ;;  %v2838_v7 = vadd.f32 %v2837_v34, %v2773_v20 }
 0x512   : > { %3030 = vst [vmem:[%s3363_s11 + $0x38] sm:$0xff] %v3014_v46 }
 0x513   : > { %v2949_v32 = vpop.f32.mrf.mxu2 }
 0x514   : > { %v2950_v21 = vadd.f32 %v2949_v32, %v2885_v44  ;;  %v2887_v42 = vpop.f32.mrf.mxu1 }
 0x515   : > { %v2888_v12 = vadd.f32 %v2887_v42, %v2823_v50  ;;  %v2776_v42 = vadd.f32 %v2775_v54, %v5494_v10 }
 0x516   : > { %v2999_v35 = vadd.f32 %v2983_v59, %v2950_v21  ;;  %v2989_v59 = vld [vmem:[%s5498_s15 + $0x70] sm:$0xff] }
 0x518   : > { %v3015_v1 = vmax.f32 %v2999_v35, 0.0  ;;  %v2840_v21 = vpop.f32.mrf.mxu3 }
 0x519   : > { %v2841_v50 = vadd.f32 %v2840_v21, %v2776_v42 }
 0x51a   : > { %3031 = vst [vmem:[%s3363_s11 + $0x40] sm:$0xff] %v3015_v1 }
 0x51b   : > { %v2952_v9 = vpop.f32.mrf.mxu2 }
 0x51c   : > { %v2953_v6 = vadd.f32 %v2952_v9, %v2888_v12  ;;  %v2890_v0 = vpop.f32.mrf.mxu1  ;;  %v2990_v9 = vld [vmem:[%s5498_s15 + $0x78] sm:$0xff] }
 0x51d   : > { %v2891_v15 = vadd.f32 %v2890_v0, %v2826_v61 }
 0x51e   : > { %v3000_v11 = vadd.f32 %v2984_v25, %v2953_v6 }
 0x520   : > { %v3016_v51 = vmax.f32 %v3000_v11, 0.0 }
 0x522   : > { %3032 = vst [vmem:[%s3363_s11 + $0x48] sm:$0xff] %v3016_v51 }
 0x523   : > { %v2955_v30 = vpop.f32.mrf.mxu2 }
 0x524   : > { %v2956_v60 = vadd.f32 %v2955_v30, %v2891_v15  ;;  %v2893_v41 = vpop.f32.mrf.mxu1 }
 0x525   : > { %v2894_v43 = vadd.f32 %v2893_v41, %v2829_v57 }
 0x526   : > { %v3001_v18 = vadd.f32 %v2985_v19, %v2956_v60 }
 0x528   : > { %v3017_v56 = vmax.f32 %v3001_v18, 0.0 }
 0x52a   : > { %3033 = vst [vmem:[%s3363_s11 + $0x50] sm:$0xff] %v3017_v56 }
 0x52b   : > { %v2958_v17 = vpop.f32.mrf.mxu2 }
 0x52c   : > { %v2959_v39 = vadd.f32 %v2958_v17, %v2894_v43  ;;  %v2896_v48 = vpop.f32.mrf.mxu1 }
 0x52d   : > { %v2897_v4 = vadd.f32 %v2896_v48, %v2832_v22 }
 0x52e   : > { %v3002_v16 = vadd.f32 %v2986_v26, %v2959_v39 }
 0x530   : > { %v3018_v31 = vmax.f32 %v3002_v16, 0.0 }
 0x532   : > { %3034 = vst [vmem:[%s3363_s11 + $0x58] sm:$0xff] %v3018_v31 }
 0x533   : > { %v2961_v38 = vpop.f32.mrf.mxu2 }
 0x534   : > { %v2962_v28 = vadd.f32 %v2961_v38, %v2897_v4  ;;  %v2899_v63 = vpop.f32.mrf.mxu1 }
 0x535   : > { %v2900_v23 = vadd.f32 %v2899_v63, %v2835_v52 }
 0x536   : > { %v3003_v2 = vadd.f32 %v2987_v47, %v2962_v28 }
 0x538   : > { %v3019_v62 = vmax.f32 %v3003_v2, 0.0 }
 0x53a   : > { %3035 = vst [vmem:[%s3363_s11 + $0x60] sm:$0xff] %v3019_v62 }
 0x53b   : > { %v2964_v13 = vpop.f32.mrf.mxu2 }
 0x53c   : > { %v2965_v53 = vadd.f32 %v2964_v13, %v2900_v23  ;;  %v2902_v24 = vpop.f32.mrf.mxu1 }
 0x53d   : > { %v2903_v33 = vadd.f32 %v2902_v24, %v2838_v7 }
 0x53e   : > { %v3004_v46 = vadd.f32 %v2988_v37, %v2965_v53 }
 0x540   : > { %v3020_v44 = vmax.f32 %v3004_v46, 0.0 }
 0x542   : > { %3036 = vst [vmem:[%s3363_s11 + $0x68] sm:$0xff] %v3020_v44 }
 0x543   : > { %v2967_v32 = vpop.f32.mrf.mxu2 }
 0x544   : > { %v2968_v58 = vadd.f32 %v2967_v32, %v2903_v33  ;;  %v2905_v55 = vpop.f32.mrf.mxu1 }
 0x545   : > { %v2906_v12 = vadd.f32 %v2905_v55, %v2841_v50 }
 0x546   : > { %v3005_v35 = vadd.f32 %v2989_v59, %v2968_v58 }
 0x548   : > { %v3021_v1 = vmax.f32 %v3005_v35, 0.0 }
 0x54a   : > { %3037 = vst [vmem:[%s3363_s11 + $0x70] sm:$0xff] %v3021_v1 }
 0x54b   : > { %v2970_v45 = vpop.f32.mrf.mxu2 }
 0x54c   : > { %v2971_v25 = vadd.f32 %v2970_v45, %v2906_v12 }
 0x54e   : > { %v3006_v8 = vadd.f32 %v2990_v9, %v2971_v25 }
 0x550   : > { %v3022_v6 = vmax.f32 %v3006_v8, 0.0 }
 0x552   : > { %3038 = vst [vmem:[%s3363_s11 + $0x78] sm:$0xff] %v3022_v6 }
 0x553 PF: > { %s15_s22 = sadd.s32 1, %s3286_s22   ;;  %s5642_s18 = smov %s3278_s20 }
 0x554   : > { %p12_p9 = scmp.ge.s32.totalorder %s15_s22, 6   ;;  %s5643_s19 = smov %s3282_s21 }
 0x555   : > { %s5644_s20 = smov %s5647_s23  ;;  %s5645_s21 = smov %s5651_s24 }
 0x556   :  { %14 = sbr.rel (!%p12_p9) target bundleno = 3 (0x3), region = 87 }

</bundles_post_ra>
